<compile_context>
chip_gen: v7x
topology: tpu7x:2x2x1
jax: 0.10.0
libtpu: 0.0.40
codegen_flags: <defaults>
</compile_context>

<pallas_src>
import functools

import jax
import jax.numpy as jnp
from jax.experimental import pallas as pl
from jax.experimental.pallas import tpu as pltpu


def _zero_borders(pad_ref, *, H, W, C):
    """Zero the 1-wide spatial border of an (H+2, W+2, C) scratch (~2*(H+W+2)*C elements)."""
    zrow = jnp.zeros((1, W + 2, C), pad_ref.dtype)
    pad_ref[0:1, :, :] = zrow
    pad_ref[H + 1:H + 2, :, :] = zrow
    zcol = jnp.zeros((H, 1, C), pad_ref.dtype)
    pad_ref[1:H + 1, 0:1, :] = zcol
    pad_ref[1:H + 1, W + 1:W + 2, :] = zcol


def _conv3x3_k9(src_ref, w_ref, *, H, W, C, cdt):
    """3x3 conv from a zero-padded (H+2, W+2, C) f32 scratch as ONE K=9C MXU matmul.

    The (H*W, 9C) im2col patch columns are ordered (dh slowest, dw, c_in fastest), matching the
    (kh, kw, c_in, c_out).reshape(9C, C) grouped weight.  Taps are cast to `cdt` (bf16) so the
    MXU runs at bf16 rate while accumulation stays f32.
    """
    taps = [src_ref[dh:dh + H, dw:dw + W, :].astype(cdt)
            for dh in range(3) for dw in range(3)]
    patch = jnp.concatenate(taps, axis=-1).reshape(H * W, 9 * C)
    return jnp.dot(patch, w_ref[...], preferred_element_type=jnp.float32)


def _resblock_kernel(x_ref, w1_ref, b1_ref, w2_ref, b2_ref, o_ref,
                     xp_ref, hp_ref, *, H, W, C, cdt):
    # x_ref : (H, W, C) one image          w{1,2}_ref : (9C, C) bf16 grouped weights
    # b{1,2}_ref : (1, C) f32              o_ref : (H, W, C)
    # xp_ref / hp_ref : (H+2, W+2, C) f32 VMEM scratch (zero-padded conv inputs)

    # conv1 input: zero borders (cheap, every step -> megacore-safe) + direct interior copy.
    _zero_borders(xp_ref, H=H, W=W, C=C)
    xp_ref[1:H + 1, 1:W + 1, :] = x_ref[...].astype(xp_ref.dtype)

    # conv1 + bias + ReLU (f32); intermediate never leaves VMEM.
    h = _conv3x3_k9(xp_ref, w1_ref, H=H, W=W, C=C, cdt=cdt)           # (H*W, C) f32
    h = jnp.maximum(h + b1_ref[...], 0.0)

    _zero_borders(hp_ref, H=H, W=W, C=C)
    hp_ref[1:H + 1, 1:W + 1, :] = h.reshape(H, W, C)

    # conv2 + bias + residual (f32); re-read x_ref (VMEM-resident) instead of keeping it live.
    y = _conv3x3_k9(hp_ref, w2_ref, H=H, W=W, C=C, cdt=cdt)           # (H*W, C) f32
    y = y + b2_ref[...] + x_ref[...].reshape(H * W, C).astype(jnp.float32)
    o_ref[...] = y.reshape(H, W, C).astype(o_ref.dtype)


def residual_block_nobn_nhwc(x_nhwc, w1_oihw, b1, w2_oihw, b2,
                             compute_dtype=jnp.bfloat16):
    """Fused residual block on NHWC input; out = x + conv2(relu(conv1(x)))."""
    B, H, W, C = x_nhwc.shape
    # OIHW -> (kh, kw, c_in, c_out) -> grouped (9*C_in, C_out); row index (kh, kw, c_in) with kh
    # slowest, matching the (dh, dw) tap-concatenation order of the im2col patch.
    w1g = jnp.transpose(w1_oihw, (2, 3, 1, 0)).reshape(9 * C, C).astype(compute_dtype)
    w2g = jnp.transpose(w2_oihw, (2, 3, 1, 0)).reshape(9 * C, C).astype(compute_dtype)
    kernel = functools.partial(_resblock_kernel, H=H, W=W, C=C, cdt=compute_dtype)
    return pl.pallas_call(
        kernel,
        out_shape=jax.ShapeDtypeStruct((B, H, W, C), x_nhwc.dtype),
        grid_spec=pltpu.PrefetchScalarGridSpec(
            num_scalar_prefetch=0,
            grid=(B,),
            in_specs=[
                pl.BlockSpec((None, H, W, C), lambda b: (b, 0, 0, 0)),
                pl.BlockSpec((9 * C, C), lambda b: (0, 0)),
                pl.BlockSpec((1, C), lambda b: (0, 0)),
                pl.BlockSpec((9 * C, C), lambda b: (0, 0)),
                pl.BlockSpec((1, C), lambda b: (0, 0)),
            ],
            out_specs=pl.BlockSpec((None, H, W, C), lambda b: (b, 0, 0, 0)),
            scratch_shapes=[
                pltpu.VMEM((H + 2, W + 2, C), jnp.float32),   # zero-padded conv1 input
                pltpu.VMEM((H + 2, W + 2, C), jnp.float32),   # zero-padded ReLU(conv1) output
            ],
        ),
        compiler_params=pltpu.CompilerParams(
            dimension_semantics=("parallel",),
            vmem_limit_bytes=48 * 1024 * 1024,   # above default scoped limit, headroom on v7x
        ),
    )(x_nhwc, w1g, b1.astype(jnp.float32).reshape(1, C),
      w2g, b2.astype(jnp.float32).reshape(1, C))


def residual_block_nobn(x_nchw, w1_oihw, b1, w2_oihw, b2, compute_dtype=jnp.bfloat16):
    """NCHW I/O wrapper matching the PyTorch module."""
    # TODO(synk): in an NHWC trunk call residual_block_nobn_nhwc directly and hoist these layout
    # transposes to the trunk boundaries (they cost ~a full conv in HBM traffic).
    x = jnp.transpose(x_nchw, (0, 2, 3, 1))                   # NCHW -> NHWC
    out = residual_block_nobn_nhwc(x, w1_oihw, b1, w2_oihw, b2, compute_dtype)
    return jnp.transpose(out, (0, 3, 1, 2))                   # NHWC -> NCHW


if __name__ == "__main__":
    B, nf, H, W = 2, 32, 16, 16
    key = jax.random.PRNGKey(0)
    kx, k1, k2, k3, k4 = jax.random.split(key, 5)

    x = jax.random.normal(kx, (B, nf, H, W), jnp.float32)          # NCHW input
    w1 = 0.1 * jax.random.normal(k1, (nf, nf, 3, 3), jnp.float32)  # conv1 weight (OIHW)
    b1 = 0.1 * jax.random.normal(k2, (nf,), jnp.float32)           # conv1 bias
    w2 = 0.1 * jax.random.normal(k3, (nf, nf, 3, 3), jnp.float32)  # conv2 weight (OIHW)
    b2 = 0.1 * jax.random.normal(k4, (nf,), jnp.float32)           # conv2 bias

    out = jax.block_until_ready(residual_block_nobn(x, w1, b1, w2, b2))

    # Pure-JAX reference with the same numerics as the kernel (bf16 matmul inputs, f32 accumulate,
    # bias/ReLU/residual in f32).
    def conv_ref(x_nhwc, w_oihw, b):
        w_hwio = jnp.transpose(w_oihw, (2, 3, 1, 0)).astype(jnp.bfloat16)
        y = jax.lax.conv_general_dilated(
            x_nhwc.astype(jnp.bfloat16), w_hwio, window_strides=(1, 1), padding="SAME",
            dimension_numbers=("NHWC", "HWIO", "NHWC"),
            preferred_element_type=jnp.float32)
        return y + b

    x_nhwc = jnp.transpose(x, (0, 2, 3, 1))
    ref = jnp.maximum(conv_ref(x_nhwc, w1, b1), 0.0)
    ref = conv_ref(ref, w2, b2) + x_nhwc
    ref = jnp.transpose(ref, (0, 3, 1, 2))

    assert out.shape == x.shape and out.dtype == x.dtype
    max_err = jnp.max(jnp.abs(out - ref))
    assert jnp.allclose(out, ref, atol=5e-3, rtol=5e-3), f"mismatch vs reference (max abs err {max_err})"
    print("KERNEL_OK")
</pallas_src>

<mosaic_0001>
module attributes {stable_mosaic.version = 11 : i64} {
  func.func @_resblock_kernel(%arg0: i32, %arg1: memref<1x16x16x32xf32, #tpu.memory_space<vmem>>, %arg2: memref<288x32xbf16, #tpu.memory_space<vmem>>, %arg3: memref<1x32xf32, #tpu.memory_space<vmem>>, %arg4: memref<288x32xbf16, #tpu.memory_space<vmem>>, %arg5: memref<1x32xf32, #tpu.memory_space<vmem>>, %arg6: memref<1x16x16x32xf32, #tpu.memory_space<vmem>>, %arg7: memref<18x18x32xf32, #tpu.memory_space<vmem>>, %arg8: memref<18x18x32xf32, #tpu.memory_space<vmem>>) attributes {dimension_semantics = [#tpu.dimension_semantics<parallel>], iteration_bounds = array<i64: 2>, scalar_prefetch = 0 : i64, scratch_operands = 2 : i64, tpu.core_type = #tpu.core_type<tc>, window_params = [{transform_indices = @transform_0, window_bounds = array<i64: 1, 16, 16, 32>}, {pipeline_mode = #tpu.pipeline_mode<synchronous>, transform_indices = @transform_1, window_bounds = array<i64: 288, 32>}, {pipeline_mode = #tpu.pipeline_mode<synchronous>, transform_indices = @transform_2, window_bounds = array<i64: 1, 32>}, {pipeline_mode = #tpu.pipeline_mode<synchronous>, transform_indices = @transform_3, window_bounds = array<i64: 288, 32>}, {pipeline_mode = #tpu.pipeline_mode<synchronous>, transform_indices = @transform_4, window_bounds = array<i64: 1, 32>}, {transform_indices = @transform_5, window_bounds = array<i64: 1, 16, 16, 32>}]} {
    %cst = arith.constant 0.000000e+00 : f32
    %0 = vector.broadcast %cst : f32 to vector<1x18x32xf32>
    %c0 = arith.constant 0 : index
    %c0_0 = arith.constant 0 : index
    %c0_1 = arith.constant 0 : index
    %1 = vector.load %arg7[%c0, %c0_0, %c0_1] : memref<18x18x32xf32, #tpu.memory_space<vmem>>, vector<1x18x32xf32>
    tpu.vector_store %arg7[%c0, %c0_0, %c0_1], %0 {strides = array<i32>} : memref<18x18x32xf32, #tpu.memory_space<vmem>>, vector<1x18x32xf32>,
    %c17 = arith.constant 17 : index
    %c0_2 = arith.constant 0 : index
    %c0_3 = arith.constant 0 : index
    %2 = vector.load %arg7[%c17, %c0_2, %c0_3] : memref<18x18x32xf32, #tpu.memory_space<vmem>>, vector<1x18x32xf32>
    tpu.vector_store %arg7[%c17, %c0_2, %c0_3], %0 {strides = array<i32>} : memref<18x18x32xf32, #tpu.memory_space<vmem>>, vector<1x18x32xf32>,
    %cst_4 = arith.constant 0.000000e+00 : f32
    %3 = vector.broadcast %cst_4 : f32 to vector<16x1x32xf32>
    %c1 = arith.constant 1 : index
    %c0_5 = arith.constant 0 : index
    %c0_6 = arith.constant 0 : index
    %4 = vector.load %arg7[%c1, %c0_5, %c0_6] : memref<18x18x32xf32, #tpu.memory_space<vmem>>, vector<16x1x32xf32>
    tpu.vector_store %arg7[%c1, %c0_5, %c0_6], %3 {strides = array<i32>} : memref<18x18x32xf32, #tpu.memory_space<vmem>>, vector<16x1x32xf32>,
    %c1_7 = arith.constant 1 : index
    %c17_8 = arith.constant 17 : index
    %c0_9 = arith.constant 0 : index
    %5 = vector.load %arg7[%c1_7, %c17_8, %c0_9] : memref<18x18x32xf32, #tpu.memory_space<vmem>>, vector<16x1x32xf32>
    tpu.vector_store %arg7[%c1_7, %c17_8, %c0_9], %3 {strides = array<i32>} : memref<18x18x32xf32, #tpu.memory_space<vmem>>, vector<16x1x32xf32>,
    %c0_10 = arith.constant 0 : index
    %c0_11 = arith.constant 0 : index
    %c0_12 = arith.constant 0 : index
    %c0_13 = arith.constant 0 : index
    %6 = vector.load %arg1[%c0_10, %c0_11, %c0_12, %c0_13] : memref<1x16x16x32xf32, #tpu.memory_space<vmem>>, vector<1x16x16x32xf32>
    %7 = vector.shape_cast %6 : vector<1x16x16x32xf32> to vector<16x16x32xf32>
    %c1_14 = arith.constant 1 : index
    %c1_15 = arith.constant 1 : index
    %c0_16 = arith.constant 0 : index
    %8 = vector.load %arg7[%c1_14, %c1_15, %c0_16] : memref<18x18x32xf32, #tpu.memory_space<vmem>>, vector<16x16x32xf32>
    tpu.vector_store %arg7[%c1_14, %c1_15, %c0_16], %7 {strides = array<i32>} : memref<18x18x32xf32, #tpu.memory_space<vmem>>, vector<16x16x32xf32>,
    %c0_17 = arith.constant 0 : index
    %c0_18 = arith.constant 0 : index
    %c0_19 = arith.constant 0 : index
    %9 = vector.load %arg7[%c0_17, %c0_18, %c0_19] : memref<18x18x32xf32, #tpu.memory_space<vmem>>, vector<16x16x32xf32>
    %10 = arith.truncf %9 : vector<16x16x32xf32> to vector<16x16x32xbf16>
    %c0_20 = arith.constant 0 : index
    %c1_21 = arith.constant 1 : index
    %c0_22 = arith.constant 0 : index
    %11 = vector.load %arg7[%c0_20, %c1_21, %c0_22] : memref<18x18x32xf32, #tpu.memory_space<vmem>>, vector<16x16x32xf32>
    %12 = arith.truncf %11 : vector<16x16x32xf32> to vector<16x16x32xbf16>
    %c0_23 = arith.constant 0 : index
    %c2 = arith.constant 2 : index
    %c0_24 = arith.constant 0 : index
    %13 = vector.load %arg7[%c0_23, %c2, %c0_24] : memref<18x18x32xf32, #tpu.memory_space<vmem>>, vector<16x16x32xf32>
    %14 = arith.truncf %13 : vector<16x16x32xf32> to vector<16x16x32xbf16>
    %c1_25 = arith.constant 1 : index
    %c0_26 = arith.constant 0 : index
    %c0_27 = arith.constant 0 : index
    %15 = vector.load %arg7[%c1_25, %c0_26, %c0_27] : memref<18x18x32xf32, #tpu.memory_space<vmem>>, vector<16x16x32xf32>
    %16 = arith.truncf %15 : vector<16x16x32xf32> to vector<16x16x32xbf16>
    %c1_28 = arith.constant 1 : index
    %c1_29 = arith.constant 1 : index
    %c0_30 = arith.constant 0 : index
    %17 = vector.load %arg7[%c1_28, %c1_29, %c0_30] : memref<18x18x32xf32, #tpu.memory_space<vmem>>, vector<16x16x32xf32>
    %18 = arith.truncf %17 : vector<16x16x32xf32> to vector<16x16x32xbf16>
    %c1_31 = arith.constant 1 : index
    %c2_32 = arith.constant 2 : index
    %c0_33 = arith.constant 0 : index
    %19 = vector.load %arg7[%c1_31, %c2_32, %c0_33] : memref<18x18x32xf32, #tpu.memory_space<vmem>>, vector<16x16x32xf32>
    %20 = arith.truncf %19 : vector<16x16x32xf32> to vector<16x16x32xbf16>
    %c2_34 = arith.constant 2 : index
    %c0_35 = arith.constant 0 : index
    %c0_36 = arith.constant 0 : index
    %21 = vector.load %arg7[%c2_34, %c0_35, %c0_36] : memref<18x18x32xf32, #tpu.memory_space<vmem>>, vector<16x16x32xf32>
    %22 = arith.truncf %21 : vector<16x16x32xf32> to vector<16x16x32xbf16>
    %c2_37 = arith.constant 2 : index
    %c1_38 = arith.constant 1 : index
    %c0_39 = arith.constant 0 : index
    %23 = vector.load %arg7[%c2_37, %c1_38, %c0_39] : memref<18x18x32xf32, #tpu.memory_space<vmem>>, vector<16x16x32xf32>
    %24 = arith.truncf %23 : vector<16x16x32xf32> to vector<16x16x32xbf16>
    %c2_40 = arith.constant 2 : index
    %c2_41 = arith.constant 2 : index
    %c0_42 = arith.constant 0 : index
    %25 = vector.load %arg7[%c2_40, %c2_41, %c0_42] : memref<18x18x32xf32, #tpu.memory_space<vmem>>, vector<16x16x32xf32>
    %26 = arith.truncf %25 : vector<16x16x32xf32> to vector<16x16x32xbf16>
    %27 = tpu.concatenate %10, %12, %14, %16, %18, %20, %22, %24, %26 in 2 : vector<16x16x32xbf16>, vector<16x16x32xbf16>, vector<16x16x32xbf16>, vector<16x16x32xbf16>, vector<16x16x32xbf16>, vector<16x16x32xbf16>, vector<16x16x32xbf16>, vector<16x16x32xbf16>, vector<16x16x32xbf16> -> vector<16x16x288xbf16>
    %28 = vector.shape_cast %27 : vector<16x16x288xbf16> to vector<256x288xbf16>
    %c0_43 = arith.constant 0 : index
    %c0_44 = arith.constant 0 : index
    %29 = vector.load %arg2[%c0_43, %c0_44] : memref<288x32xbf16, #tpu.memory_space<vmem>>, vector<288x32xbf16>
    %cst_45 = arith.constant dense<0.000000e+00> : vector<256x32xf32>
    %30 = tpu.matmul %28, %29, %cst_45 {dimension_numbers = #tpu.dot_dimension_numbers<[1], [0], [0], [1], [0, 0, 1, 1], [], []>} : vector<256x288xbf16>, vector<288x32xbf16>, vector<256x32xf32> -> vector<256x32xf32>
    %c0_46 = arith.constant 0 : index
    %c0_47 = arith.constant 0 : index
    %31 = vector.load %arg3[%c0_46, %c0_47] : memref<1x32xf32, #tpu.memory_space<vmem>>, vector<1x32xf32>
    %32 = vector.broadcast %31 : vector<1x32xf32> to vector<256x32xf32>
    %33 = arith.addf %30, %32 : vector<256x32xf32>
    %cst_48 = arith.constant 0.000000e+00 : f32
    %34 = vector.broadcast %cst_48 : f32 to vector<256x32xf32>
    %35 = arith.maximumf %33, %34 : vector<256x32xf32>
    %cst_49 = arith.constant 0.000000e+00 : f32
    %36 = vector.broadcast %cst_49 : f32 to vector<1x18x32xf32>
    %c0_50 = arith.constant 0 : index
    %c0_51 = arith.constant 0 : index
    %c0_52 = arith.constant 0 : index
    %37 = vector.load %arg8[%c0_50, %c0_51, %c0_52] : memref<18x18x32xf32, #tpu.memory_space<vmem>>, vector<1x18x32xf32>
    tpu.vector_store %arg8[%c0_50, %c0_51, %c0_52], %36 {strides = array<i32>} : memref<18x18x32xf32, #tpu.memory_space<vmem>>, vector<1x18x32xf32>,
    %c17_53 = arith.constant 17 : index
    %c0_54 = arith.constant 0 : index
    %c0_55 = arith.constant 0 : index
    %38 = vector.load %arg8[%c17_53, %c0_54, %c0_55] : memref<18x18x32xf32, #tpu.memory_space<vmem>>, vector<1x18x32xf32>
    tpu.vector_store %arg8[%c17_53, %c0_54, %c0_55], %36 {strides = array<i32>} : memref<18x18x32xf32, #tpu.memory_space<vmem>>, vector<1x18x32xf32>,
    %cst_56 = arith.constant 0.000000e+00 : f32
    %39 = vector.broadcast %cst_56 : f32 to vector<16x1x32xf32>
    %c1_57 = arith.constant 1 : index
    %c0_58 = arith.constant 0 : index
    %c0_59 = arith.constant 0 : index
    %40 = vector.load %arg8[%c1_57, %c0_58, %c0_59] : memref<18x18x32xf32, #tpu.memory_space<vmem>>, vector<16x1x32xf32>
    tpu.vector_store %arg8[%c1_57, %c0_58, %c0_59], %39 {strides = array<i32>} : memref<18x18x32xf32, #tpu.memory_space<vmem>>, vector<16x1x32xf32>,
    %c1_60 = arith.constant 1 : index
    %c17_61 = arith.constant 17 : index
    %c0_62 = arith.constant 0 : index
    %41 = vector.load %arg8[%c1_60, %c17_61, %c0_62] : memref<18x18x32xf32, #tpu.memory_space<vmem>>, vector<16x1x32xf32>
    tpu.vector_store %arg8[%c1_60, %c17_61, %c0_62], %39 {strides = array<i32>} : memref<18x18x32xf32, #tpu.memory_space<vmem>>, vector<16x1x32xf32>,
    %42 = vector.shape_cast %35 : vector<256x32xf32> to vector<16x16x32xf32>
    %c1_63 = arith.constant 1 : index
    %c1_64 = arith.constant 1 : index
    %c0_65 = arith.constant 0 : index
    %43 = vector.load %arg8[%c1_63, %c1_64, %c0_65] : memref<18x18x32xf32, #tpu.memory_space<vmem>>, vector<16x16x32xf32>
    tpu.vector_store %arg8[%c1_63, %c1_64, %c0_65], %42 {strides = array<i32>} : memref<18x18x32xf32, #tpu.memory_space<vmem>>, vector<16x16x32xf32>,
    %c0_66 = arith.constant 0 : index
    %c0_67 = arith.constant 0 : index
    %c0_68 = arith.constant 0 : index
    %44 = vector.load %arg8[%c0_66, %c0_67, %c0_68] : memref<18x18x32xf32, #tpu.memory_space<vmem>>, vector<16x16x32xf32>
    %45 = arith.truncf %44 : vector<16x16x32xf32> to vector<16x16x32xbf16>
    %c0_69 = arith.constant 0 : index
    %c1_70 = arith.constant 1 : index
    %c0_71 = arith.constant 0 : index
    %46 = vector.load %arg8[%c0_69, %c1_70, %c0_71] : memref<18x18x32xf32, #tpu.memory_space<vmem>>, vector<16x16x32xf32>
    %47 = arith.truncf %46 : vector<16x16x32xf32> to vector<16x16x32xbf16>
    %c0_72 = arith.constant 0 : index
    %c2_73 = arith.constant 2 : index
    %c0_74 = arith.constant 0 : index
    %48 = vector.load %arg8[%c0_72, %c2_73, %c0_74] : memref<18x18x32xf32, #tpu.memory_space<vmem>>, vector<16x16x32xf32>
    %49 = arith.truncf %48 : vector<16x16x32xf32> to vector<16x16x32xbf16>
    %c1_75 = arith.constant 1 : index
    %c0_76 = arith.constant 0 : index
    %c0_77 = arith.constant 0 : index
    %50 = vector.load %arg8[%c1_75, %c0_76, %c0_77] : memref<18x18x32xf32, #tpu.memory_space<vmem>>, vector<16x16x32xf32>
    %51 = arith.truncf %50 : vector<16x16x32xf32> to vector<16x16x32xbf16>
    %c1_78 = arith.constant 1 : index
    %c1_79 = arith.constant 1 : index
    %c0_80 = arith.constant 0 : index
    %52 = vector.load %arg8[%c1_78, %c1_79, %c0_80] : memref<18x18x32xf32, #tpu.memory_space<vmem>>, vector<16x16x32xf32>
    %53 = arith.truncf %52 : vector<16x16x32xf32> to vector<16x16x32xbf16>
    %c1_81 = arith.constant 1 : index
    %c2_82 = arith.constant 2 : index
    %c0_83 = arith.constant 0 : index
    %54 = vector.load %arg8[%c1_81, %c2_82, %c0_83] : memref<18x18x32xf32, #tpu.memory_space<vmem>>, vector<16x16x32xf32>
    %55 = arith.truncf %54 : vector<16x16x32xf32> to vector<16x16x32xbf16>
    %c2_84 = arith.constant 2 : index
    %c0_85 = arith.constant 0 : index
    %c0_86 = arith.constant 0 : index
    %56 = vector.load %arg8[%c2_84, %c0_85, %c0_86] : memref<18x18x32xf32, #tpu.memory_space<vmem>>, vector<16x16x32xf32>
    %57 = arith.truncf %56 : vector<16x16x32xf32> to vector<16x16x32xbf16>
    %c2_87 = arith.constant 2 : index
    %c1_88 = arith.constant 1 : index
    %c0_89 = arith.constant 0 : index
    %58 = vector.load %arg8[%c2_87, %c1_88, %c0_89] : memref<18x18x32xf32, #tpu.memory_space<vmem>>, vector<16x16x32xf32>
    %59 = arith.truncf %58 : vector<16x16x32xf32> to vector<16x16x32xbf16>
    %c2_90 = arith.constant 2 : index
    %c2_91 = arith.constant 2 : index
    %c0_92 = arith.constant 0 : index
    %60 = vector.load %arg8[%c2_90, %c2_91, %c0_92] : memref<18x18x32xf32, #tpu.memory_space<vmem>>, vector<16x16x32xf32>
    %61 = arith.truncf %60 : vector<16x16x32xf32> to vector<16x16x32xbf16>
    %62 = tpu.concatenate %45, %47, %49, %51, %53, %55, %57, %59, %61 in 2 : vector<16x16x32xbf16>, vector<16x16x32xbf16>, vector<16x16x32xbf16>, vector<16x16x32xbf16>, vector<16x16x32xbf16>, vector<16x16x32xbf16>, vector<16x16x32xbf16>, vector<16x16x32xbf16>, vector<16x16x32xbf16> -> vector<16x16x288xbf16>
    %63 = vector.shape_cast %62 : vector<16x16x288xbf16> to vector<256x288xbf16>
    %c0_93 = arith.constant 0 : index
    %c0_94 = arith.constant 0 : index
    %64 = vector.load %arg4[%c0_93, %c0_94] : memref<288x32xbf16, #tpu.memory_space<vmem>>, vector<288x32xbf16>
    %cst_95 = arith.constant dense<0.000000e+00> : vector<256x32xf32>
    %65 = tpu.matmul %63, %64, %cst_95 {dimension_numbers = #tpu.dot_dimension_numbers<[1], [0], [0], [1], [0, 0, 1, 1], [], []>} : vector<256x288xbf16>, vector<288x32xbf16>, vector<256x32xf32> -> vector<256x32xf32>
    %c0_96 = arith.constant 0 : index
    %c0_97 = arith.constant 0 : index
    %66 = vector.load %arg5[%c0_96, %c0_97] : memref<1x32xf32, #tpu.memory_space<vmem>>, vector<1x32xf32>
    %67 = vector.broadcast %66 : vector<1x32xf32> to vector<256x32xf32>
    %68 = arith.addf %65, %67 : vector<256x32xf32>
    %c0_98 = arith.constant 0 : index
    %c0_99 = arith.constant 0 : index
    %c0_100 = arith.constant 0 : index
    %c0_101 = arith.constant 0 : index
    %69 = vector.load %arg1[%c0_98, %c0_99, %c0_100, %c0_101] : memref<1x16x16x32xf32, #tpu.memory_space<vmem>>, vector<1x16x16x32xf32>
    %70 = vector.shape_cast %69 : vector<1x16x16x32xf32> to vector<16x16x32xf32>
    %71 = vector.shape_cast %70 : vector<16x16x32xf32> to vector<256x32xf32>
    %72 = arith.addf %68, %71 : vector<256x32xf32>
    %73 = vector.shape_cast %72 : vector<256x32xf32> to vector<16x16x32xf32>
    %c0_102 = arith.constant 0 : index
    %c0_103 = arith.constant 0 : index
    %c0_104 = arith.constant 0 : index
    %c0_105 = arith.constant 0 : index
    %74 = vector.load %arg6[%c0_102, %c0_103, %c0_104, %c0_105] : memref<1x16x16x32xf32, #tpu.memory_space<vmem>>, vector<1x16x16x32xf32>
    %75 = vector.shape_cast %74 : vector<1x16x16x32xf32> to vector<16x16x32xf32>
    %76 = vector.shape_cast %73 : vector<16x16x32xf32> to vector<1x16x16x32xf32>
    tpu.vector_store %arg6[%c0_102, %c0_103, %c0_104, %c0_105], %76 {strides = array<i32>} : memref<1x16x16x32xf32, #tpu.memory_space<vmem>>, vector<1x16x16x32xf32>,
    return
  }
  func.func @transform_0(%arg0: i32) -> (i32, i32, i32, i32) {
    %c0_i32 = arith.constant 0 : i32
    %c0_i32_0 = arith.constant 0 : i32
    %c0_i32_1 = arith.constant 0 : i32
    %c0_i32_2 = arith.constant 0 : i32
    return %arg0, %c0_i32, %c0_i32_0, %c0_i32_1 : i32, i32, i32, i32
  }
  func.func @transform_1(%arg0: i32) -> (i32, i32) {
    %c0_i32 = arith.constant 0 : i32
    %c0_i32_0 = arith.constant 0 : i32
    %c0_i32_1 = arith.constant 0 : i32
    return %c0_i32, %c0_i32_0 : i32, i32
  }
  func.func @transform_2(%arg0: i32) -> (i32, i32) {
    %c0_i32 = arith.constant 0 : i32
    %c0_i32_0 = arith.constant 0 : i32
    %c0_i32_1 = arith.constant 0 : i32
    return %c0_i32, %c0_i32_0 : i32, i32
  }
  func.func @transform_3(%arg0: i32) -> (i32, i32) {
    %c0_i32 = arith.constant 0 : i32
    %c0_i32_0 = arith.constant 0 : i32
    %c0_i32_1 = arith.constant 0 : i32
    return %c0_i32, %c0_i32_0 : i32, i32
  }
  func.func @transform_4(%arg0: i32) -> (i32, i32) {
    %c0_i32 = arith.constant 0 : i32
    %c0_i32_0 = arith.constant 0 : i32
    %c0_i32_1 = arith.constant 0 : i32
    return %c0_i32, %c0_i32_0 : i32, i32
  }
  func.func @transform_5(%arg0: i32) -> (i32, i32, i32, i32) {
    %c0_i32 = arith.constant 0 : i32
    %c0_i32_0 = arith.constant 0 : i32
    %c0_i32_1 = arith.constant 0 : i32
    %c0_i32_2 = arith.constant 0 : i32
    return %arg0, %c0_i32, %c0_i32_0, %c0_i32_1 : i32, i32, i32, i32
  }
}

</mosaic_0001>

<bundles_post_ra>
// kernel: tpu_custom_call.1
= control target key start
LH: loop header
LB: loop body
LE: loop exit
PB: predicated region body
PF: predicated region fallthrough
CT: control target
= control target key end

     0   :  { %10 = vsyncpa [#allocation5], 0  ;;  %s5897_s0 = inlined_call_operand.hbm [shape: f32[2,16,16,32], index: 0, kind: input, shape index: {}]   ;;  %s5898_s1 = inlined_call_operand.vmem [shape: bf16[288,32], index: 1, kind: input, shape index: {}]   ;;  %s5899_s2 = inlined_call_operand.vmem [shape: f32[1,32], index: 2, kind: input, shape index: {}]   ;;  %s5900_s3 = inlined_call_operand.vmem [shape: bf16[288,32], index: 3, kind: input, shape index: {}]   ;;  %s5901_s4 = inlined_call_operand.vmem [shape: f32[1,32], index: 4, kind: input, shape index: {}]   ;;  %s5902_s5 = inlined_call_operand.hbm [shape: f32[2,16,16,32], index: 5, kind: output, shape index: {}]  }
   0x1   :  { %12 = vsyncpa [#allocation5 + $0x1], 0 }
   0x2   :  { %13 = vsyncpa [#allocation6], 0 }
   0x3   :  { %15 = vsyncpa [#allocation6 + $0x1], 0  ;;  %s4289_s18 = smov 0   ;;  %s4291_s19 = smov 0  }
   0x4   :  { %s4293_s20 = smov 0   ;;  %s4295_s21 = smov 0  }
   0x5 LB: > { %s4310_s22 = sadd.s32 4294967295, %s4247_s21   ;;  %s3636_s23 = sadd.s32 4294967294, %s4247_s21   ;;  %s4247_s21 = sphi %s4295_s21, %s5915_s21   ;;  %s4243_s20 = sphi %s4293_s20, %s5914_s20   ;;  %s4239_s19 = sphi %s4291_s19, %s5913_s19   ;;  %s4235_s18 = sphi %s4289_s18, %s5912_s18  }
   0x6   : > { %s4314_s24 = sadd.s32 1, %s4247_s21   ;;  %s28_s25 = sadd.s32 1, %s4243_s20 }
   0x7   : > { %s25_s26 = ssub.s32 %s4247_s21, %s4314_s24  ;;  %p35_p0 = scmp.ne.s32.totalorder %s4243_s20, %s4239_s19 }
   0x8   : > { %p26_p1 = scmp.eq.s32.totalorder %s25_s26, 0  ;;  %p36_p2 = scmp.eq.s32.totalorder %s4247_s21, 0 }
   0x9   : > { %p41_p3 = scmp.ne.s32.totalorder %s4239_s19, %s4235_s18  ;;  %p42_p4 = scmp.eq.s32.totalorder %s4310_s22, 0 }
   0xa   : > { %s4326_s27 = scalar_select %p26_p1, %s4243_s20, %s28_s25  }
   0xb   : > { %p4328_p5 = por %p36_p2, %p35_p0  ;;  %p4332_p6 = por %p42_p4, %p41_p3 }
   0xc   : > { %p149_p7 = scmp.eq.s32.totalorder %s4310_s22, 1  ;;  %p155_p8 = scmp.eq.s32.totalorder %s3636_s23, 1 }
   0xd   : > { %p4070_p10 = scmp.lt.s32.totalorder %s4247_s21, 2  ;;  %s187_s7 = sand.u32 1, %s4243_s20  }
   0xe   : > { %p4339_p11 = por %p149_p7, %p35_p0  ;;  %p4343_p12 = por %p155_p8, %p41_p3 }
   0xf   : > { %s3720_s8 = sshll.u32 %s4247_s21, 12  ;;  %s3639_s9 = sshll.u32 %s187_s7, 8 }
  0x10   : > { %s5906_s30 = scalar_select %p4339_p11, 1, 0 }
  0x11   : > { %s5907_s6 = scalar_select %p4343_p12, 1, 0 }
  0x12   : > { %s4352_s12 = scalar_lea.hbm %s5897_s0, %s3720_s8  ;;  %s191_s13 = scalar_lea.vmem [#allocation4], %s3639_s9 }
  0x13   : > { %s198_s14 = sshll.u32 %s191_s13, 4  ;;  %p4356_p13 = pnand %p4070_p10, %p4328_p5  ;;  %s4360_s14 = int_to_ptr.vmem [resolvable:$true] %s198_s14 }
  0x14   : > { %s4362_s16 = scalar_lea.sflag [#allocation5], %s187_s7  ;;  %s4151_s17 = scalar_lea.hbm %s4352_s12, 4096 }
  0x15   : > { %p4152_p0 = scmp.ne.s32.totalorder %s4352_s12, %s4151_s17  ;;  %p4153_p1 = pneg %p4356_p13 }
  0x16   : > { %s4156_s26 = scalar_lea.hbm %s5897_s0, 8192  ;;  %p4157_p4 = scmp.lt.u32.totalorder %s4352_s12, %s5897_s0 }
  0x17   : > { %p4154_p2 = pnand %p4153_p1, %p4152_p0  ;;  %p4158_p5 = scmp.lt.u32.totalorder %s4156_s26, %s4151_s17 }
  0x18   : > { %p4160_p8 = scmp.lt.u32.totalorder %s4151_s17, %s4352_s12 }
  0x19   : > { %p4155_p3 = pneg %p4154_p2  ;;  %p4159_p7 = por %p4158_p5, %p4157_p4 }
  0x1b   : > { %p4161_p10 = por %p4160_p8, %p4159_p7 }
  0x1d   : > { %p4162_p9 = pnand %p4161_p10, %p4155_p3 }
  0x1f   : > { %4165 = shalt.err (!%p4162_p9)
}
  0x20   : > { %s4166_s7 = scalar_lea.vmem %s4360_s14, 4096  ;;  %s4249_s9 = smov [#allocation4]  }
  0x21   : > { %p4167_p0 = scmp.ne.s32.totalorder %s4360_s14, %s4166_s7  ;;  %s4171_s10 = sshll.u32 %s4249_s9, 4  ;;  %s4172_s10 = int_to_ptr.vmem [resolvable:$false] %s4171_s10 }
  0x22   : > { %s4173_s11 = scalar_lea.vmem %s4172_s10, 8192  ;;  %p4174_p11 = scmp.lt.s32.totalorder %s4360_s14, %s4172_s10 }
  0x23   : > { %p4169_p2 = pnand %p4167_p0, %p4153_p1  ;;  %p4175_p4 = scmp.lt.s32.totalorder %s4173_s11, %s4166_s7 }
  0x25   : > { %p4170_p12 = pneg %p4169_p2  ;;  %p4176_p5 = por %p4175_p4, %p4174_p11 }
  0x27   : > { %p4177_p7 = pnand %p4176_p5, %p4170_p12 }
  0x29   : > { %4180 = shalt.err (!%p4177_p7)
}
  0x2a   : > { %s4250_s13 = smov 128   ;;  %s4251_s17 = smov 8  }
  0x2b   : > { %4065 = dma.hbm_to_vmem [thread:$0]  (!%p4356_p13), %s4352_s12, 4096, %s4360_s14, %s4362_s16, %s4250_s13, %s4250_s13, %s4251_s17  }
  0x2c   : > { %p3642_p9 = scmp.ge.s32.totalorder %s4247_s21, 1  ;;  %p206_p1 = scmp.lt.s32.totalorder %s4247_s21, 3 }
  0x2e   : > { %p207_p3 = pnand %p3642_p9, %p206_p1 }
  0x2f   : > { %s4393_s23 = sand.u32 (!%p207_p3), 1, %s4239_s19  }
  0x30   : > { %210 = sbr.rel (%p207_p3) target bundleno = 1015 (0x3f7), region = 40  ;;  %s3643_s25 = sshll.u32 (!%p207_p3), %s4393_s23, 8 }
  0x31   : > { %s213_s26 = scalar_lea.sflag (!%p207_p3), [#allocation5], %s4393_s23  ;;  %s4399_s28 = scalar_lea.vmem (!%p207_p3), [#allocation4], %s3643_s25 }
  0x37   : > { %4226 = dma.done.wait (%p4332_p6), %s213_s26, 4096  }
  0x38   : > { %4228 = vsyncadd (%p4332_p6), %s213_s26, 4294963200  ;;  %vm244_vm0 = vcmask 261120   ;;  %vm247_vm1 = vcmask 254976   ;;  %v4252_v0 = vmov 0.0   ;;  %vm254_vm2 = vcmask 253952   ;;  %v289_v1 = vld [vmem:[%s4399_s28 + $0x10] sm:$0xff] }
  0x39   : > { %245 = vst.msk [vmem:[#allocation2] sm:$0xff] %vm244_vm0, %v4252_v0  ;;  %246 = vst.msk [vmem:[#allocation2 + $0x8] sm:$0xff] %vm244_vm0, %v4252_v0  ;;  %v290_v2 = vld [vmem:[%s4399_s28 + $0x18] sm:$0xff]  ;;  %v287_v3 = vld [vmem:[%s4399_s28] sm:$0xff]  ;;  %s4253_s29 = smov 64   ;;  %s4254_s12 = smov 32  }
  0x3a   : > { %248 = vst.msk [vmem:[#allocation2 + $0x10] sm:$0x3] %vm247_vm1, %v4252_v0  ;;  %252 = vst.msk [vmem:[#allocation2 + $0x1a8] sm:$0x3] %vm247_vm1, %v4252_v0  ;;  %v288_v9 = vld [vmem:[%s4399_s28 + $0x8] sm:$0xff]  ;;  %v291_v10 = vld [vmem:[%s4399_s28 + $0x20] sm:$0xff] }
  0x3b   : > { %250 = vst.msk [vmem:[#allocation2 + $0x198] sm:$0xff] %vm244_vm0, %v4252_v0  ;;  %251 = vst.msk [vmem:[#allocation2 + $0x1a0] sm:$0xff] %vm244_vm0, %v4252_v0  ;;  %v292_v12 = vld [vmem:[%s4399_s28 + $0x28] sm:$0xff]  ;;  %v293_v13 = vld [vmem:[%s4399_s28 + $0x30] sm:$0xff]  ;;  %s4255_s14 = smov 96   ;;  %vm1120_vm3 = vcmask 523264  }
  0x3c   : > { %1883 = vst.msk [vmem:[#allocation3] sm:$0xff] %vm244_vm0, %v4252_v0  ;;  %1884 = vst.msk [vmem:[#allocation3 + $0x8] sm:$0xff] %vm244_vm0, %v4252_v0  ;;  %v294_v14 = vld [vmem:[%s4399_s28 + $0x38] sm:$0xff]  ;;  %v295_v15 = vld [vmem:[%s4399_s28 + $0x40] sm:$0xff]  ;;  %vm1153_vm4 = vcmask 785408   ;;  %p5909_p11 = scmp.ne.s32.totalorder %s5906_s30, 0 }
  0x3d   : > { %1885 = vst.msk [vmem:[#allocation3 + $0x10] sm:$0x3] %vm247_vm1, %v4252_v0  ;;  %1889 = vst.msk [vmem:[#allocation3 + $0x1a8] sm:$0x3] %vm247_vm1, %v4252_v0  ;;  %v296_v16 = vld [vmem:[%s4399_s28 + $0x48] sm:$0xff]  ;;  %v297_v17 = vld [vmem:[%s4399_s28 + $0x50] sm:$0xff] }
  0x3e   : > { %1887 = vst.msk [vmem:[#allocation3 + $0x198] sm:$0xff] %vm244_vm0, %v4252_v0  ;;  %1888 = vst.msk [vmem:[#allocation3 + $0x1a0] sm:$0xff] %vm244_vm0, %v4252_v0  ;;  %v298_v18 = vld [vmem:[%s4399_s28 + $0x58] sm:$0xff]  ;;  %v299_v19 = vld [vmem:[%s4399_s28 + $0x60] sm:$0xff]  ;;  %s4256_s9 = smov [#allocation7]  }
  0x3f   : > { %256 = vst.msk [vmem:[#allocation2 + $0x30] sm:$0x1] %vm254_vm2, %v4252_v0  ;;  %255 = vst.msk [vmem:[#allocation2 + $0x18] sm:$0x1] %vm254_vm2, %v4252_v0  ;;  %v300_v20 = vld [vmem:[%s4399_s28 + $0x68] sm:$0xff]  ;;  %v301_v21 = vld [vmem:[%s4399_s28 + $0x70] sm:$0xff] }
  0x40   : > { %257 = vst.msk [vmem:[#allocation2 + $0x48] sm:$0x1] %vm254_vm2, %v4252_v0  ;;  %258 = vst.msk [vmem:[#allocation2 + $0x60] sm:$0x1] %vm254_vm2, %v4252_v0  ;;  %v447_v4 = vld [vmem:[#allocation2 + $0x2] sm:$0xff]  ;;  %v302_v22 = vld [vmem:[%s4399_s28 + $0x78] sm:$0xff] }
  0x41   : > { %259 = vst.msk [vmem:[#allocation2 + $0x78] sm:$0x1] %vm254_vm2, %v4252_v0  ;;  %260 = vst.msk [vmem:[#allocation2 + $0x90] sm:$0x1] %vm254_vm2, %v4252_v0  ;;  %v448_v5 = vld [vmem:[#allocation2 + $0xa] sm:$0xff]  ;;  %v399_v6 = vld [vmem:[#allocation2 + $0x1] sm:$0xff] }
  0x42   : > { %261 = vst.msk [vmem:[#allocation2 + $0xa8] sm:$0x1] %vm254_vm2, %v4252_v0  ;;  %262 = vst.msk [vmem:[#allocation2 + $0xc0] sm:$0x1] %vm254_vm2, %v4252_v0  ;;  %v479_v7 = vpack.c.bf16 %v448_v5, %v447_v4  ;;  %v400_v8 = vld [vmem:[#allocation2 + $0x9] sm:$0xff]  ;;  %v303_v23 = vld [vmem:[%s4399_s28 + $0x80] sm:$0xff] }
  0x43   : > { %263 = vst.msk [vmem:[#allocation2 + $0xd8] sm:$0x1] %vm254_vm2, %v4252_v0  ;;  %264 = vst.msk [vmem:[#allocation2 + $0xf0] sm:$0x1] %vm254_vm2, %v4252_v0  ;;  %v431_v11 = vpack.c.bf16 %v400_v8, %v399_v6  ;;  %v304_v24 = vld [vmem:[%s4399_s28 + $0x88] sm:$0xff]  ;;  %v4112_v50 = vld [vmem:[%s5898_s1 + $0x40] sm:$0xff]  }
  0x44   : > { %265 = vst.msk [vmem:[#allocation2 + $0x108] sm:$0x1] %vm254_vm2, %v4252_v0  ;;  %266 = vst.msk [vmem:[#allocation2 + $0x120] sm:$0x1] %vm254_vm2, %v4252_v0  ;;  %848 = vrot.lane.b32.xlu1 %v479_v7, %s4253_s29  ;;  %v4113_v52 = vld [vmem:[%s5898_s1] sm:$0xff]   ;;  %3722 = vmatprep.subr.bf16.mxu0 %v4112_v50  ;;  %v4114_v55 = vld [vmem:[%s5898_s1 + $0x48] sm:$0xff]  }
  0x45   : > { %267 = vst.msk [vmem:[#allocation2 + $0x138] sm:$0x1] %vm254_vm2, %v4252_v0  ;;  %268 = vst.msk [vmem:[#allocation2 + $0x150] sm:$0x1] %vm254_vm2, %v4252_v0  ;;  %800 = vrot.lane.b32.xlu0 %v431_v11, %s4254_s12  ;;  %3723 = vmatpush3.bf16.msra.mxu0 %v4113_v52  ;;  %v4115_v57 = vld [vmem:[%s5898_s1 + $0x8] sm:$0xff]   ;;  %v305_v58 = vld [vmem:[%s4399_s28 + $0x90] sm:$0xff] }
  0x46   : > { %269 = vst.msk [vmem:[#allocation2 + $0x168] sm:$0x1] %vm254_vm2, %v4252_v0  ;;  %270 = vst.msk [vmem:[#allocation2 + $0x180] sm:$0x1] %vm254_vm2, %v4252_v0  ;;  %v306_v59 = vld [vmem:[%s4399_s28 + $0x98] sm:$0xff]  ;;  %3724 = vmatprep.subr.bf16.mxu0 %v4114_v55  ;;  %v4116_v60 = vld [vmem:[%s5898_s1 + $0x50] sm:$0xff]  }
  0x47   : > { %271 = vst.msk [vmem:[#allocation2 + $0x29] sm:$0x1] %vm254_vm2, %v4252_v0  ;;  %272 = vst.msk [vmem:[#allocation2 + $0x41] sm:$0x1] %vm254_vm2, %v4252_v0  ;;  %v4117_v62 = vld [vmem:[%s5898_s1 + $0x10] sm:$0xff]   ;;  %v308_v4 = vld [vmem:[%s4399_s28 + $0xa8] sm:$0xff] }
  0x48   : > { %273 = vst.msk [vmem:[#allocation2 + $0x59] sm:$0x1] %vm254_vm2, %v4252_v0  ;;  %274 = vst.msk [vmem:[#allocation2 + $0x71] sm:$0x1] %vm254_vm2, %v4252_v0  ;;  %v4120_v6 = vld [vmem:[%s5898_s1 + $0x60] sm:$0xff]   ;;  %s4185_s10 = sshll.u32 %s4256_s9, 4  ;;  %s4186_s10 = int_to_ptr.vmem [resolvable:$false] %s4185_s10 }
  0x49   : > { %275 = vst.msk [vmem:[#allocation2 + $0x89] sm:$0x1] %vm254_vm2, %v4252_v0  ;;  %276 = vst.msk [vmem:[#allocation2 + $0xa1] sm:$0x1] %vm254_vm2, %v4252_v0  ;;  %3725 = vmatpush3.bf16.msra.mxu0 %v4115_v57  ;;  %s4187_s11 = scalar_lea.vmem %s4186_s10, 8192 }
  0x4a   : > { %277 = vst.msk [vmem:[#allocation2 + $0xb9] sm:$0x1] %vm254_vm2, %v4252_v0  ;;  %278 = vst.msk [vmem:[#allocation2 + $0xd1] sm:$0x1] %vm254_vm2, %v4252_v0  ;;  %3726 = vmatprep.subr.bf16.mxu0 %v4116_v60 }
  0x4b   : > { %279 = vst.msk [vmem:[#allocation2 + $0xe9] sm:$0x1] %vm254_vm2, %v4252_v0  ;;  %280 = vst.msk [vmem:[#allocation2 + $0x101] sm:$0x1] %vm254_vm2, %v4252_v0 }
  0x4c   : > { %281 = vst.msk [vmem:[#allocation2 + $0x119] sm:$0x1] %vm254_vm2, %v4252_v0  ;;  %282 = vst.msk [vmem:[#allocation2 + $0x131] sm:$0x1] %vm254_vm2, %v4252_v0 }
  0x4d   : > { %283 = vst.msk [vmem:[#allocation2 + $0x149] sm:$0x1] %vm254_vm2, %v4252_v0  ;;  %284 = vst.msk [vmem:[#allocation2 + $0x161] sm:$0x1] %vm254_vm2, %v4252_v0  ;;  %3727 = vmatpush3.bf16.msra.mxu0 %v4117_v62 }
  0x4e   : > { %285 = vst.msk [vmem:[#allocation2 + $0x179] sm:$0x1] %vm254_vm2, %v4252_v0  ;;  %286 = vst.msk [vmem:[#allocation2 + $0x191] sm:$0x1] %vm254_vm2, %v4252_v0 }
  0x4f   : > { %1891 = vst.msk [vmem:[#allocation3 + $0x18] sm:$0x1] %vm254_vm2, %v4252_v0  ;;  %1892 = vst.msk [vmem:[#allocation3 + $0x30] sm:$0x1] %vm254_vm2, %v4252_v0 }
  0x50   : > { %1893 = vst.msk [vmem:[#allocation3 + $0x48] sm:$0x1] %vm254_vm2, %v4252_v0  ;;  %1894 = vst.msk [vmem:[#allocation3 + $0x60] sm:$0x1] %vm254_vm2, %v4252_v0 }
  0x51   : > { %1895 = vst.msk [vmem:[#allocation3 + $0x78] sm:$0x1] %vm254_vm2, %v4252_v0  ;;  %1896 = vst.msk [vmem:[#allocation3 + $0x90] sm:$0x1] %vm254_vm2, %v4252_v0 }
  0x52   : > { %1897 = vst.msk [vmem:[#allocation3 + $0xa8] sm:$0x1] %vm254_vm2, %v4252_v0  ;;  %1898 = vst.msk [vmem:[#allocation3 + $0xc0] sm:$0x1] %vm254_vm2, %v4252_v0 }
  0x53   : > { %1899 = vst.msk [vmem:[#allocation3 + $0xd8] sm:$0x1] %vm254_vm2, %v4252_v0  ;;  %1900 = vst.msk [vmem:[#allocation3 + $0xf0] sm:$0x1] %vm254_vm2, %v4252_v0 }
  0x54   : > { %1901 = vst.msk [vmem:[#allocation3 + $0x108] sm:$0x1] %vm254_vm2, %v4252_v0  ;;  %1902 = vst.msk [vmem:[#allocation3 + $0x120] sm:$0x1] %vm254_vm2, %v4252_v0 }
  0x55   : > { %1903 = vst.msk [vmem:[#allocation3 + $0x138] sm:$0x1] %vm254_vm2, %v4252_v0  ;;  %1904 = vst.msk [vmem:[#allocation3 + $0x150] sm:$0x1] %vm254_vm2, %v4252_v0 }
  0x56   : > { %1905 = vst.msk [vmem:[#allocation3 + $0x168] sm:$0x1] %vm254_vm2, %v4252_v0  ;;  %1906 = vst.msk [vmem:[#allocation3 + $0x180] sm:$0x1] %vm254_vm2, %v4252_v0 }
  0x57   : > { %1907 = vst.msk [vmem:[#allocation3 + $0x29] sm:$0x1] %vm254_vm2, %v4252_v0  ;;  %1908 = vst.msk [vmem:[#allocation3 + $0x41] sm:$0x1] %vm254_vm2, %v4252_v0 }
  0x58   : > { %1909 = vst.msk [vmem:[#allocation3 + $0x59] sm:$0x1] %vm254_vm2, %v4252_v0  ;;  %1910 = vst.msk [vmem:[#allocation3 + $0x71] sm:$0x1] %vm254_vm2, %v4252_v0 }
  0x59   : > { %1911 = vst.msk [vmem:[#allocation3 + $0x89] sm:$0x1] %vm254_vm2, %v4252_v0  ;;  %1912 = vst.msk [vmem:[#allocation3 + $0xa1] sm:$0x1] %vm254_vm2, %v4252_v0 }
  0x5a   : > { %1913 = vst.msk [vmem:[#allocation3 + $0xb9] sm:$0x1] %vm254_vm2, %v4252_v0  ;;  %1914 = vst.msk [vmem:[#allocation3 + $0xd1] sm:$0x1] %vm254_vm2, %v4252_v0 }
  0x5b   : > { %1915 = vst.msk [vmem:[#allocation3 + $0xe9] sm:$0x1] %vm254_vm2, %v4252_v0  ;;  %1916 = vst.msk [vmem:[#allocation3 + $0x101] sm:$0x1] %vm254_vm2, %v4252_v0 }
  0x5c   : > { %1917 = vst.msk [vmem:[#allocation3 + $0x119] sm:$0x1] %vm254_vm2, %v4252_v0  ;;  %1918 = vst.msk [vmem:[#allocation3 + $0x131] sm:$0x1] %vm254_vm2, %v4252_v0 }
  0x5d   : > { %1919 = vst.msk [vmem:[#allocation3 + $0x149] sm:$0x1] %vm254_vm2, %v4252_v0  ;;  %1920 = vst.msk [vmem:[#allocation3 + $0x161] sm:$0x1] %vm254_vm2, %v4252_v0 }
  0x5e   : > { %1921 = vst.msk [vmem:[#allocation3 + $0x179] sm:$0x1] %vm254_vm2, %v4252_v0  ;;  %1922 = vst.msk [vmem:[#allocation3 + $0x191] sm:$0x1] %vm254_vm2, %v4252_v0  ;;  %v4118_v0 = vld [vmem:[%s5898_s1 + $0x58] sm:$0xff]  }
  0x5f   : > { %321 = vst.msk [vmem:[#allocation2 + $0x31] sm:$0xff] %vm244_vm0, %v289_v1  ;;  %322 = vst.msk [vmem:[#allocation2 + $0x39] sm:$0xff] %vm244_vm0, %v290_v2  ;;  %v4119_v2 = vld [vmem:[%s5898_s1 + $0x18] sm:$0xff]   ;;  %3728 = vmatprep.subr.bf16.mxu0 %v4118_v0 }
  0x60   : > { %319 = vst.msk [vmem:[#allocation2 + $0x19] sm:$0xff] %vm244_vm0, %v287_v3  ;;  %320 = vst.msk [vmem:[#allocation2 + $0x21] sm:$0xff] %vm244_vm0, %v288_v9  ;;  %v307_v3 = vld [vmem:[%s4399_s28 + $0xa0] sm:$0xff]  ;;  %3729 = vmatpush3.bf16.msra.mxu0 %v4119_v2 }
  0x61   : > { %323 = vst.msk [vmem:[#allocation2 + $0x49] sm:$0xff] %vm244_vm0, %v291_v10  ;;  %324 = vst.msk [vmem:[#allocation2 + $0x51] sm:$0xff] %vm244_vm0, %v292_v12  ;;  %v4121_v10 = vld [vmem:[%s5898_s1 + $0x20] sm:$0xff]   ;;  %3730 = vmatprep.subr.bf16.mxu0 %v4120_v6  ;;  %v4122_v12 = vld [vmem:[%s5898_s1 + $0x68] sm:$0xff]  }
  0x62   : > { %325 = vst.msk [vmem:[#allocation2 + $0x61] sm:$0xff] %vm244_vm0, %v293_v13  ;;  %326 = vst.msk [vmem:[#allocation2 + $0x69] sm:$0xff] %vm244_vm0, %v294_v14  ;;  %v4123_v14 = vld [vmem:[%s5898_s1 + $0x28] sm:$0xff]  }
  0x63   : > { %327 = vst.msk [vmem:[#allocation2 + $0x79] sm:$0xff] %vm244_vm0, %v295_v15  ;;  %328 = vst.msk [vmem:[#allocation2 + $0x81] sm:$0xff] %vm244_vm0, %v296_v16 }
  0x64   : > { %329 = vst.msk [vmem:[#allocation2 + $0x91] sm:$0xff] %vm244_vm0, %v297_v17  ;;  %330 = vst.msk [vmem:[#allocation2 + $0x99] sm:$0xff] %vm244_vm0, %v298_v18  ;;  %3731 = vmatpush3.bf16.msra.mxu0 %v4121_v10  ;;  %v4124_v18 = vld [vmem:[%s5898_s1 + $0x70] sm:$0xff]  }
  0x65   : > { %331 = vst.msk [vmem:[#allocation2 + $0xa9] sm:$0xff] %vm244_vm0, %v299_v19  ;;  %332 = vst.msk [vmem:[#allocation2 + $0xb1] sm:$0xff] %vm244_vm0, %v300_v20  ;;  %3732 = vmatprep.subr.bf16.mxu0 %v4122_v12  ;;  %v4125_v19 = vld [vmem:[%s5898_s1 + $0x30] sm:$0xff]   ;;  %v4127_v20 = vld [vmem:[%s5898_s1 + $0x80] sm:$0xff]  }
  0x66   : > { %333 = vst.msk [vmem:[#allocation2 + $0xc1] sm:$0xff] %vm244_vm0, %v301_v21  ;;  %334 = vst.msk [vmem:[#allocation2 + $0xc9] sm:$0xff] %vm244_vm0, %v302_v22  ;;  %v640_v25 = vld [vmem:[#allocation2 + $0x30] sm:$0xff]  ;;  %v641_v26 = vld [vmem:[#allocation2 + $0x38] sm:$0xff]  ;;  %3982 = vmatprep.subr.bf16.mxu1 %v4127_v20 }
  0x67   : > { %335 = vst.msk [vmem:[#allocation2 + $0xd9] sm:$0xff] %vm244_vm0, %v303_v23  ;;  %v495_v27 = vld [vmem:[#allocation2 + $0x18] sm:$0xff]  ;;  %336 = vst.msk [vmem:[#allocation2 + $0xe1] sm:$0xff] %vm244_vm0, %v304_v24  ;;  %v4591_v28 = vpack.c.bf16 %v641_v26, %v640_v25  ;;  %v592_v32 = vld [vmem:[#allocation2 + $0x22] sm:$0xff]  ;;  %3983 = vmatpush3.bf16.msra.mxu1 %v4127_v20 }
  0x68   : > { %v688_v29 = vld [vmem:[#allocation2 + $0x31] sm:$0xff]  ;;  %v689_v30 = vld [vmem:[#allocation2 + $0x39] sm:$0xff]  ;;  %v402_v39 = vld [vmem:[#allocation2 + $0x21] sm:$0xff]  ;;  %337 = vst.msk [vmem:[#allocation2 + $0xf1] sm:$0xff] %vm244_vm0, %v305_v58  ;;  %3733 = vmatpush3.bf16.msra.mxu0 %v4123_v14 }
  0x69   : > { %v591_v31 = vld [vmem:[#allocation2 + $0x1a] sm:$0xff]  ;;  %992 = vrot.lane.b32.xlu1 %v4591_v28, %s4253_s29  ;;  %v593_v36 = vld [vmem:[#allocation2 + $0x32] sm:$0xff]  ;;  %v4598_v41 = vpack.c.bf16 %v689_v30, %v688_v29  ;;  %v642_v43 = vld [vmem:[#allocation2 + $0x48] sm:$0xff]  ;;  %338 = vst.msk [vmem:[#allocation2 + $0xf9] sm:$0xff] %vm244_vm0, %v306_v59  ;;  %3734 = vmatprep.subr.bf16.mxu0 %v4124_v18 }
  0x6a   : > { %v496_v33 = vld [vmem:[#allocation2 + $0x20] sm:$0xff]  ;;  %v623_v34 = vpack.c.bf16 %v592_v32, %v591_v31  ;;  %v643_v44 = vld [vmem:[#allocation2 + $0x50] sm:$0xff]  ;;  %v645_v54 = vld [vmem:[#allocation2 + $0x68] sm:$0xff]  ;;  %339 = vst.msk [vmem:[#allocation2 + $0x109] sm:$0xff] %vm244_vm0, %v307_v3 }
  0x6b   : > { %v4595_v35 = vpack.c.bf16 %v496_v33, %v495_v27  ;;  %v594_v37 = vld [vmem:[#allocation2 + $0x3a] sm:$0xff]  ;;  %v4610_v45 = vpack.c.bf16 %v643_v44, %v642_v43  ;;  %v690_v46 = vld [vmem:[#allocation2 + $0x49] sm:$0xff]  ;;  %v691_v47 = vld [vmem:[#allocation2 + $0x51] sm:$0xff]  ;;  %340 = vst.msk [vmem:[#allocation2 + $0x111] sm:$0xff] %vm244_vm0, %v308_v4 }
  0x6c   : > { %v401_v38 = vld [vmem:[#allocation2 + $0x19] sm:$0xff]  ;;  %v624_v40 = vpack.c.bf16 %v594_v37, %v593_v36  ;;  %944 = vrot.lane.b32.xlu0 %v623_v34, %s4254_s12  ;;  %v4615_v48 = vpack.c.bf16 %v691_v47, %v690_v46  ;;  %v595_v49 = vld [vmem:[#allocation2 + $0x4a] sm:$0xff]  ;;  %v692_v61 = vld [vmem:[#allocation2 + $0x61] sm:$0xff]  ;;  %3735 = vmatpush3.bf16.msra.mxu0 %v4125_v19 }
  0x6d   : > { %896 = vrot.lane.b32.xlu1 %v4595_v35, %s4255_s14  ;;  %v4603_v42 = vpack.c.bf16 %v402_v39, %v401_v38  ;;  %v596_v51 = vld [vmem:[#allocation2 + $0x52] sm:$0xff]  ;;  %v644_v53 = vld [vmem:[#allocation2 + $0x60] sm:$0xff]  ;;  %v693_v1 = vld [vmem:[#allocation2 + $0x69] sm:$0xff] }
  0x6e   : > { %3986 = vmatprep.mubr.msk.bf16.mxu1 %vm244_vm0, %v624_v40  ;;  %v4630_v56 = vpack.c.bf16 %v596_v51, %v595_v49  ;;  %v4649_v63 = vpack.c.bf16 %v645_v54, %v644_v53  ;;  %v4662_v5 = vpack.c.bf16 %v693_v1, %v692_v61  ;;  %v597_v7 = vld [vmem:[#allocation2 + $0x62] sm:$0xff]  ;;  %v598_v8 = vld [vmem:[#allocation2 + $0x6a] sm:$0xff]  ;;  %v646_v9 = vld [vmem:[#allocation2 + $0x78] sm:$0xff] }
  0x6f   : > { %v4676_v11 = vpack.c.bf16 %v598_v8, %v597_v7  ;;  %v647_v13 = vld [vmem:[#allocation2 + $0x80] sm:$0xff]  ;;  %v4126_v23 = vld [vmem:[%s5898_s1 + $0x78] sm:$0xff]   ;;  %v309_v24 = vld [vmem:[%s4399_s28 + $0xb0] sm:$0xff] }
  0x70   : > { %1040 = vrot.lane.b32.xlu0 %v4598_v41, %s4255_s14  ;;  %v4688_v15 = vpack.c.bf16 %v647_v13, %v646_v9  ;;  %v694_v16 = vld [vmem:[#allocation2 + $0x79] sm:$0xff]  ;;  %v695_v17 = vld [vmem:[#allocation2 + $0x81] sm:$0xff]  ;;  %341 = vst.msk [vmem:[#allocation2 + $0x121] sm:$0xff] %vm244_vm0, %v309_v24  ;;  %v313_v32 = vld [vmem:[%s4399_s28 + $0xd0] sm:$0xff]  ;;  %3736 = vmatprep.subr.bf16.mxu0 %v4126_v23 }
  0x71   : > { %802 = vrot.lane.b32.xlu1 %v4603_v42, %s4254_s12  ;;  %v599_v21 = vld [vmem:[#allocation2 + $0x7a] sm:$0xff]  ;;  %v600_v22 = vld [vmem:[#allocation2 + $0x82] sm:$0xff]  ;;  %v4708_v26 = vpack.c.bf16 %v695_v17, %v694_v16  ;;  %345 = vst.msk [vmem:[#allocation2 + $0x151] sm:$0xff] %vm244_vm0, %v313_v32  ;;  %v648_v37 = vld [vmem:[#allocation2 + $0x90] sm:$0xff] }
  0x72   : > { %v310_v25 = vld [vmem:[%s4399_s28 + $0xb8] sm:$0xff]  ;;  %v4129_v27 = vld [vmem:[%s5898_s1 + $0x88] sm:$0xff]   ;;  %v311_v30 = vld [vmem:[%s4399_s28 + $0xc0] sm:$0xff]  ;;  %v627_v43 = vpack.c.bf16 %v600_v22, %v599_v21 }
  0x73   : > { %342 = vst.msk [vmem:[#allocation2 + $0x129] sm:$0xff] %vm244_vm0, %v310_v25  ;;  %v4128_v29 = vld [vmem:[%s5898_s1 + $0x38] sm:$0xff]   ;;  %v312_v31 = vld [vmem:[%s4399_s28 + $0xc8] sm:$0xff]  ;;  %343 = vst.msk [vmem:[#allocation2 + $0x139] sm:$0xff] %vm244_vm0, %v311_v30  ;;  %3984 = vmatprep.subr.bf16.mxu1 %v4129_v27 }
  0x74   : > { %946 = vrot.lane.b32.xlu0 %v624_v40, %s4254_s12  ;;  %344 = vst.msk [vmem:[#allocation2 + $0x141] sm:$0xff] %vm244_vm0, %v312_v31  ;;  %v314_v33 = vld [vmem:[%s4399_s28 + $0xd8] sm:$0xff]  ;;  %v316_v36 = vld [vmem:[%s4399_s28 + $0xe8] sm:$0xff]  ;;  %v317_v39 = vld [vmem:[%s4399_s28 + $0xf0] sm:$0xff]  ;;  %3985 = vmatpush3.bf16.msra.mxu1 %v4129_v27 }
  0x75   : > { %850 = vrot.lane.b32.xlu1 %v623_v34, %s4253_s29  ;;  %v315_v34 = vld [vmem:[%s4399_s28 + $0xe0] sm:$0xff]  ;;  %v649_v38 = vld [vmem:[#allocation2 + $0x98] sm:$0xff]  ;;  %346 = vst.msk [vmem:[#allocation2 + $0x159] sm:$0xff] %vm244_vm0, %v314_v33  ;;  %348 = vst.msk [vmem:[#allocation2 + $0x171] sm:$0xff] %vm244_vm0, %v316_v36  ;;  %3737 = vmatpush3.bf16.msra.mxu0 %v4128_v29 }
  0x76   : > { %347 = vst.msk [vmem:[#allocation2 + $0x169] sm:$0xff] %vm244_vm0, %v315_v34  ;;  %349 = vst.msk [vmem:[#allocation2 + $0x181] sm:$0xff] %vm244_vm0, %v317_v39  ;;  %v676_v44 = vpack.c.bf16 %v649_v38, %v648_v37  ;;  %v696_v46 = vld [vmem:[#allocation2 + $0x91] sm:$0xff]  ;;  %v697_v47 = vld [vmem:[#allocation2 + $0x99] sm:$0xff] }
  0x77   : > { %3987 = vmatmul.mubr.msk.bf16.vlgmr.msra.gmra.mrb[0].mxu1 %vm244_vm0, %v4630_v56  ;;  %v4748_v49 = vpack.c.bf16 %v697_v47, %v696_v46  ;;  %v601_v50 = vld [vmem:[#allocation2 + $0x92] sm:$0xff]  ;;  %v602_v51 = vld [vmem:[#allocation2 + $0x9a] sm:$0xff]  ;;  %v650_v53 = vld [vmem:[#allocation2 + $0xa8] sm:$0xff] }
  0x78   : > { %994 = vrot.lane.b32.xlu0 %v4610_v45, %s4253_s29  ;;  %3990 = vmatprep.mubr.msk.bf16.mxu1 %vm244_vm0, %v4676_v11  ;;  %v628_v52 = vpack.c.bf16 %v602_v51, %v601_v50  ;;  %v651_v54 = vld [vmem:[#allocation2 + $0xb0] sm:$0xff]  ;;  %v605_v59 = vld [vmem:[#allocation2 + $0xc2] sm:$0xff]  ;;  %v607_v3 = vld [vmem:[#allocation2 + $0xda] sm:$0xff] }
  0x79   : > { %898 = vrot.lane.b32.xlu1 %v4591_v28, %s4255_s14  ;;  %v603_v55 = vld [vmem:[#allocation2 + $0xaa] sm:$0xff]  ;;  %v677_v61 = vpack.c.bf16 %v651_v54, %v650_v53  ;;  %v652_v2 = vld [vmem:[#allocation2 + $0xc0] sm:$0xff]  ;;  %v609_v7 = vld [vmem:[#allocation2 + $0xf2] sm:$0xff] }
  0x7a   : > { %v698_v57 = vld [vmem:[#allocation2 + $0xa9] sm:$0xff]  ;;  %v699_v58 = vld [vmem:[#allocation2 + $0xb1] sm:$0xff]  ;;  %v610_v8 = vld [vmem:[#allocation2 + $0xfa] sm:$0xff] }
  0x7b   : > { %v606_v60 = vld [vmem:[#allocation2 + $0xca] sm:$0xff]  ;;  %v4761_v0 = vpack.c.bf16 %v699_v58, %v698_v57  ;;  %v608_v4 = vld [vmem:[#allocation2 + $0xe2] sm:$0xff]  ;;  %v612_v17 = vld [vmem:[#allocation2 + $0x112] sm:$0xff] }
  0x7c   : > { %1042 = vrot.lane.b32.xlu0 %v4615_v48, %s4255_s14  ;;  %v4763_v1 = vpack.c.bf16 %v606_v60, %v605_v59  ;;  %v653_v6 = vld [vmem:[#allocation2 + $0xc8] sm:$0xff]  ;;  %v4773_v9 = vpack.c.bf16 %v608_v4, %v607_v3  ;;  %v654_v22 = vld [vmem:[#allocation2 + $0xd8] sm:$0xff]  ;;  %v655_v23 = vld [vmem:[#allocation2 + $0xe0] sm:$0xff] }
  0x7d   : > { %804 = vrot.lane.b32.xlu1 %v4598_v41, %s4254_s12  ;;  %v678_v10 = vpack.c.bf16 %v653_v6, %v652_v2  ;;  %v700_v12 = vld [vmem:[#allocation2 + $0xc1] sm:$0xff]  ;;  %v701_v13 = vld [vmem:[#allocation2 + $0xc9] sm:$0xff]  ;;  %v679_v24 = vpack.c.bf16 %v655_v23, %v654_v22  ;;  %v702_v25 = vld [vmem:[#allocation2 + $0xd9] sm:$0xff] }
  0x7e   : > { %v4784_v14 = vpack.c.bf16 %v701_v13, %v700_v12  ;;  %v611_v16 = vld [vmem:[#allocation2 + $0x10a] sm:$0xff]  ;;  %v613_v18 = vld [vmem:[#allocation2 + $0x122] sm:$0xff]  ;;  %v615_v27 = vld [vmem:[#allocation2 + $0x13a] sm:$0xff] }
  0x7f   : > { %3991 = vmatmul.mubr.msk.bf16.gmra.mrb[4].mxu1 %vm244_vm0, %v627_v43  ;;  %v614_v19 = vld [vmem:[#allocation2 + $0x12a] sm:$0xff]  ;;  %v4787_v20 = vpack.c.bf16 %v612_v17, %v611_v16  ;;  %v616_v29 = vld [vmem:[#allocation2 + $0x142] sm:$0xff]  ;;  %v617_v31 = vld [vmem:[#allocation2 + $0x152] sm:$0xff] }
  0x80   : > { %948 = vrot.lane.b32.xlu0 %v4630_v56, %s4254_s12  ;;  %3994 = vmatprep.mubr.msk.bf16.mxu1 %vm244_vm0, %v628_v52  ;;  %v4791_v21 = vpack.c.bf16 %v614_v19, %v613_v18  ;;  %v703_v30 = vld [vmem:[#allocation2 + $0xe1] sm:$0xff]  ;;  %v4802_v33 = vpack.c.bf16 %v616_v29, %v615_v27  ;;  %v656_v37 = vld [vmem:[#allocation2 + $0xf0] sm:$0xff]  ;;  %v662_v27 = vld [vmem:[#allocation2 + $0x138] sm:$0xff] }
  0x81   : > { %852 = vrot.lane.b32.xlu1 %v624_v40, %s4253_s29  ;;  %v318_v40 = vld [vmem:[%s4399_s28 + $0xf8] sm:$0xff]  ;;  %v4805_v34 = vpack.c.bf16 %v703_v30, %v702_v25  ;;  %v619_v38 = vld [vmem:[#allocation2 + $0x16a] sm:$0xff]  ;;  %v660_v4 = vld [vmem:[#allocation2 + $0x120] sm:$0xff] }
  0x82   : > { %350 = vst.msk [vmem:[#allocation2 + $0x189] sm:$0xff] %vm244_vm0, %v318_v40  ;;  %v618_v32 = vld [vmem:[#allocation2 + $0x15a] sm:$0xff]  ;;  %v620_v39 = vld [vmem:[#allocation2 + $0x172] sm:$0xff]  ;;  %v658_v54 = vld [vmem:[#allocation2 + $0x108] sm:$0xff] }
  0x83   : > { %v4807_v36 = vpack.c.bf16 %v618_v32, %v617_v31  ;;  %v657_v40 = vld [vmem:[#allocation2 + $0xf8] sm:$0xff]  ;;  %v4818_v46 = vpack.c.bf16 %v620_v39, %v619_v38  ;;  %v706_v57 = vld [vmem:[#allocation2 + $0x109] sm:$0xff]  ;;  %v708_v16 = vld [vmem:[#allocation2 + $0x121] sm:$0xff] }
  0x84   : > { %996 = vrot.lane.b32.xlu0 %v4649_v63, %s4253_s29  ;;  %v4822_v47 = vpack.c.bf16 %v657_v40, %v656_v37  ;;  %v704_v51 = vld [vmem:[#allocation2 + $0xf1] sm:$0xff]  ;;  %v352_v60 = vld [vmem:[#allocation2 + $0x8] sm:$0xff]  ;;  %v663_v29 = vld [vmem:[#allocation2 + $0x140] sm:$0xff] }
  0x85   : > { %900 = vrot.lane.b32.xlu1 %v4610_v45, %s4255_s14  ;;  %v707_v58 = vld [vmem:[#allocation2 + $0x111] sm:$0xff]  ;;  %v661_v6 = vld [vmem:[#allocation2 + $0x128] sm:$0xff]  ;;  %v4884_v37 = vpack.c.bf16 %v663_v29, %v662_v27  ;;  %v710_v40 = vld [vmem:[#allocation2 + $0x139] sm:$0xff] }
  0x86   : > { %v4862_v12 = vpack.c.bf16 %v661_v6, %v660_v4  ;;  %v709_v17 = vld [vmem:[#allocation2 + $0x129] sm:$0xff]  ;;  %v712_v4 = vld [vmem:[#allocation2 + $0x151] sm:$0xff]  ;;  %v713_v6 = vld [vmem:[#allocation2 + $0x159] sm:$0xff] }
  0x87   : > { %v715_v27 = vld [vmem:[#allocation2 + $0x171] sm:$0xff] }
  0x88   : > { %1044 = vrot.lane.b32.xlu0 %v4662_v5, %s4255_s14 }
  0x89   : > { %806 = vrot.lane.b32.xlu1 %v4615_v48, %s4254_s12 }
  0x8c   : > { %950 = vrot.lane.b32.xlu0 %v4676_v11, %s4254_s12 }
  0x8d   : > { %854 = vrot.lane.b32.xlu1 %v4630_v56, %s4253_s29  ;;  %v604_v56 = vld [vmem:[#allocation2 + $0xb2] sm:$0xff] }
  0x8e   : > { %v629_v62 = vpack.c.bf16 %v604_v56, %v603_v55  ;;  %v659_v55 = vld [vmem:[#allocation2 + $0x110] sm:$0xff] }
  0x8f   : > { %v4843_v56 = vpack.c.bf16 %v659_v55, %v658_v54 }
  0x90   : > { %998 = vrot.lane.b32.xlu0 %v4688_v15, %s4253_s29  ;;  %3995 = vmatmul.mubr.msk.bf16.gmra.mrb[8].mxu1 %vm244_vm0, %v629_v62 }
  0x91   : > { %902 = vrot.lane.b32.xlu1 %v4649_v63, %s4255_s14  ;;  %3998 = vmatprep.mubr.msk.bf16.mxu1 %vm244_vm0, %v4763_v1 }
  0x94   : > { %1046 = vrot.lane.b32.xlu0 %v4708_v26, %s4255_s14 }
  0x95   : > { %808 = vrot.lane.b32.xlu1 %v4662_v5, %s4254_s12 }
  0x98   : > { %952 = vrot.lane.b32.xlu0 %v627_v43, %s4254_s12  ;;  %3999 = vmatmul.mubr.msk.bf16.gmra.mrb[12].mxu1 %vm244_vm0, %v4773_v9 }
  0x99   : > { %856 = vrot.lane.b32.xlu1 %v4676_v11, %s4253_s29  ;;  %v4776_v11 = vpack.c.bf16 %v610_v8, %v609_v7 }
  0x9b   : > { %4002 = vmatprep.mubr.msk.bf16.mxu1 %vm244_vm0, %v4776_v11 }
  0x9c   : > { %1000 = vrot.lane.b32.xlu0 %v676_v44, %s4253_s29 }
  0x9d   : > { %904 = vrot.lane.b32.xlu1 %v4688_v15, %s4255_s14 }
  0xa0   : > { %1048 = vrot.lane.b32.xlu0 %v4748_v49, %s4255_s14  ;;  %4003 = vmatmul.mubr.msk.bf16.gmra.mrb[16].mxu1 %vm244_vm0, %v4787_v20 }
  0xa1   : > { %810 = vrot.lane.b32.xlu1 %v4708_v26, %s4254_s12  ;;  %4006 = vmatprep.mubr.msk.bf16.mxu1 %vm244_vm0, %v4791_v21 }
  0xa4   : > { %954 = vrot.lane.b32.xlu0 %v628_v52, %s4254_s12 }
  0xa5   : > { %858 = vrot.lane.b32.xlu1 %v627_v43, %s4253_s29  ;;  %v621_v43 = vld [vmem:[#allocation2 + $0x182] sm:$0xff] }
  0xa8   : > { %1002 = vrot.lane.b32.xlu0 %v677_v61, %s4253_s29  ;;  %4007 = vmatmul.mubr.msk.bf16.gmra.mrb[20].mxu1 %vm244_vm0, %v4802_v33 }
  0xa9   : > { %906 = vrot.lane.b32.xlu1 %v676_v44, %s4255_s14  ;;  %4010 = vmatprep.mubr.msk.bf16.mxu1 %vm244_vm0, %v4807_v36  ;;  %v622_v44 = vld [vmem:[#allocation2 + $0x18a] sm:$0xff] }
  0xaa   : > { %v4824_v50 = vpack.c.bf16 %v622_v44, %v621_v43  ;;  %v711_v43 = vld [vmem:[#allocation2 + $0x141] sm:$0xff] }
  0xac   : > { %1050 = vrot.lane.b32.xlu0 %v4761_v0, %s4255_s14 }
  0xad   : > { %812 = vrot.lane.b32.xlu1 %v4748_v49, %s4254_s12 }
  0xb0   : > { %956 = vrot.lane.b32.xlu0 %v629_v62, %s4254_s12  ;;  %4011 = vmatmul.mubr.msk.bf16.gmra.mrb[24].mxu1 %vm244_vm0, %v4818_v46 }
  0xb1   : > { %860 = vrot.lane.b32.xlu1 %v628_v52, %s4253_s29  ;;  %v705_v52 = vld [vmem:[#allocation2 + $0xf9] sm:$0xff]  ;;  %4014 = vmatprep.mubr.msk.bf16.mxu1 %vm244_vm0, %v4824_v50 }
  0xb2   : > { %v4834_v53 = vpack.c.bf16 %v705_v52, %v704_v51 }
  0xb4   : > { %1004 = vrot.lane.b32.xlu0 %v678_v10, %s4253_s29 }
  0xb5   : > { %908 = vrot.lane.b32.xlu1 %v677_v61, %s4255_s14  ;;  %v351_v61 = vld [vmem:[#allocation2] sm:$0xff] }
  0xb6   : > { %v849_v59 = vpop.permute.xlu1 %848  ;;  %v383_v2 = vpack.c.bf16 %v352_v60, %v351_v61 }
  0xb8   : > { %1052 = vrot.lane.b32.xlu0 %v4784_v14, %s4255_s14 }
  0xb9   : > { %814 = vrot.lane.b32.xlu1 %v4761_v0, %s4254_s12 }
  0xbc   : > { %958 = vrot.lane.b32.xlu0 %v4763_v1, %s4254_s12 }
  0xbd   : > { %862 = vrot.lane.b32.xlu1 %v629_v62, %s4253_s29  ;;  %v801_v62 = vpop.permute.xlu0 %800 }
  0xbe   : > { %v1074_v7 = vsel %vm244_vm0, %v383_v2, %v801_v62 }
  0xbf   : > { %v1122_v13 = vsel %vm1120_vm3, %v1074_v7, %v849_v59 }
  0xc0   : > { %1006 = vrot.lane.b32.xlu0 %v679_v24, %s4253_s29 }
  0xc1   : > { %910 = vrot.lane.b32.xlu1 %v678_v10, %s4255_s14 }
  0xc4   : > { %1054 = vrot.lane.b32.xlu0 %v4805_v34, %s4255_s14 }
  0xc5   : > { %816 = vrot.lane.b32.xlu1 %v4784_v14, %s4254_s12 }
  0xc8   : > { %960 = vrot.lane.b32.xlu0 %v4773_v9, %s4254_s12 }
  0xc9   : > { %864 = vrot.lane.b32.xlu1 %v4763_v1, %s4253_s29  ;;  %v4849_v1 = vpack.c.bf16 %v707_v58, %v706_v57  ;;  %v664_v57 = vld [vmem:[#allocation2 + $0x150] sm:$0xff]  ;;  %v665_v58 = vld [vmem:[#allocation2 + $0x158] sm:$0xff] }
  0xca   : > { %v4908_v62 = vpack.c.bf16 %v665_v58, %v664_v57  ;;  %v716_v58 = vld [vmem:[#allocation2 + $0x181] sm:$0xff] }
  0xcc   : > { %1008 = vrot.lane.b32.xlu0 %v4822_v47, %s4253_s29 }
  0xcd   : > { %912 = vrot.lane.b32.xlu1 %v679_v24, %s4255_s14  ;;  %v4872_v24 = vpack.c.bf16 %v709_v17, %v708_v16  ;;  %v666_v16 = vld [vmem:[#allocation2 + $0x168] sm:$0xff]  ;;  %v667_v17 = vld [vmem:[#allocation2 + $0x170] sm:$0xff] }
  0xd0   : > { %1056 = vrot.lane.b32.xlu0 %v4834_v53, %s4255_s14 }
  0xd1   : > { %818 = vrot.lane.b32.xlu1 %v4805_v34, %s4254_s12 }
  0xd4   : > { %962 = vrot.lane.b32.xlu0 %v4776_v11, %s4254_s12 }
  0xd5   : > { %866 = vrot.lane.b32.xlu1 %v4773_v9, %s4253_s29 }
  0xd8   : > { %1010 = vrot.lane.b32.xlu0 %v4843_v56, %s4253_s29 }
  0xd9   : > { %914 = vrot.lane.b32.xlu1 %v4822_v47, %s4255_s14 }
  0xdb   : > { %v993_v3 = vpop.permute.xlu1 %992 }
  0xdc   : > { %1058 = vrot.lane.b32.xlu0 %v4849_v1, %s4255_s14 }
  0xdd   : > { %820 = vrot.lane.b32.xlu1 %v4834_v53, %s4254_s12 }
  0xde   : > { %v945_v8 = vpop.permute.xlu0 %944 }
  0xdf   : > { %v1204_v9 = vsel %vm244_vm0, %v4603_v42, %v945_v8  ;;  %v897_v10 = vpop.permute.xlu1 %896 }
  0xe0   : > { %964 = vrot.lane.b32.xlu0 %v4787_v20, %s4254_s12  ;;  %v1251_v19 = vsel %vm1120_vm3, %v1204_v9, %v993_v3  ;;  %v1155_v22 = vsel %vm1153_vm4, %v1122_v13, %v897_v10 }
  0xe1   : > { %868 = vrot.lane.b32.xlu1 %v4776_v11, %s4253_s29 }
  0xe2   : > { %v1041_v18 = vpop.permute.xlu0 %1040 }
  0xe3   : > { %v1283_v42 = vsel %vm1153_vm4, %v1251_v19, %v1041_v18  ;;  %v803_v23 = vpop.permute.xlu1 %802 }
  0xe4   : > { %1012 = vrot.lane.b32.xlu0 %v4862_v12, %s4253_s29  ;;  %1561 = vmatprep.mubr.bf16.mxu0 %v1283_v42  ;;  %v1077_v31 = vsel %vm244_vm0, %v4595_v35, %v803_v23  ;;  %v4932_v42 = vpack.c.bf16 %v667_v17, %v666_v16  ;;  %v718_v16 = vld [vmem:[#allocation2 + $0x199] sm:$0xff]  ;;  %v719_v17 = vld [vmem:[#allocation2 + $0x1a1] sm:$0xff] }
  0xe5   : > { %1562 = vmatmul.mubr.bf16.vlgmr.msra.gmra.mrb[0].mxu0 %v1155_v22  ;;  %916 = vrot.lane.b32.xlu1 %v4843_v56, %s4255_s14 }
  0xe6   : > { %v947_v25 = vpop.permute.xlu0 %946 }
  0xe7   : > { %v851_v11 = vpop.permute.xlu1 %850  ;;  %v1207_v38 = vsel %vm244_vm0, %v4598_v41, %v947_v25  ;;  %v4896_v41 = vpack.c.bf16 %v711_v43, %v710_v40  ;;  %v767_v40 = vld [vmem:[#allocation2 + $0x1a2] sm:$0xff] }
  0xe8   : > { %1060 = vrot.lane.b32.xlu0 %v4872_v24, %s4255_s14  ;;  %v1124_v39 = vsel %vm1120_vm3, %v1077_v31, %v851_v11  ;;  %v714_v11 = vld [vmem:[#allocation2 + $0x169] sm:$0xff] }
  0xe9   : > { %822 = vrot.lane.b32.xlu1 %v4849_v1, %s4254_s12 }
  0xea   : > { %v995_v30 = vpop.permute.xlu0 %994 }
  0xeb   : > { %v899_v32 = vpop.permute.xlu1 %898  ;;  %v1253_v44 = vsel %vm1120_vm3, %v1207_v38, %v995_v30 }
  0xec   : > { %966 = vrot.lane.b32.xlu0 %v4791_v21, %s4254_s12  ;;  %v1158_v35 = vsel %vm1153_vm4, %v1124_v39, %v899_v32  ;;  %v766_v39 = vld [vmem:[#allocation2 + $0x19a] sm:$0xff] }
  0xed   : > { %870 = vrot.lane.b32.xlu1 %v4787_v20, %s4253_s29  ;;  %v783_v43 = vpack.c.bf16 %v767_v40, %v766_v39 }
  0xee   : > { %v1043_v51 = vpop.permute.xlu0 %1042 }
  0xef   : > { %v1286_v52 = vsel %vm1153_vm4, %v1253_v44, %v1043_v51  ;;  %v805_v54 = vpop.permute.xlu1 %804  ;;  %v668_v44 = vld [vmem:[#allocation2 + $0x180] sm:$0xff]  ;;  %v669_v51 = vld [vmem:[#allocation2 + $0x188] sm:$0xff]  ;;  %4015 = vmatmul.mubr.msk.bf16.gmra.mrb[28].mxu1 %vm244_vm0, %v783_v43 }
  0xf0   : > { %1014 = vrot.lane.b32.xlu0 %v4884_v37, %s4253_s29  ;;  %1569 = vmatprep.mubr.bf16.mxu0 %v1286_v52  ;;  %v1080_v60 = vsel %vm244_vm0, %v4591_v28, %v805_v54 }
  0xf1   : > { %1570 = vmatmul.mubr.bf16.gmra.mrb[4].mxu0 %v1158_v35  ;;  %918 = vrot.lane.b32.xlu1 %v4862_v12, %s4255_s14 }
  0xf2   : > { %v949_v55 = vpop.permute.xlu0 %948 }
  0xf3   : > { %v853_v20 = vpop.permute.xlu1 %852  ;;  %v1210_v2 = vsel %vm244_vm0, %v4615_v48, %v949_v55  ;;  %v4920_v48 = vpack.c.bf16 %v713_v6, %v712_v4  ;;  %v686_v55 = vpack.c.bf16 %v669_v51, %v668_v44  ;;  %v365_v44 = vld [vmem:[#allocation2 + $0xa8] sm:$0xff]  ;;  %v366_v51 = vld [vmem:[#allocation2 + $0xb0] sm:$0xff] }
  0xf4   : > { %1062 = vrot.lane.b32.xlu0 %v4896_v41, %s4255_s14  ;;  %v1126_v3 = vsel %vm1120_vm3, %v1080_v60, %v853_v20 }
  0xf5   : > { %824 = vrot.lane.b32.xlu1 %v4872_v24, %s4254_s12 }
  0xf6   : > { %v997_v59 = vpop.permute.xlu0 %996 }
  0xf7   : > { %v901_v61 = vpop.permute.xlu1 %900  ;;  %v1255_v7 = vsel %vm1120_vm3, %v1210_v2, %v997_v59  ;;  %v717_v59 = vld [vmem:[#allocation2 + $0x189] sm:$0xff] }
  0xf8   : > { %968 = vrot.lane.b32.xlu0 %v4802_v33, %s4254_s12  ;;  %v1161_v28 = vsel %vm1153_vm4, %v1126_v3, %v901_v61  ;;  %v4966_v4 = vpack.c.bf16 %v717_v59, %v716_v58 }
  0xf9   : > { %872 = vrot.lane.b32.xlu1 %v4791_v21, %s4253_s29 }
  0xfa   : > { %v1045_v8 = vpop.permute.xlu0 %1044 }
  0xfb   : > { %v1289_v9 = vsel %vm1153_vm4, %v1255_v7, %v1045_v8  ;;  %v807_v10 = vpop.permute.xlu1 %806  ;;  %v671_v7 = vld [vmem:[#allocation2 + $0x1a0] sm:$0xff] }
  0xfc   : > { %1016 = vrot.lane.b32.xlu0 %v4908_v62, %s4253_s29  ;;  %1577 = vmatprep.mubr.bf16.mxu0 %v1289_v9  ;;  %v1083_v19 = vsel %vm244_vm0, %v4610_v45, %v807_v10 }
  0xfd   : > { %1578 = vmatmul.mubr.bf16.gmra.mrb[8].mxu0 %v1161_v28  ;;  %920 = vrot.lane.b32.xlu1 %v4884_v37, %s4255_s14 }
  0xfe   : > { %v951_v13 = vpop.permute.xlu0 %950 }
  0xff   : > { %v855_v21 = vpop.permute.xlu1 %854  ;;  %v1213_v23 = vsel %vm244_vm0, %v4662_v5, %v951_v13  ;;  %v4944_v5 = vpack.c.bf16 %v715_v27, %v714_v11 }
 0x100   : > { %1064 = vrot.lane.b32.xlu0 %v4920_v48, %s4255_s14  ;;  %v1128_v25 = vsel %vm1120_vm3, %v1083_v19, %v855_v21 }
 0x101   : > { %826 = vrot.lane.b32.xlu1 %v4896_v41, %s4254_s12 }
 0x102   : > { %v999_v18 = vpop.permute.xlu0 %998 }
 0x103   : > { %v903_v22 = vpop.permute.xlu1 %902  ;;  %v1257_v29 = vsel %vm1120_vm3, %v1213_v23, %v999_v18  ;;  %v735_v23 = vpack.c.bf16 %v719_v17, %v718_v16 }
 0x104   : > { %970 = vrot.lane.b32.xlu0 %v4807_v36, %s4254_s12  ;;  %v1164_v45 = vsel %vm1153_vm4, %v1128_v25, %v903_v22  ;;  %v364_v25 = vld [vmem:[#allocation2 + $0x98] sm:$0xff] }
 0x105   : > { %874 = vrot.lane.b32.xlu1 %v4802_v33, %s4253_s29 }
 0x106   : > { %v1047_v30 = vpop.permute.xlu0 %1046 }
 0x107   : > { %v1292_v31 = vsel %vm1153_vm4, %v1257_v29, %v1047_v30  ;;  %v809_v32 = vpop.permute.xlu1 %808 }
 0x108   : > { %1018 = vrot.lane.b32.xlu0 %v4932_v42, %s4253_s29  ;;  %1585 = vmatprep.mubr.bf16.mxu0 %v1292_v31  ;;  %v1086_v52 = vsel %vm244_vm0, %v4649_v63, %v809_v32 }
 0x109   : > { %1586 = vmatmul.mubr.bf16.gmra.mrb[12].mxu0 %v1164_v45  ;;  %922 = vrot.lane.b32.xlu1 %v4908_v62, %s4255_s14 }
 0x10a   : > { %v953_v38 = vpop.permute.xlu0 %952 }
 0x10b   : > { %v857_v33 = vpop.permute.xlu1 %856  ;;  %v1216_v20 = vsel %vm244_vm0, %v4708_v26, %v953_v38 }
 0x10c   : > { %1066 = vrot.lane.b32.xlu0 %v4944_v5, %s4255_s14  ;;  %v1130_v57 = vsel %vm1120_vm3, %v1086_v52, %v857_v33  ;;  %v390_v52 = vpack.c.bf16 %v366_v51, %v365_v44 }
 0x10d   : > { %828 = vrot.lane.b32.xlu1 %v4920_v48, %s4254_s12 }
 0x10e   : > { %v1001_v35 = vpop.permute.xlu0 %1000 }
 0x10f   : > { %v905_v54 = vpop.permute.xlu1 %904  ;;  %v1259_v60 = vsel %vm1120_vm3, %v1216_v20, %v1001_v35 }
 0x110   : > { %972 = vrot.lane.b32.xlu0 %v4818_v46, %s4254_s12  ;;  %v1167_v63 = vsel %vm1153_vm4, %v1130_v57, %v905_v54 }
 0x111   : > { %876 = vrot.lane.b32.xlu1 %v4807_v36, %s4253_s29  ;;  %v670_v36 = vld [vmem:[#allocation2 + $0x198] sm:$0xff] }
 0x112   : > { %v1049_v61 = vpop.permute.xlu0 %1048  ;;  %v687_v10 = vpack.c.bf16 %v671_v7, %v670_v36 }
 0x113   : > { %v1295_v2 = vsel %vm1153_vm4, %v1259_v60, %v1049_v61  ;;  %v811_v3 = vpop.permute.xlu1 %810 }
 0x114   : > { %1020 = vrot.lane.b32.xlu0 %v686_v55, %s4253_s29  ;;  %1593 = vmatprep.mubr.bf16.mxu0 %v1295_v2  ;;  %v1089_v28 = vsel %vm244_vm0, %v4688_v15, %v811_v3  ;;  %v367_v3 = vld [vmem:[#allocation2 + $0xc0] sm:$0xff] }
 0x115   : > { %1594 = vmatmul.mubr.bf16.gmra.mrb[16].mxu0 %v1167_v63  ;;  %924 = vrot.lane.b32.xlu1 %v4932_v42, %s4255_s14 }
 0x116   : > { %v955_v26 = vpop.permute.xlu0 %954 }
 0x117   : > { %v859_v6 = vpop.permute.xlu1 %858  ;;  %v1219_v13 = vsel %vm244_vm0, %v4748_v49, %v955_v26  ;;  %v363_v49 = vld [vmem:[#allocation2 + $0x90] sm:$0xff]  ;;  %v368_v26 = vld [vmem:[#allocation2 + $0xc8] sm:$0xff] }
 0x118   : > { %1068 = vrot.lane.b32.xlu0 %v4966_v4, %s4255_s14  ;;  %v1132_v21 = vsel %vm1120_vm3, %v1089_v28, %v859_v6  ;;  %v389_v27 = vpack.c.bf16 %v364_v25, %v363_v49  ;;  %v391_v36 = vpack.c.bf16 %v368_v26, %v367_v3  ;;  %v2052_v25 = vld [vmem:[#allocation3 + $0xa] sm:$0xff]  ;;  %v4131_v3 = vld [vmem:[%s5900_s3 + $0x88] sm:$0xff]  }
 0x119   : > { %830 = vrot.lane.b32.xlu1 %v4944_v5, %s4254_s12 }
 0x11a   : > { %v1003_v8 = vpop.permute.xlu0 %1002 }
 0x11b   : > { %v907_v9 = vpop.permute.xlu1 %906  ;;  %v1261_v18 = vsel %vm1120_vm3, %v1219_v13, %v1003_v8 }
 0x11c   : > { %974 = vrot.lane.b32.xlu0 %v4824_v50, %s4254_s12  ;;  %v1170_v15 = vsel %vm1153_vm4, %v1132_v21, %v907_v9 }
 0x11d   : > { %878 = vrot.lane.b32.xlu1 %v4818_v46, %s4253_s29 }
 0x11e   : > { %v1051_v19 = vpop.permute.xlu0 %1050 }
 0x11f   : > { %v1298_v22 = vsel %vm1153_vm4, %v1261_v18, %v1051_v19  ;;  %v813_v50 = vpop.permute.xlu1 %812  ;;  %v2003_v18 = vld [vmem:[#allocation3 + $0x1] sm:$0xff]  ;;  %v2004_v19 = vld [vmem:[#allocation3 + $0x9] sm:$0xff] }
 0x120   : > { %1022 = vrot.lane.b32.xlu0 %v687_v10, %s4253_s29  ;;  %1601 = vmatprep.mubr.bf16.mxu0 %v1298_v22  ;;  %v1092_v30 = vsel %vm244_vm0, %v389_v27, %v813_v50  ;;  %v2035_v22 = vpack.c.bf16 %v2004_v19, %v2003_v18  ;;  %v369_v50 = vld [vmem:[#allocation2 + $0xd8] sm:$0xff] }
 0x121   : > { %1602 = vmatmul.mubr.bf16.gmra.mrb[20].mxu0 %v1170_v15  ;;  %926 = vrot.lane.b32.xlu1 %v686_v55, %s4255_s14 }
 0x122   : > { %v957_v11 = vpop.permute.xlu0 %956 }
 0x123   : > { %v861_v29 = vpop.permute.xlu1 %860  ;;  %v1222_v31 = vsel %vm244_vm0, %v4761_v0, %v957_v11  ;;  %v2274_v11 = vld [vmem:[#allocation3 + $0x198] sm:$0xff] }
 0x124   : > { %1070 = vrot.lane.b32.xlu0 %v735_v23, %s4255_s14  ;;  %v1134_v32 = vsel %vm1120_vm3, %v1092_v30, %v861_v29  ;;  %v370_v23 = vld [vmem:[#allocation2 + $0xe0] sm:$0xff]  ;;  %v2275_v30 = vld [vmem:[#allocation3 + $0x1a0] sm:$0xff] }
 0x125   : > { %2404 = vrot.lane.b32.xlu1 %v2035_v22, %s4254_s12  ;;  %v392_v27 = vpack.c.bf16 %v370_v23, %v369_v50 }
 0x126   : > { %v1005_v46 = vpop.permute.xlu0 %1004 }
 0x127   : > { %v909_v45 = vpop.permute.xlu1 %908  ;;  %v1263_v38 = vsel %vm1120_vm3, %v1222_v31, %v1005_v46 }
 0x128   : > { %v1173_v40 = vsel %vm1153_vm4, %v1134_v32, %v909_v45  ;;  %v2291_v45 = vpack.c.bf16 %v2275_v30, %v2274_v11 }
 0x12a   : > { %v1053_v39 = vpop.permute.xlu0 %1052  ;;  %2626 = vrot.lane.b32.xlu0 %v2291_v45, %s4253_s29 }
 0x12b   : > { %v1301_v33 = vsel %vm1153_vm4, %v1263_v38, %v1053_v39  ;;  %v815_v43 = vpop.permute.xlu1 %814 }
 0x12c   : > { %1609 = vmatprep.mubr.bf16.mxu0 %v1301_v33  ;;  %v1095_v0 = vsel %vm244_vm0, %v390_v52, %v815_v43 }
 0x12d   : > { %1610 = vmatmul.mubr.bf16.gmra.mrb[24].mxu0 %v1173_v40 }
 0x12e   : > { %v959_v35 = vpop.permute.xlu0 %958 }
 0x12f   : > { %v863_v54 = vpop.permute.xlu1 %862  ;;  %v1225_v57 = vsel %vm244_vm0, %v4784_v14, %v959_v35 }
 0x130   : > { %v1136_v58 = vsel %vm1120_vm3, %v1095_v0, %v863_v54 }
 0x132   : > { %v1007_v55 = vpop.permute.xlu0 %1006 }
 0x133   : > { %v911_v20 = vpop.permute.xlu1 %910  ;;  %v1265_v59 = vsel %vm1120_vm3, %v1225_v57, %v1007_v55 }
 0x134   : > { %v1176_v61 = vsel %vm1153_vm4, %v1136_v58, %v911_v20 }
 0x136   : > { %v1055_v60 = vpop.permute.xlu0 %1054 }
 0x137   : > { %v1304_v63 = vsel %vm1153_vm4, %v1265_v59, %v1055_v60  ;;  %v817_v2 = vpop.permute.xlu1 %816 }
 0x138   : > { %1617 = vmatprep.mubr.bf16.mxu0 %v1304_v63  ;;  %v1098_v14 = vsel %vm244_vm0, %v391_v36, %v817_v2 }
 0x139   : > { %1618 = vmatmul.mubr.bf16.gmra.mrb[28].mxu0 %v1176_v61 }
 0x13a   : > { %v961_v6 = vpop.permute.xlu0 %960 }
 0x13b   : > { %v865_v7 = vpop.permute.xlu1 %864  ;;  %v1228_v9 = vsel %vm244_vm0, %v4805_v34, %v961_v6  ;;  %v2051_v34 = vld [vmem:[#allocation3 + $0x2] sm:$0xff] }
 0x13c   : > { %v1138_v10 = vsel %vm1120_vm3, %v1098_v14, %v865_v7  ;;  %v2083_v46 = vpack.c.bf16 %v2052_v25, %v2051_v34 }
 0x13e   : > { %v1009_v8 = vpop.permute.xlu0 %1008  ;;  %2452 = vrot.lane.b32.xlu1 %v2083_v46, %s4253_s29 }
 0x13f   : > { %v913_v28 = vpop.permute.xlu1 %912  ;;  %v1267_v13 = vsel %vm1120_vm3, %v1228_v9, %v1009_v8 }
 0x140   : > { %v1179_v16 = vsel %vm1153_vm4, %v1138_v10, %v913_v28 }
 0x142   : > { %v1057_v21 = vpop.permute.xlu0 %1056 }
 0x143   : > { %v1307_v17 = vsel %vm1153_vm4, %v1267_v13, %v1057_v21  ;;  %v819_v15 = vpop.permute.xlu1 %818 }
 0x144   : > { %1625 = vmatprep.mubr.bf16.mxu0 %v1307_v17  ;;  %v1101_v32 = vsel %vm244_vm0, %v392_v27, %v819_v15 }
 0x145   : > { %1626 = vmatmul.mubr.bf16.gmra.mrb[32].mxu0 %v1179_v16 }
 0x146   : > { %v963_v49 = vpop.permute.xlu0 %962 }
 0x147   : > { %v867_v29 = vpop.permute.xlu1 %866  ;;  %v1231_v39 = vsel %vm244_vm0, %v4834_v53, %v963_v49 }
 0x148   : > { %v1140_v40 = vsel %vm1120_vm3, %v1101_v32, %v867_v29 }
 0x14a   : > { %v1011_v31 = vpop.permute.xlu0 %1010 }
 0x14b   : > { %v915_v38 = vpop.permute.xlu1 %914  ;;  %v1269_v33 = vsel %vm1120_vm3, %v1231_v39, %v1011_v31 }
 0x14c   : > { %v1182_v44 = vsel %vm1153_vm4, %v1140_v40, %v915_v38 }
 0x14e   : > { %v1059_v43 = vpop.permute.xlu0 %1058 }
 0x14f   : > { %v1310_v51 = vsel %vm1153_vm4, %v1269_v33, %v1059_v43  ;;  %v821_v35 = vpop.permute.xlu1 %820 }
 0x150   : > { %1633 = vmatprep.mubr.bf16.mxu0 %v1310_v51  ;;  %v1104_v0 = vsel %vm244_vm0, %v4822_v47, %v821_v35  ;;  %v5031_v47 = vld [vmem:[%s5900_s3 + $0x80] sm:$0xff]  }
 0x151   : > { %1634 = vmatmul.mubr.bf16.gmra.mrb[36].mxu0 %v1182_v44  ;;  %4018 = vmatprep.subr.bf16.mxu0 %v5031_v47 }
 0x152   : > { %v965_v52 = vpop.permute.xlu0 %964  ;;  %4019 = vmatpush3.bf16.msra.mxu0 %v5031_v47 }
 0x153   : > { %v869_v54 = vpop.permute.xlu1 %868  ;;  %v1234_v53 = vsel %vm244_vm0, %v4849_v1, %v965_v52  ;;  %4020 = vmatprep.subr.bf16.mxu0 %v4131_v3 }
 0x154   : > { %v1142_v57 = vsel %vm1120_vm3, %v1104_v0, %v869_v54 }
 0x156   : > { %v1013_v55 = vpop.permute.xlu0 %1012  ;;  %4021 = vmatpush3.bf16.msra.mxu0 %v4131_v3 }
 0x157   : > { %v917_v20 = vpop.permute.xlu1 %916  ;;  %v1271_v58 = vsel %vm1120_vm3, %v1234_v53, %v1013_v55 }
 0x158   : > { %v1185_v60 = vsel %vm1153_vm4, %v1142_v57, %v917_v20 }
 0x15a   : > { %v1061_v59 = vpop.permute.xlu0 %1060 }
 0x15b   : > { %v1313_v61 = vsel %vm1153_vm4, %v1271_v58, %v1061_v59  ;;  %v823_v63 = vpop.permute.xlu1 %822 }
 0x15c   : > { %1641 = vmatprep.mubr.bf16.mxu0 %v1313_v61  ;;  %v1107_v6 = vsel %vm244_vm0, %v4843_v56, %v823_v63  ;;  %v5046_v56 = vpop.f32.mrb[0].mxu1 }
 0x15d   : > { %1642 = vmatmul.mubr.bf16.gmra.mrb[40].mxu0 %v1185_v60  ;;  %v5048_v17 = vpop.f32.mrb[1].mxu1 }
 0x15e   : > { %v967_v2 = vpop.permute.xlu0 %966 }
 0x15f   : > { %v871_v1 = vpop.permute.xlu1 %870  ;;  %v1237_v7 = vsel %vm244_vm0, %v4872_v24, %v967_v2  ;;  %v5050_v24 = vpop.f32.mrb[2].mxu1 }
 0x160   : > { %v1144_v8 = vsel %vm1120_vm3, %v1107_v6, %v871_v1  ;;  %v5052_v19 = vpop.f32.mrb[3].mxu1 }
 0x161   : > { %v5062_v29 = vpop.f32.mrb[4].mxu1 }
 0x162   : > { %v1015_v26 = vpop.permute.xlu0 %1014  ;;  %v5064_v46 = vpop.f32.mrb[5].mxu1 }
 0x163   : > { %v919_v36 = vpop.permute.xlu1 %918  ;;  %v1273_v14 = vsel %vm1120_vm3, %v1237_v7, %v1015_v26  ;;  %v5066_v30 = vpop.f32.mrb[6].mxu1 }
 0x164   : > { %v1188_v9 = vsel %vm1153_vm4, %v1144_v8, %v919_v36 }
 0x166   : > { %v1063_v28 = vpop.permute.xlu0 %1062 }
 0x167   : > { %v1316_v10 = vsel %vm1153_vm4, %v1273_v14, %v1063_v28  ;;  %v825_v13 = vpop.permute.xlu1 %824 }
 0x168   : > { %1649 = vmatprep.mubr.bf16.mxu0 %v1316_v10  ;;  %v1110_v15 = vsel %vm244_vm0, %v4862_v12, %v825_v13 }
 0x169   : > { %1650 = vmatmul.mubr.bf16.gmra.mrb[44].mxu0 %v1188_v9 }
 0x16a   : > { %v969_v21 = vpop.permute.xlu0 %968 }
 0x16b   : > { %v873_v16 = vpop.permute.xlu1 %872  ;;  %v1240_v50 = vsel %vm244_vm0, %v4896_v41, %v969_v21  ;;  %v5068_v41 = vpop.f32.mrb[7].mxu1 }
 0x16c   : > { %v1146_v23 = vsel %vm1120_vm3, %v1110_v15, %v873_v16  ;;  %v5072_v39 = vpop.f32.mrb[8].mxu1 }
 0x16d   : > { %v5077_v43 = vpop.f32.mrb[9].mxu1 }
 0x16e   : > { %v1017_v18 = vpop.permute.xlu0 %1016  ;;  %v5081_v52 = vpop.f32.mrb[10].mxu1 }
 0x16f   : > { %v921_v22 = vpop.permute.xlu1 %920  ;;  %v1275_v49 = vsel %vm1120_vm3, %v1240_v50, %v1017_v18  ;;  %v4132_v50 = vld [vmem:[%s5900_s3 + $0x40] sm:$0xff]  }
 0x170   : > { %v1191_v25 = vsel %vm1153_vm4, %v1146_v23, %v921_v22  ;;  %3852 = vmatprep.subr.bf16.mxu1 %v4132_v50 }
 0x172   : > { %v1065_v34 = vpop.permute.xlu0 %1064 }
 0x173   : > { %v1319_v11 = vsel %vm1153_vm4, %v1275_v49, %v1065_v34  ;;  %v827_v27 = vpop.permute.xlu1 %826  ;;  %v4133_v49 = vld [vmem:[%s5900_s3] sm:$0xff]  }
 0x174   : > { %1657 = vmatprep.mubr.bf16.mxu0 %v1319_v11  ;;  %v1113_v32 = vsel %vm244_vm0, %v4884_v37, %v827_v27  ;;  %v5084_v37 = vpop.f32.mrb[11].mxu1  ;;  %3853 = vmatpush3.bf16.msra.mxu1 %v4133_v49  ;;  %v4134_v11 = vld [vmem:[%s5900_s3 + $0x48] sm:$0xff]  }
 0x175   : > { %1658 = vmatmul.mubr.bf16.gmra.mrb[48].mxu0 %v1191_v25  ;;  %v5086_v20 = vpop.f32.mrb[12].mxu1  ;;  %v4135_v27 = vld [vmem:[%s5900_s3 + $0x8] sm:$0xff]   ;;  %3854 = vmatprep.subr.bf16.mxu1 %v4134_v11 }
 0x176   : > { %v971_v12 = vpop.permute.xlu0 %970  ;;  %v5088_v53 = vpop.f32.mrb[13].mxu1 }
 0x177   : > { %v875_v45 = vpop.permute.xlu1 %874  ;;  %v1243_v40 = vsel %vm244_vm0, %v4920_v48, %v971_v12  ;;  %v5090_v58 = vpop.f32.mrb[14].mxu1 }
 0x178   : > { %v1148_v33 = vsel %vm1120_vm3, %v1113_v32, %v875_v45  ;;  %v5092_v59 = vpop.f32.mrb[15].mxu1  ;;  %3855 = vmatpush3.bf16.msra.mxu1 %v4135_v27 }
 0x179   : > { %v5110_v18 = vpop.f32.mrb[16].mxu1 }
 0x17a   : > { %v1019_v31 = vpop.permute.xlu0 %1018  ;;  %v5112_v15 = vpop.f32.mrb[17].mxu1 }
 0x17b   : > { %v923_v38 = vpop.permute.xlu1 %922  ;;  %v1277_v44 = vsel %vm1120_vm3, %v1243_v40, %v1019_v31  ;;  %v5141_v31 = vld [vmem:[%s5899_s2] ss:$0 sm:$0xff]  ;;  %v4136_v40 = vld [vmem:[%s5900_s3 + $0x50] sm:$0xff]  }
 0x17c   : > { %v1194_v35 = vsel %vm1153_vm4, %v1148_v33, %v923_v38  ;;  %3856 = vmatprep.subr.bf16.mxu1 %v4136_v40 }
 0x17e   : > { %v1067_v51 = vpop.permute.xlu0 %1066 }
 0x17f   : > { %v1322_v54 = vsel %vm1153_vm4, %v1277_v44, %v1067_v51  ;;  %v829_v55 = vpop.permute.xlu1 %828  ;;  %v4137_v44 = vld [vmem:[%s5900_s3 + $0x10] sm:$0xff]  }
 0x180   : > { %1665 = vmatprep.mubr.bf16.mxu0 %v1322_v54  ;;  %v1116_v60 = vsel %vm244_vm0, %v4908_v62, %v829_v55  ;;  %3857 = vmatpush3.bf16.msra.mxu1 %v4137_v44 }
 0x181   : > { %1666 = vmatmul.mubr.bf16.gmra.mrb[52].mxu0 %v1194_v35 }
 0x182   : > { %v973_v0 = vpop.permute.xlu0 %972 }
 0x183   : > { %v877_v48 = vpop.permute.xlu1 %876  ;;  %v1246_v63 = vsel %vm244_vm0, %v4944_v5, %v973_v0  ;;  %v4138_v0 = vld [vmem:[%s5900_s3 + $0x58] sm:$0xff]  }
 0x184   : > { %v1150_v2 = vsel %vm1120_vm3, %v1116_v60, %v877_v48  ;;  %v4139_v48 = vld [vmem:[%s5900_s3 + $0x18] sm:$0xff]   ;;  %3858 = vmatprep.subr.bf16.mxu1 %v4138_v0 }
 0x185   : > { %3859 = vmatpush3.bf16.msra.mxu1 %v4139_v48 }
 0x186   : > { %v1021_v57 = vpop.permute.xlu0 %1020 }
 0x187   : > { %v925_v61 = vpop.permute.xlu1 %924  ;;  %v1279_v1 = vsel %vm1120_vm3, %v1246_v63, %v1021_v57  ;;  %v4141_v63 = vld [vmem:[%s5900_s3 + $0x20] sm:$0xff]  }
 0x188   : > { %v1197_v26 = vsel %vm1153_vm4, %v1150_v2, %v925_v61 }
 0x18a   : > { %v1069_v3 = vpop.permute.xlu0 %1068 }
 0x18b   : > { %v1325_v6 = vsel %vm1153_vm4, %v1279_v1, %v1069_v3  ;;  %v831_v36 = vpop.permute.xlu1 %830 }
 0x18c   : > { %1673 = vmatprep.mubr.bf16.mxu0 %v1325_v6  ;;  %v1119_v62 = vsel %vm244_vm0, %v4932_v42, %v831_v36  ;;  %v5114_v42 = vpop.f32.mrb[18].mxu1  ;;  %v4143_v36 = vld [vmem:[%s5900_s3 + $0x28] sm:$0xff]  }
 0x18d   : > { %1674 = vmatmul.mubr.bf16.gmra.mrb[56].mxu0 %v1197_v26  ;;  %v5116_v22 = vpop.f32.mrb[19].mxu1  ;;  %v4142_v26 = vld [vmem:[%s5900_s3 + $0x68] sm:$0xff]  }
 0x18e   : > { %v975_v7 = vpop.permute.xlu0 %974 }
 0x18f   : > { %v879_v8 = vpop.permute.xlu1 %878  ;;  %v1249_v5 = vsel %vm244_vm0, %v4966_v4, %v975_v7  ;;  %v5118_v4 = vpop.f32.mrb[20].mxu1 }
 0x190   : > { %v1152_v9 = vsel %vm1120_vm3, %v1119_v62, %v879_v8  ;;  %v5123_v23 = vpop.f32.mrb[21].mxu1 }
 0x191   : > { %v5128_v34 = vpop.f32.mrb[22].mxu1 }
 0x192   : > { %v1023_v14 = vpop.permute.xlu0 %1022  ;;  %v5130_v25 = vpop.f32.mrb[23].mxu1 }
 0x193   : > { %v927_v28 = vpop.permute.xlu1 %926  ;;  %v1281_v10 = vsel %vm1120_vm3, %v1249_v5, %v1023_v14  ;;  %v5176_v5 = vpop.f32.mrb[24].mxu1 }
 0x194   : > { %v1200_v21 = vsel %vm1153_vm4, %v1152_v9, %v927_v28  ;;  %v4144_v9 = vld [vmem:[%s5900_s3 + $0x70] sm:$0xff]  }
 0x196   : > { %v1071_v13 = vpop.permute.xlu0 %1070 }
 0x197   : > { %v1328_v16 = vsel %vm1153_vm4, %v1281_v10, %v1071_v13 }
 0x198   : > { %1681 = vmatprep.mubr.bf16.mxu0 %v1328_v16  ;;  %v5181_v16 = vpop.f32.mrb[25].mxu1 }
 0x199   : > { %1682 = vmatmul.mubr.bf16.gmra.mrb[60].mxu0 %v1200_v21 }
 0x1b8   : > { %v3738_v12 = vpop.f32.mrb[0].mxu0 }
 0x1b9   : > { %v3739_v45 = vpop.f32.mrb[1].mxu0 }
 0x1ba   : > { %v3740_v32 = vadd.f32 %v3739_v45, %v3738_v12  ;;  %v3741_v38 = vpop.f32.mrb[2].mxu0  ;;  %v4145_v12 = vld [vmem:[%s5900_s3 + $0x30] sm:$0xff]  }
 0x1bb   : > { %v3742_v33 = vpop.f32.mrb[3].mxu0 }
 0x1bc   : > { %v3743_v51 = vadd.f32 %v3742_v33, %v3741_v38  ;;  %v1564_v35 = vadd.f32 %v3740_v32, %v5141_v31  ;;  %v4147_v33 = vld [vmem:[%s5900_s3 + $0x38] sm:$0xff]  }
 0x1be   : > { %v1725_v54 = vadd.f32 %v5048_v17, %v1564_v35  ;;  %v1567_v55 = vadd.f32 %v3743_v51, %v5141_v31  ;;  %v4140_v17 = vld [vmem:[%s5900_s3 + $0x60] sm:$0xff]  }
 0x1bf   : > { %3860 = vmatprep.subr.bf16.mxu1 %v4140_v17 }
 0x1c0   : > { %v1851_v57 = vmax.f32 %v1725_v54, 0.0  ;;  %v1728_v60 = vadd.f32 %v5052_v19, %v1567_v55  ;;  %3861 = vmatpush3.bf16.msra.mxu1 %v4141_v63 }
 0x1c1   : > { %3862 = vmatprep.subr.bf16.mxu1 %v4142_v26 }
 0x1c2   : > { %1923 = vst.msk [vmem:[#allocation3 + $0x19] sm:$0xff] %vm244_vm0, %v1851_v57  ;;  %v1852_v61 = vmax.f32 %v1728_v60, 0.0 }
 0x1c4   : > { %1924 = vst.msk [vmem:[#allocation3 + $0x21] sm:$0xff] %vm244_vm0, %v1852_v61  ;;  %v3744_v2 = vpop.f32.mrb[4].mxu0  ;;  %3863 = vmatpush3.bf16.msra.mxu1 %v4143_v36 }
 0x1c5   : > { %v3745_v1 = vpop.f32.mrb[5].mxu0  ;;  %3864 = vmatprep.subr.bf16.mxu1 %v4144_v9 }
 0x1c6   : > { %v3746_v19 = vadd.f32 %v3745_v1, %v3744_v2  ;;  %v3747_v3 = vpop.f32.mrb[6].mxu0 }
 0x1c7   : > { %v3748_v6 = vpop.f32.mrb[7].mxu0 }
 0x1c8   : > { %v1572_v7 = vadd.f32 %v3746_v19, %v5141_v31  ;;  %v3749_v8 = vadd.f32 %v3748_v6, %v3747_v3  ;;  %3865 = vmatpush3.bf16.msra.mxu1 %v4145_v12 }
 0x1c9   : > { %v2099_v28 = vld [vmem:[#allocation3 + $0x18] sm:$0xff] }
 0x1ca   : > { %v1733_v14 = vadd.f32 %v5046_v56, %v1572_v7  ;;  %v1575_v62 = vadd.f32 %v3749_v8, %v5141_v31  ;;  %v5186_v56 = vpop.f32.mrb[26].mxu1  ;;  %v2005_v40 = vld [vmem:[#allocation3 + $0x19] sm:$0xff] }
 0x1cb   : > { %v2195_v10 = vld [vmem:[#allocation3 + $0x1a] sm:$0xff]  ;;  %v2196_v13 = vld [vmem:[#allocation3 + $0x22] sm:$0xff]  ;;  %v5191_v32 = vpop.f32.mrb[27].mxu1 }
 0x1cc   : > { %v2100_v21 = vld [vmem:[#allocation3 + $0x20] sm:$0xff]  ;;  %v1853_v50 = vmax.f32 %v1733_v14, 0.0  ;;  %v1736_v49 = vadd.f32 %v5050_v24, %v1575_v62  ;;  %v2227_v11 = vpack.c.bf16 %v2196_v13, %v2195_v10  ;;  %v4146_v24 = vld [vmem:[%s5900_s3 + $0x78] sm:$0xff]  }
 0x1cd   : > { %v5184_v27 = vpack.c.bf16 %v2100_v21, %v2099_v28  ;;  %v2006_v45 = vld [vmem:[#allocation3 + $0x21] sm:$0xff]  ;;  %3866 = vmatprep.subr.bf16.mxu1 %v4146_v24 }
 0x1ce   : > { %1925 = vst.msk [vmem:[#allocation3 + $0x31] sm:$0xff] %vm244_vm0, %v1853_v50  ;;  %v1854_v38 = vmax.f32 %v1736_v49, 0.0  ;;  %2548 = vrot.lane.b32.xlu0 %v2227_v11, %s4254_s12  ;;  %v5204_v51 = vpack.c.bf16 %v2006_v45, %v2005_v40  ;;  %3867 = vmatpush3.bf16.msra.mxu1 %v4147_v33  ;;  %v5225_v49 = vpop.f32.mrb[28].mxu1 }
 0x1cf   : > { %2500 = vrot.lane.b32.xlu1 %v5184_v27, %s4255_s14  ;;  %4054 = vmatprep.subr.bf16.mxu1 %v5031_v47 }
 0x1d0   : > { %1926 = vst.msk [vmem:[#allocation3 + $0x39] sm:$0xff] %vm244_vm0, %v1854_v38  ;;  %v3750_v44 = vpop.f32.mrb[8].mxu0  ;;  %v5228_v38 = vpop.f32.mrb[29].mxu1 }
 0x1d1   : > { %v3751_v35 = vpop.f32.mrb[9].mxu0 }
 0x1d2   : > { %v3752_v54 = vadd.f32 %v3751_v35, %v3750_v44  ;;  %v3753_v55 = vpop.f32.mrb[10].mxu0 }
 0x1d3   : > { %2406 = vrot.lane.b32.xlu1 %v5204_v51, %s4254_s12  ;;  %v3754_v0 = vpop.f32.mrb[11].mxu0 }
 0x1d4   : > { %v1580_v48 = vadd.f32 %v3752_v54, %v5141_v31  ;;  %v3755_v57 = vadd.f32 %v3754_v0, %v3753_v55 }
 0x1d5   : > { %v2244_v17 = vld [vmem:[#allocation3 + $0x30] sm:$0xff] }
 0x1d6   : > { %v1741_v60 = vadd.f32 %v5064_v46, %v1580_v48  ;;  %v1583_v61 = vadd.f32 %v3755_v57, %v5141_v31  ;;  %v2292_v47 = vld [vmem:[#allocation3 + $0x31] sm:$0xff] }
 0x1d7   : > { %2454 = vrot.lane.b32.xlu1 %v2227_v11, %s4253_s29  ;;  %v2340_v63 = vld [vmem:[#allocation3 + $0x32] sm:$0xff]  ;;  %v2341_v2 = vld [vmem:[#allocation3 + $0x3a] sm:$0xff] }
 0x1d8   : > { %v2245_v1 = vld [vmem:[#allocation3 + $0x38] sm:$0xff]  ;;  %v1855_v19 = vmax.f32 %v1741_v60, 0.0  ;;  %v1744_v3 = vadd.f32 %v5068_v41, %v1583_v61  ;;  %v2372_v26 = vpack.c.bf16 %v2341_v2, %v2340_v63 }
 0x1d9   : > { %v2276_v6 = vpack.c.bf16 %v2245_v1, %v2244_v17  ;;  %v2293_v36 = vld [vmem:[#allocation3 + $0x39] sm:$0xff] }
 0x1da   : > { %1927 = vst.msk [vmem:[#allocation3 + $0x49] sm:$0xff] %vm244_vm0, %v1855_v19  ;;  %v1856_v7 = vmax.f32 %v1744_v3, 0.0  ;;  %4022 = vmatprep.mubr.msk.bf16.mxu0 %vm244_vm0, %v2372_v26  ;;  %v2324_v8 = vpack.c.bf16 %v2293_v36, %v2292_v47 }
 0x1db   : > { %2596 = vrot.lane.b32.xlu0 %v2276_v6, %s4253_s29  ;;  %2502 = vrot.lane.b32.xlu1 %v2276_v6, %s4255_s14 }
 0x1dc   : > { %1928 = vst.msk [vmem:[#allocation3 + $0x51] sm:$0xff] %vm244_vm0, %v1856_v7  ;;  %v3756_v46 = vpop.f32.mrb[12].mxu0 }
 0x1dd   : > { %v3757_v14 = vpop.f32.mrb[13].mxu0 }
 0x1de   : > { %v3758_v62 = vadd.f32 %v3757_v14, %v3756_v46  ;;  %v3759_v41 = vpop.f32.mrb[14].mxu0 }
 0x1df   : > { %2644 = vrot.lane.b32.xlu0 %v2324_v8, %s4255_s14  ;;  %2408 = vrot.lane.b32.xlu1 %v2324_v8, %s4254_s12  ;;  %v3760_v28 = vpop.f32.mrb[15].mxu0 }
 0x1e0   : > { %v1588_v9 = vadd.f32 %v3758_v62, %v5141_v31  ;;  %v3761_v10 = vadd.f32 %v3760_v28, %v3759_v41 }
 0x1e1   : > { %v2246_v50 = vld [vmem:[#allocation3 + $0x48] sm:$0xff] }
 0x1e2   : > { %v1749_v13 = vadd.f32 %v5062_v29, %v1588_v9  ;;  %v1591_v21 = vadd.f32 %v3761_v10, %v5141_v31  ;;  %v5231_v29 = vpop.f32.mrb[30].mxu1  ;;  %v2294_v0 = vld [vmem:[#allocation3 + $0x49] sm:$0xff] }
 0x1e3   : > { %2550 = vrot.lane.b32.xlu0 %v2372_v26, %s4254_s12  ;;  %2456 = vrot.lane.b32.xlu1 %v2372_v26, %s4253_s29  ;;  %v2342_v11 = vld [vmem:[#allocation3 + $0x4a] sm:$0xff]  ;;  %v2343_v12 = vld [vmem:[#allocation3 + $0x52] sm:$0xff]  ;;  %v5233_v54 = vpop.f32.mrb[31].mxu1 }
 0x1e4   : > { %v2247_v45 = vld [vmem:[#allocation3 + $0x50] sm:$0xff]  ;;  %v1857_v24 = vmax.f32 %v1749_v13, 0.0  ;;  %v1752_v40 = vadd.f32 %v5066_v30, %v1591_v21  ;;  %v2373_v33 = vpack.c.bf16 %v2343_v12, %v2342_v11 }
 0x1e5   : > { %v2277_v44 = vpack.c.bf16 %v2247_v45, %v2246_v50  ;;  %v2295_v35 = vld [vmem:[#allocation3 + $0x51] sm:$0xff] }
 0x1e6   : > { %1929 = vst.msk [vmem:[#allocation3 + $0x61] sm:$0xff] %vm244_vm0, %v1857_v24  ;;  %v1858_v55 = vmax.f32 %v1752_v40, 0.0  ;;  %4023 = vmatmul.mubr.msk.bf16.vlgmr.msra.gmra.mrb[64].mxu0 %vm244_vm0, %v2373_v33  ;;  %v2325_v48 = vpack.c.bf16 %v2295_v35, %v2294_v0 }
 0x1e7   : > { %2598 = vrot.lane.b32.xlu0 %v2277_v44, %s4253_s29  ;;  %2504 = vrot.lane.b32.xlu1 %v2277_v44, %s4255_s14 }
 0x1e8   : > { %1930 = vst.msk [vmem:[#allocation3 + $0x69] sm:$0xff] %vm244_vm0, %v1858_v55  ;;  %v3762_v30 = vpop.f32.mrb[16].mxu0 }
 0x1e9   : > { %v3763_v57 = vpop.f32.mrb[17].mxu0 }
 0x1ea   : > { %v3764_v60 = vadd.f32 %v3763_v57, %v3762_v30  ;;  %v3765_v61 = vpop.f32.mrb[18].mxu0 }
 0x1eb   : > { %2646 = vrot.lane.b32.xlu0 %v2325_v48, %s4255_s14  ;;  %2410 = vrot.lane.b32.xlu1 %v2325_v48, %s4254_s12  ;;  %v3766_v17 = vpop.f32.mrb[19].mxu0 }
 0x1ec   : > { %v1596_v63 = vadd.f32 %v3764_v60, %v5141_v31  ;;  %v3767_v2 = vadd.f32 %v3766_v17, %v3765_v61 }
 0x1ed   : > { %v2248_v3 = vld [vmem:[#allocation3 + $0x60] sm:$0xff] }
 0x1ee   : > { %v1757_v1 = vadd.f32 %v5077_v43, %v1596_v63  ;;  %v1599_v19 = vadd.f32 %v3767_v2, %v5141_v31  ;;  %v2296_v43 = vld [vmem:[#allocation3 + $0x61] sm:$0xff] }
 0x1ef   : > { %2552 = vrot.lane.b32.xlu0 %v2373_v33, %s4254_s12  ;;  %2458 = vrot.lane.b32.xlu1 %v2373_v33, %s4253_s29  ;;  %v2344_v26 = vld [vmem:[#allocation3 + $0x62] sm:$0xff]  ;;  %v2345_v6 = vld [vmem:[#allocation3 + $0x6a] sm:$0xff] }
 0x1f0   : > { %v2249_v36 = vld [vmem:[#allocation3 + $0x68] sm:$0xff]  ;;  %v1859_v7 = vmax.f32 %v1757_v1, 0.0  ;;  %v1760_v47 = vadd.f32 %v5084_v37, %v1599_v19  ;;  %v2374_v46 = vpack.c.bf16 %v2345_v6, %v2344_v26 }
 0x1f1   : > { %v2278_v8 = vpack.c.bf16 %v2249_v36, %v2248_v3  ;;  %v2297_v14 = vld [vmem:[#allocation3 + $0x69] sm:$0xff] }
 0x1f2   : > { %1931 = vst.msk [vmem:[#allocation3 + $0x79] sm:$0xff] %vm244_vm0, %v1859_v7  ;;  %v1860_v62 = vmax.f32 %v1760_v47, 0.0  ;;  %4026 = vmatprep.mubr.msk.bf16.mxu0 %vm244_vm0, %v2374_v46  ;;  %v2326_v28 = vpack.c.bf16 %v2297_v14, %v2296_v43 }
 0x1f3   : > { %2600 = vrot.lane.b32.xlu0 %v2278_v8, %s4253_s29  ;;  %2506 = vrot.lane.b32.xlu1 %v2278_v8, %s4255_s14 }
 0x1f4   : > { %1932 = vst.msk [vmem:[#allocation3 + $0x81] sm:$0xff] %vm244_vm0, %v1860_v62  ;;  %v3768_v41 = vpop.f32.mrb[20].mxu0 }
 0x1f5   : > { %v3769_v9 = vpop.f32.mrb[21].mxu0 }
 0x1f6   : > { %v3770_v10 = vadd.f32 %v3769_v9, %v3768_v41  ;;  %v3771_v37 = vpop.f32.mrb[22].mxu0 }
 0x1f7   : > { %2648 = vrot.lane.b32.xlu0 %v2326_v28, %s4255_s14  ;;  %2412 = vrot.lane.b32.xlu1 %v2326_v28, %s4254_s12  ;;  %v3772_v13 = vpop.f32.mrb[23].mxu0 }
 0x1f8   : > { %v1604_v21 = vadd.f32 %v3770_v10, %v5141_v31  ;;  %v3773_v50 = vadd.f32 %v3772_v13, %v3771_v37 }
 0x1f9   : > { %v2250_v45 = vld [vmem:[#allocation3 + $0x78] sm:$0xff] }
 0x1fa   : > { %v1765_v11 = vadd.f32 %v5072_v39, %v1604_v21  ;;  %v1607_v12 = vadd.f32 %v3773_v50, %v5141_v31  ;;  %v2298_v39 = vld [vmem:[#allocation3 + $0x79] sm:$0xff] }
 0x1fb   : > { %2554 = vrot.lane.b32.xlu0 %v2374_v46, %s4254_s12  ;;  %2460 = vrot.lane.b32.xlu1 %v2374_v46, %s4253_s29  ;;  %v2346_v24 = vld [vmem:[#allocation3 + $0x7a] sm:$0xff]  ;;  %v2347_v40 = vld [vmem:[#allocation3 + $0x82] sm:$0xff] }
 0x1fc   : > { %v2251_v33 = vld [vmem:[#allocation3 + $0x80] sm:$0xff]  ;;  %v1861_v44 = vmax.f32 %v1765_v11, 0.0  ;;  %v1768_v35 = vadd.f32 %v5081_v52, %v1607_v12  ;;  %v2375_v55 = vpack.c.bf16 %v2347_v40, %v2346_v24 }
 0x1fd   : > { %v2279_v0 = vpack.c.bf16 %v2251_v33, %v2250_v45  ;;  %v2299_v30 = vld [vmem:[#allocation3 + $0x81] sm:$0xff] }
 0x1fe   : > { %1933 = vst.msk [vmem:[#allocation3 + $0x91] sm:$0xff] %vm244_vm0, %v1861_v44  ;;  %v1862_v48 = vmax.f32 %v1768_v35, 0.0  ;;  %4027 = vmatmul.mubr.msk.bf16.gmra.mrb[68].mxu0 %vm244_vm0, %v2375_v55  ;;  %v2327_v60 = vpack.c.bf16 %v2299_v30, %v2298_v39 }
 0x1ff   : > { %2602 = vrot.lane.b32.xlu0 %v2279_v0, %s4253_s29  ;;  %2508 = vrot.lane.b32.xlu1 %v2279_v0, %s4255_s14 }
 0x200   : > { %1934 = vst.msk [vmem:[#allocation3 + $0x99] sm:$0xff] %vm244_vm0, %v1862_v48  ;;  %v3774_v57 = vpop.f32.mrb[24].mxu0 }
 0x201   : > { %v3775_v61 = vpop.f32.mrb[25].mxu0 }
 0x202   : > { %v3776_v17 = vadd.f32 %v3775_v61, %v3774_v57  ;;  %v3777_v52 = vpop.f32.mrb[26].mxu0 }
 0x203   : > { %2650 = vrot.lane.b32.xlu0 %v2327_v60, %s4255_s14  ;;  %2414 = vrot.lane.b32.xlu1 %v2327_v60, %s4254_s12  ;;  %v3778_v63 = vpop.f32.mrb[27].mxu0 }
 0x204   : > { %v1612_v2 = vadd.f32 %v3776_v17, %v5141_v31  ;;  %v3779_v1 = vadd.f32 %v3778_v63, %v3777_v52 }
 0x205   : > { %v2252_v26 = vld [vmem:[#allocation3 + $0x90] sm:$0xff] }
 0x206   : > { %v1773_v19 = vadd.f32 %v5088_v53, %v1612_v2  ;;  %v1615_v3 = vadd.f32 %v3779_v1, %v5141_v31  ;;  %v2300_v53 = vld [vmem:[#allocation3 + $0x91] sm:$0xff] }
 0x207   : > { %2556 = vrot.lane.b32.xlu0 %v2375_v55, %s4254_s12  ;;  %2462 = vrot.lane.b32.xlu1 %v2375_v55, %s4253_s29  ;;  %v2348_v6 = vld [vmem:[#allocation3 + $0x92] sm:$0xff]  ;;  %v2349_v36 = vld [vmem:[#allocation3 + $0x9a] sm:$0xff] }
 0x208   : > { %v2253_v7 = vld [vmem:[#allocation3 + $0x98] sm:$0xff]  ;;  %v1863_v47 = vmax.f32 %v1773_v19, 0.0  ;;  %v1776_v46 = vadd.f32 %v5092_v59, %v1615_v3  ;;  %v2376_v8 = vpack.c.bf16 %v2349_v36, %v2348_v6 }
 0x209   : > { %v2280_v14 = vpack.c.bf16 %v2253_v7, %v2252_v26  ;;  %v2301_v62 = vld [vmem:[#allocation3 + $0x99] sm:$0xff] }
 0x20a   : > { %1935 = vst.msk [vmem:[#allocation3 + $0xa9] sm:$0xff] %vm244_vm0, %v1863_v47  ;;  %v1864_v43 = vmax.f32 %v1776_v46, 0.0  ;;  %4030 = vmatprep.mubr.msk.bf16.mxu0 %vm244_vm0, %v2376_v8  ;;  %v2328_v28 = vpack.c.bf16 %v2301_v62, %v2300_v53 }
 0x20b   : > { %2604 = vrot.lane.b32.xlu0 %v2280_v14, %s4253_s29  ;;  %2510 = vrot.lane.b32.xlu1 %v2280_v14, %s4255_s14 }
 0x20c   : > { %1936 = vst.msk [vmem:[#allocation3 + $0xb1] sm:$0xff] %vm244_vm0, %v1864_v43  ;;  %v3780_v41 = vpop.f32.mrb[28].mxu0 }
 0x20d   : > { %v3781_v9 = vpop.f32.mrb[29].mxu0 }
 0x20e   : > { %v3782_v10 = vadd.f32 %v3781_v9, %v3780_v41  ;;  %v3783_v59 = vpop.f32.mrb[30].mxu0 }
 0x20f   : > { %2652 = vrot.lane.b32.xlu0 %v2328_v28, %s4255_s14  ;;  %2416 = vrot.lane.b32.xlu1 %v2328_v28, %s4254_s12  ;;  %v3784_v37 = vpop.f32.mrb[31].mxu0 }
 0x210   : > { %v1620_v13 = vadd.f32 %v3782_v10, %v5141_v31  ;;  %v3785_v21 = vadd.f32 %v3784_v37, %v3783_v59 }
 0x211   : > { %v2254_v12 = vld [vmem:[#allocation3 + $0xa8] sm:$0xff] }
 0x212   : > { %v1781_v50 = vadd.f32 %v5086_v20, %v1620_v13  ;;  %v1623_v11 = vadd.f32 %v3785_v21, %v5141_v31  ;;  %v2302_v20 = vld [vmem:[#allocation3 + $0xa9] sm:$0xff] }
 0x213   : > { %2558 = vrot.lane.b32.xlu0 %v2376_v8, %s4254_s12  ;;  %2464 = vrot.lane.b32.xlu1 %v2376_v8, %s4253_s29  ;;  %v2350_v45 = vld [vmem:[#allocation3 + $0xaa] sm:$0xff]  ;;  %v2351_v24 = vld [vmem:[#allocation3 + $0xb2] sm:$0xff] }
 0x214   : > { %v2255_v40 = vld [vmem:[#allocation3 + $0xb0] sm:$0xff]  ;;  %v1865_v33 = vmax.f32 %v1781_v50, 0.0  ;;  %v1784_v44 = vadd.f32 %v5090_v58, %v1623_v11  ;;  %v2377_v35 = vpack.c.bf16 %v2351_v24, %v2350_v45 }
 0x215   : > { %v2281_v55 = vpack.c.bf16 %v2255_v40, %v2254_v12  ;;  %v2303_v0 = vld [vmem:[#allocation3 + $0xb1] sm:$0xff] }
 0x216   : > { %1937 = vst.msk [vmem:[#allocation3 + $0xc1] sm:$0xff] %vm244_vm0, %v1865_v33  ;;  %v1866_v30 = vmax.f32 %v1784_v44, 0.0  ;;  %4031 = vmatmul.mubr.msk.bf16.gmra.mrb[72].mxu0 %vm244_vm0, %v2377_v35  ;;  %v2329_v39 = vpack.c.bf16 %v2303_v0, %v2302_v20 }
 0x217   : > { %2606 = vrot.lane.b32.xlu0 %v2281_v55, %s4253_s29  ;;  %2512 = vrot.lane.b32.xlu1 %v2281_v55, %s4255_s14 }
 0x218   : > { %1938 = vst.msk [vmem:[#allocation3 + $0xc9] sm:$0xff] %vm244_vm0, %v1866_v30  ;;  %v3786_v48 = vpop.f32.mrb[32].mxu0 }
 0x219   : > { %v3787_v57 = vpop.f32.mrb[33].mxu0 }
 0x21a   : > { %v3788_v60 = vadd.f32 %v3787_v57, %v3786_v48  ;;  %v3789_v58 = vpop.f32.mrb[34].mxu0 }
 0x21b   : > { %2654 = vrot.lane.b32.xlu0 %v2329_v39, %s4255_s14  ;;  %2418 = vrot.lane.b32.xlu1 %v2329_v39, %s4254_s12  ;;  %v3790_v61 = vpop.f32.mrb[35].mxu0  ;;  %v5321_v39 = vpop.permute.xlu1 %2404 }
 0x21c   : > { %v1628_v17 = vadd.f32 %v3788_v60, %v5141_v31  ;;  %v3791_v52 = vadd.f32 %v3790_v61, %v3789_v58 }
 0x21d   : > { %v2256_v1 = vld [vmem:[#allocation3 + $0xc0] sm:$0xff] }
 0x21e   : > { %v1789_v63 = vadd.f32 %v5112_v15, %v1628_v17  ;;  %v1631_v2 = vadd.f32 %v3791_v52, %v5141_v31  ;;  %v2304_v15 = vld [vmem:[#allocation3 + $0xc1] sm:$0xff] }
 0x21f   : > { %2560 = vrot.lane.b32.xlu0 %v2377_v35, %s4254_s12  ;;  %2466 = vrot.lane.b32.xlu1 %v2377_v35, %s4253_s29  ;;  %v2352_v19 = vld [vmem:[#allocation3 + $0xc2] sm:$0xff]  ;;  %v2353_v3 = vld [vmem:[#allocation3 + $0xca] sm:$0xff] }
 0x220   : > { %v2257_v26 = vld [vmem:[#allocation3 + $0xc8] sm:$0xff]  ;;  %v1867_v6 = vmax.f32 %v1789_v63, 0.0  ;;  %v1792_v36 = vadd.f32 %v5116_v22, %v1631_v2  ;;  %v2378_v7 = vpack.c.bf16 %v2353_v3, %v2352_v19 }
 0x221   : > { %v2282_v47 = vpack.c.bf16 %v2257_v26, %v2256_v1  ;;  %v2305_v46 = vld [vmem:[#allocation3 + $0xc9] sm:$0xff]  ;;  %v2453_v26 = vpop.permute.xlu1 %2452 }
 0x222   : > { %1939 = vst.msk [vmem:[#allocation3 + $0xd9] sm:$0xff] %vm244_vm0, %v1867_v6  ;;  %v1868_v8 = vmax.f32 %v1792_v36, 0.0  ;;  %4034 = vmatprep.mubr.msk.bf16.mxu0 %vm244_vm0, %v2378_v7  ;;  %v2330_v62 = vpack.c.bf16 %v2305_v46, %v2304_v15 }
 0x223   : > { %2608 = vrot.lane.b32.xlu0 %v2282_v47, %s4253_s29  ;;  %2514 = vrot.lane.b32.xlu1 %v2282_v47, %s4255_s14 }
 0x224   : > { %1940 = vst.msk [vmem:[#allocation3 + $0xe1] sm:$0xff] %vm244_vm0, %v1868_v8  ;;  %v3792_v14 = vpop.f32.mrb[36].mxu0 }
 0x225   : > { %v3793_v43 = vpop.f32.mrb[37].mxu0 }
 0x226   : > { %v3794_v53 = vadd.f32 %v3793_v43, %v3792_v14  ;;  %v3795_v22 = vpop.f32.mrb[38].mxu0  ;;  %v5346_v43 = vpop.permute.xlu0 %2626 }
 0x227   : > { %2656 = vrot.lane.b32.xlu0 %v2330_v62, %s4255_s14  ;;  %2420 = vrot.lane.b32.xlu1 %v2330_v62, %s4254_s12  ;;  %v3796_v41 = vpop.f32.mrb[39].mxu0 }
 0x228   : > { %v1636_v28 = vadd.f32 %v3794_v53, %v5141_v31  ;;  %v3797_v9 = vadd.f32 %v3796_v41, %v3795_v22 }
 0x229   : > { %v2258_v37 = vld [vmem:[#allocation3 + $0xd8] sm:$0xff] }
 0x22a   : > { %v1797_v10 = vadd.f32 %v5110_v18, %v1636_v28  ;;  %v1639_v59 = vadd.f32 %v3797_v9, %v5141_v31  ;;  %v2306_v18 = vld [vmem:[#allocation3 + $0xd9] sm:$0xff] }
 0x22b   : > { %2562 = vrot.lane.b32.xlu0 %v2378_v7, %s4254_s12  ;;  %2468 = vrot.lane.b32.xlu1 %v2378_v7, %s4253_s29  ;;  %v2354_v13 = vld [vmem:[#allocation3 + $0xda] sm:$0xff]  ;;  %v2355_v21 = vld [vmem:[#allocation3 + $0xe2] sm:$0xff] }
 0x22c   : > { %v2259_v50 = vld [vmem:[#allocation3 + $0xe0] sm:$0xff]  ;;  %v1869_v11 = vmax.f32 %v1797_v10, 0.0  ;;  %v1800_v12 = vadd.f32 %v5114_v42, %v1639_v59  ;;  %v2379_v45 = vpack.c.bf16 %v2355_v21, %v2354_v13 }
 0x22d   : > { %v2283_v24 = vpack.c.bf16 %v2259_v50, %v2258_v37  ;;  %v2307_v40 = vld [vmem:[#allocation3 + $0xe1] sm:$0xff] }
 0x22e   : > { %1941 = vst.msk [vmem:[#allocation3 + $0xf1] sm:$0xff] %vm244_vm0, %v1869_v11  ;;  %v1870_v33 = vmax.f32 %v1800_v12, 0.0  ;;  %4035 = vmatmul.mubr.msk.bf16.gmra.mrb[76].mxu0 %vm244_vm0, %v2379_v45  ;;  %v2331_v35 = vpack.c.bf16 %v2307_v40, %v2306_v18  ;;  %v1955_v11 = vld [vmem:[#allocation3] sm:$0xff] }
 0x22f   : > { %2610 = vrot.lane.b32.xlu0 %v2283_v24, %s4253_s29  ;;  %2516 = vrot.lane.b32.xlu1 %v2283_v24, %s4255_s14 }
 0x230   : > { %1942 = vst.msk [vmem:[#allocation3 + $0xf9] sm:$0xff] %vm244_vm0, %v1870_v33  ;;  %v3798_v44 = vpop.f32.mrb[40].mxu0 }
 0x231   : > { %v3799_v55 = vpop.f32.mrb[41].mxu0 }
 0x232   : > { %v3800_v0 = vadd.f32 %v3799_v55, %v3798_v44  ;;  %v3801_v42 = vpop.f32.mrb[42].mxu0 }
 0x233   : > { %2658 = vrot.lane.b32.xlu0 %v2331_v35, %s4255_s14  ;;  %2422 = vrot.lane.b32.xlu1 %v2331_v35, %s4254_s12  ;;  %v3802_v30 = vpop.f32.mrb[43].mxu0 }
 0x234   : > { %v1644_v20 = vadd.f32 %v3800_v0, %v5141_v31  ;;  %v3803_v48 = vadd.f32 %v3802_v30, %v3801_v42 }
 0x235   : > { %v2260_v58 = vld [vmem:[#allocation3 + $0xf0] sm:$0xff] }
 0x236   : > { %v1805_v57 = vadd.f32 %v5123_v23, %v1644_v20  ;;  %v1647_v60 = vadd.f32 %v3803_v48, %v5141_v31  ;;  %v2308_v6 = vld [vmem:[#allocation3 + $0xf1] sm:$0xff] }
 0x237   : > { %2564 = vrot.lane.b32.xlu0 %v2379_v45, %s4254_s12  ;;  %2470 = vrot.lane.b32.xlu1 %v2379_v45, %s4253_s29  ;;  %v2356_v61 = vld [vmem:[#allocation3 + $0xf2] sm:$0xff]  ;;  %v2357_v17 = vld [vmem:[#allocation3 + $0xfa] sm:$0xff] }
 0x238   : > { %v2261_v52 = vld [vmem:[#allocation3 + $0xf8] sm:$0xff]  ;;  %v1871_v63 = vmax.f32 %v1805_v57, 0.0  ;;  %v1808_v2 = vadd.f32 %v5130_v25, %v1647_v60  ;;  %v2380_v1 = vpack.c.bf16 %v2357_v17, %v2356_v61 }
 0x239   : > { %v5328_v19 = vpack.c.bf16 %v2261_v52, %v2260_v58  ;;  %v2309_v3 = vld [vmem:[#allocation3 + $0xf9] sm:$0xff] }
 0x23a   : > { %1943 = vst.msk [vmem:[#allocation3 + $0x109] sm:$0xff] %vm244_vm0, %v1871_v63  ;;  %v1872_v23 = vmax.f32 %v1808_v2, 0.0  ;;  %4038 = vmatprep.mubr.msk.bf16.mxu0 %vm244_vm0, %v2380_v1  ;;  %v5337_v36 = vpack.c.bf16 %v2309_v3, %v2308_v6 }
 0x23b   : > { %2612 = vrot.lane.b32.xlu0 %v5328_v19, %s4253_s29  ;;  %2518 = vrot.lane.b32.xlu1 %v5328_v19, %s4255_s14 }
 0x23c   : > { %1944 = vst.msk [vmem:[#allocation3 + $0x111] sm:$0xff] %vm244_vm0, %v1872_v23  ;;  %v3804_v25 = vpop.f32.mrb[44].mxu0 }
 0x23d   : > { %v3805_v7 = vpop.f32.mrb[45].mxu0 }
 0x23e   : > { %v3806_v47 = vadd.f32 %v3805_v7, %v3804_v25  ;;  %v3807_v46 = vpop.f32.mrb[46].mxu0 }
 0x23f   : > { %2660 = vrot.lane.b32.xlu0 %v5337_v36, %s4255_s14  ;;  %2424 = vrot.lane.b32.xlu1 %v5337_v36, %s4254_s12  ;;  %v3808_v8 = vpop.f32.mrb[47].mxu0 }
 0x240   : > { %v1652_v15 = vadd.f32 %v3806_v47, %v5141_v31  ;;  %v3809_v14 = vadd.f32 %v3808_v8, %v3807_v46  ;;  %v2549_v24 = vpop.permute.xlu0 %2548 }
 0x241   : > { %v5344_v62 = vpop.permute.xlu1 %2500  ;;  %v2262_v41 = vld [vmem:[#allocation3 + $0x108] sm:$0xff]  ;;  %v2806_v58 = vsel %vm244_vm0, %v5204_v51, %v2549_v24 }
 0x242   : > { %v1813_v53 = vadd.f32 %v5118_v4, %v1652_v15  ;;  %v1655_v22 = vadd.f32 %v3809_v14, %v5141_v31  ;;  %v1956_v4 = vld [vmem:[#allocation3 + $0x8] sm:$0xff] }
 0x243   : > { %2566 = vrot.lane.b32.xlu0 %v2380_v1, %s4254_s12  ;;  %2472 = vrot.lane.b32.xlu1 %v2380_v1, %s4253_s29  ;;  %v2358_v28 = vld [vmem:[#allocation3 + $0x10a] sm:$0xff]  ;;  %v2359_v9 = vld [vmem:[#allocation3 + $0x112] sm:$0xff]  ;;  %v1987_v40 = vpack.c.bf16 %v1956_v4, %v1955_v11 }
 0x244   : > { %v2263_v10 = vld [vmem:[#allocation3 + $0x110] sm:$0xff]  ;;  %v1873_v59 = vmax.f32 %v1813_v53, 0.0  ;;  %v1816_v37 = vadd.f32 %v5128_v34, %v1655_v22  ;;  %v2381_v21 = vpack.c.bf16 %v2359_v9, %v2358_v28  ;;  %v2150_v22 = vld [vmem:[#allocation3 + $0x39] sm:$0xff] }
 0x245   : > { %v5353_v13 = vpop.permute.xlu1 %2406  ;;  %v5355_v50 = vpack.c.bf16 %v2263_v10, %v2262_v41  ;;  %v2311_v12 = vld [vmem:[#allocation3 + $0x111] sm:$0xff]  ;;  %v2310_v34 = vld [vmem:[#allocation3 + $0x109] sm:$0xff]  ;;  %v2678_v30 = vsel %vm244_vm0, %v1987_v40, %v5321_v39 }
 0x246   : > { %1945 = vst.msk [vmem:[#allocation3 + $0x121] sm:$0xff] %vm244_vm0, %v1873_v59  ;;  %v1874_v45 = vmax.f32 %v1816_v37, 0.0  ;;  %4039 = vmatmul.mubr.msk.bf16.gmra.mrb[80].mxu0 %vm244_vm0, %v2381_v21  ;;  %v5366_v44 = vpack.c.bf16 %v2311_v12, %v2310_v34  ;;  %v2725_v63 = vsel %vm1120_vm3, %v2678_v30, %v2453_v26  ;;  %v4149_v59 = vld [vmem:[%s5900_s3 + $0x88] sm:$0xff]  }
 0x247   : > { %2614 = vrot.lane.b32.xlu0 %v5355_v50, %s4253_s29  ;;  %2520 = vrot.lane.b32.xlu1 %v5355_v50, %s4255_s14  ;;  %v2149_v37 = vld [vmem:[#allocation3 + $0x31] sm:$0xff] }
 0x248   : > { %1946 = vst.msk [vmem:[#allocation3 + $0x129] sm:$0xff] %vm244_vm0, %v1874_v45  ;;  %v3810_v33 = vpop.f32.mrb[48].mxu0  ;;  %v2180_v11 = vpack.c.bf16 %v2150_v22, %v2149_v37  ;;  %v1959_v22 = vld [vmem:[#allocation3 + $0x30] sm:$0xff] }
 0x249   : > { %v5364_v18 = vpop.permute.xlu1 %2454  ;;  %v3811_v35 = vpop.f32.mrb[49].mxu0 }
 0x24a   : > { %v3812_v55 = vadd.f32 %v3811_v35, %v3810_v33  ;;  %v3813_v0 = vpop.f32.mrb[50].mxu0 }
 0x24b   : > { %2662 = vrot.lane.b32.xlu0 %v5366_v44, %s4255_s14  ;;  %2426 = vrot.lane.b32.xlu1 %v5366_v44, %s4254_s12  ;;  %v3814_v42 = vpop.f32.mrb[51].mxu0 }
 0x24c   : > { %v1660_v20 = vadd.f32 %v3812_v55, %v5141_v31  ;;  %v3815_v48 = vadd.f32 %v3814_v42, %v3813_v0 }
 0x24d   : > { %v2597_v57 = vpop.permute.xlu0 %2596  ;;  %v5375_v60 = vpop.permute.xlu1 %2502  ;;  %v2264_v52 = vld [vmem:[#allocation3 + $0x120] sm:$0xff] }
 0x24e   : > { %v1821_v61 = vadd.f32 %v5181_v16, %v1660_v20  ;;  %v1663_v17 = vadd.f32 %v3815_v48, %v5141_v31  ;;  %v2853_v39 = vsel %vm1120_vm3, %v2806_v58, %v2597_v57  ;;  %v2312_v8 = vld [vmem:[#allocation3 + $0x121] sm:$0xff] }
 0x24f   : > { %2568 = vrot.lane.b32.xlu0 %v2381_v21, %s4254_s12  ;;  %2474 = vrot.lane.b32.xlu1 %v2381_v21, %s4253_s29  ;;  %v2360_v2 = vld [vmem:[#allocation3 + $0x122] sm:$0xff]  ;;  %v2361_v1 = vld [vmem:[#allocation3 + $0x12a] sm:$0xff] }
 0x250   : > { %v2265_v3 = vld [vmem:[#allocation3 + $0x128] sm:$0xff]  ;;  %v1875_v23 = vmax.f32 %v1821_v61, 0.0  ;;  %v1824_v6 = vadd.f32 %v5191_v32, %v1663_v17  ;;  %v2382_v25 = vpack.c.bf16 %v2361_v1, %v2360_v2  ;;  %v2757_v32 = vsel %vm1153_vm4, %v2725_v63, %v5344_v62  ;;  %v4148_v62 = vld [vmem:[%s5900_s3 + $0x80] sm:$0xff]  }
 0x251   : > { %v2645_v51 = vpop.permute.xlu0 %2644  ;;  %v5386_v16 = vpack.c.bf16 %v2265_v3, %v2264_v52  ;;  %v5388_v7 = vpop.permute.xlu1 %2408  ;;  %v2313_v46 = vld [vmem:[#allocation3 + $0x129] sm:$0xff]  ;;  %v2152_v3 = vld [vmem:[#allocation3 + $0x51] sm:$0xff] }
 0x252   : > { %v2885_v47 = vsel %vm1153_vm4, %v2853_v39, %v2645_v51  ;;  %1947 = vst.msk [vmem:[#allocation3 + $0x139] sm:$0xff] %vm244_vm0, %v1875_v23  ;;  %v1876_v26 = vmax.f32 %v1824_v6, 0.0  ;;  %4042 = vmatprep.mubr.msk.bf16.mxu0 %vm244_vm0, %v2382_v25  ;;  %v5400_v53 = vpack.c.bf16 %v2313_v46, %v2312_v8  ;;  %v1960_v46 = vld [vmem:[#allocation3 + $0x38] sm:$0xff] }
 0x253   : > { %2616 = vrot.lane.b32.xlu0 %v5386_v16, %s4253_s29  ;;  %3163 = vmatprep.mubr.bf16.mxu1 %v2885_v47  ;;  %v2151_v47 = vld [vmem:[#allocation3 + $0x49] sm:$0xff] }
 0x254   : > { %2522 = vrot.lane.b32.xlu1 %v5386_v16, %s4255_s14  ;;  %1948 = vst.msk [vmem:[#allocation3 + $0x141] sm:$0xff] %vm244_vm0, %v1876_v26  ;;  %3164 = vmatmul.mubr.bf16.vlgmr.msra.gmra.mrb[32].mxu1 %v2757_v32  ;;  %v3816_v15 = vpop.f32.mrb[52].mxu0  ;;  %v2181_v26 = vpack.c.bf16 %v2152_v3, %v2151_v47 }
 0x255   : > { %v2551_v14 = vpop.permute.xlu0 %2550  ;;  %v5402_v41 = vpop.permute.xlu1 %2456  ;;  %4056 = vmatpush3.bf16.msra.mxu1 %v4148_v62 }
 0x256   : > { %v3817_v28 = vpop.f32.mrb[53].mxu0  ;;  %4055 = vmatprep.subr.bf16.mxu1 %v4149_v59  ;;  %v2809_v34 = vsel %vm244_vm0, %v2180_v11, %v2551_v14 }
 0x257   : > { %v3818_v9 = vadd.f32 %v3817_v28, %v3816_v15  ;;  %v3819_v10 = vpop.f32.mrb[54].mxu0  ;;  %2664 = vrot.lane.b32.xlu0 %v5400_v53, %s4255_s14 }
 0x258   : > { %2428 = vrot.lane.b32.xlu1 %v5400_v53, %s4254_s12  ;;  %v3820_v21 = vpop.f32.mrb[55].mxu0 }
 0x259   : > { %v1668_v4 = vadd.f32 %v3818_v9, %v5141_v31  ;;  %v3821_v12 = vadd.f32 %v3820_v21, %v3819_v10  ;;  %v2599_v45 = vpop.permute.xlu0 %2598  ;;  %v5415_v24 = vpop.permute.xlu1 %2504  ;;  %4057 = vmatpush3.bf16.msra.mxu1 %v4149_v59  ;;  %v2266_v35 = vld [vmem:[#allocation3 + $0x138] sm:$0xff]  ;;  %v1989_v59 = vpack.c.bf16 %v1960_v46, %v1959_v22 }
 0x25a   : > { %v2855_v55 = vsel %vm1120_vm3, %v2809_v34, %v2599_v45 }
 0x25b   : > { %v1829_v40 = vadd.f32 %v5176_v5, %v1668_v4  ;;  %v1671_v33 = vadd.f32 %v3821_v12, %v5141_v31  ;;  %2570 = vrot.lane.b32.xlu0 %v2382_v25, %s4254_s12  ;;  %v2362_v0 = vld [vmem:[#allocation3 + $0x13a] sm:$0xff]  ;;  %v2363_v42 = vld [vmem:[#allocation3 + $0x142] sm:$0xff]  ;;  %v2681_v5 = vsel %vm244_vm0, %v5184_v27, %v5353_v13 }
 0x25c   : > { %2476 = vrot.lane.b32.xlu1 %v2382_v25, %s4253_s29  ;;  %v2267_v30 = vld [vmem:[#allocation3 + $0x140] sm:$0xff]  ;;  %v2383_v58 = vpack.c.bf16 %v2363_v42, %v2362_v0  ;;  %v2727_v39 = vsel %vm1120_vm3, %v2681_v5, %v5364_v18 }
 0x25d   : > { %v1877_v20 = vmax.f32 %v1829_v40, 0.0  ;;  %v1832_v48 = vadd.f32 %v5186_v56, %v1671_v33  ;;  %v2647_v57 = vpop.permute.xlu0 %2646  ;;  %v5424_v61 = vpack.c.bf16 %v2267_v30, %v2266_v35  ;;  %v5429_v17 = vpop.permute.xlu1 %2410  ;;  %v2315_v63 = vld [vmem:[#allocation3 + $0x141] sm:$0xff]  ;;  %v2760_v27 = vsel %vm1153_vm4, %v2727_v39, %v5375_v60  ;;  %v2314_v56 = vld [vmem:[#allocation3 + $0x139] sm:$0xff]  ;;  %v1962_v39 = vld [vmem:[#allocation3 + $0x50] sm:$0xff] }
 0x25e   : > { %v2888_v52 = vsel %vm1153_vm4, %v2855_v55, %v2647_v57  ;;  %4043 = vmatmul.mubr.msk.bf16.gmra.mrb[84].mxu0 %vm244_vm0, %v2383_v58  ;;  %v5443_v1 = vpack.c.bf16 %v2315_v63, %v2314_v56  ;;  %v2153_v63 = vld [vmem:[#allocation3 + $0x61] sm:$0xff] }
 0x25f   : > { %1949 = vst.msk [vmem:[#allocation3 + $0x151] sm:$0xff] %vm244_vm0, %v1877_v20  ;;  %v1878_v2 = vmax.f32 %v1832_v48, 0.0  ;;  %2618 = vrot.lane.b32.xlu0 %v5424_v61, %s4253_s29  ;;  %3171 = vmatprep.mubr.bf16.mxu1 %v2888_v52  ;;  %v2154_v48 = vld [vmem:[#allocation3 + $0x69] sm:$0xff] }
 0x260   : > { %2524 = vrot.lane.b32.xlu1 %v5424_v61, %s4255_s14  ;;  %3172 = vmatmul.mubr.bf16.gmra.mrb[36].mxu1 %v2760_v27  ;;  %v3822_v13 = vpop.f32.mrb[56].mxu0  ;;  %v4150_v27 = vld [vmem:[%s5899_s2] ss:$0 sm:$0xff] }
 0x261   : > { %1950 = vst.msk [vmem:[#allocation3 + $0x159] sm:$0xff] %vm244_vm0, %v1878_v2  ;;  %v2553_v18 = vpop.permute.xlu0 %2552  ;;  %v5445_v23 = vpop.permute.xlu1 %2458  ;;  %v2182_v2 = vpack.c.bf16 %v2154_v48, %v2153_v63 }
 0x262   : > { %v3823_v6 = vpop.f32.mrb[57].mxu0  ;;  %v2812_v28 = vsel %vm244_vm0, %v2181_v26, %v2553_v18 }
 0x263   : > { %v3824_v51 = vadd.f32 %v3823_v6, %v3822_v13  ;;  %v3825_v25 = vpop.f32.mrb[58].mxu0  ;;  %2666 = vrot.lane.b32.xlu0 %v5443_v1, %s4255_s14  ;;  %v1961_v6 = vld [vmem:[#allocation3 + $0x48] sm:$0xff] }
 0x264   : > { %2430 = vrot.lane.b32.xlu1 %v5443_v1, %s4254_s12  ;;  %v3826_v60 = vpop.f32.mrb[59].mxu0  ;;  %v1990_v46 = vpack.c.bf16 %v1962_v39, %v1961_v6 }
 0x265   : > { %v1676_v32 = vadd.f32 %v3824_v51, %v5141_v31  ;;  %v3827_v8 = vadd.f32 %v3826_v60, %v3825_v25  ;;  %v2601_v15 = vpop.permute.xlu0 %2600  ;;  %v5452_v14 = vpop.permute.xlu1 %2506 }
 0x266   : > { %v2268_v10 = vld [vmem:[#allocation3 + $0x150] sm:$0xff]  ;;  %v2857_v37 = vsel %vm1120_vm3, %v2812_v28, %v2601_v15 }
 0x267   : > { %v1837_v62 = vadd.f32 %v5228_v38, %v1676_v32  ;;  %v1679_v9 = vadd.f32 %v3827_v8, %v5141_v31  ;;  %2572 = vrot.lane.b32.xlu0 %v2383_v58, %s4254_s12  ;;  %v2684_v31 = vsel %vm244_vm0, %v1989_v59, %v5388_v7  ;;  %v2316_v7 = vld [vmem:[#allocation3 + $0x151] sm:$0xff] }
 0x268   : > { %2478 = vrot.lane.b32.xlu1 %v2383_v58, %s4253_s29  ;;  %v2364_v21 = vld [vmem:[#allocation3 + $0x152] sm:$0xff]  ;;  %v2365_v11 = vld [vmem:[#allocation3 + $0x15a] sm:$0xff]  ;;  %v2729_v0 = vsel %vm1120_vm3, %v2684_v31, %v5402_v41 }
 0x269   : > { %v2269_v4 = vld [vmem:[#allocation3 + $0x158] sm:$0xff]  ;;  %v1879_v12 = vmax.f32 %v1837_v62, 0.0  ;;  %v1840_v45 = vadd.f32 %v5233_v54, %v1679_v9  ;;  %v2649_v34 = vpop.permute.xlu0 %2648  ;;  %v2384_v40 = vpack.c.bf16 %v2365_v11, %v2364_v21  ;;  %v5465_v38 = vpop.permute.xlu1 %2412  ;;  %v2763_v54 = vsel %vm1153_vm4, %v2729_v0, %v5415_v24 }
 0x26a   : > { %v5461_v33 = vpack.c.bf16 %v2269_v4, %v2268_v10  ;;  %v2891_v35 = vsel %vm1153_vm4, %v2857_v37, %v2649_v34  ;;  %v2317_v55 = vld [vmem:[#allocation3 + $0x159] sm:$0xff]  ;;  %v2156_v34 = vld [vmem:[#allocation3 + $0x81] sm:$0xff] }
 0x26b   : > { %1951 = vst.msk [vmem:[#allocation3 + $0x169] sm:$0xff] %vm244_vm0, %v1879_v12  ;;  %v1880_v42 = vmax.f32 %v1840_v45, 0.0  ;;  %4046 = vmatprep.mubr.msk.bf16.mxu0 %vm244_vm0, %v2384_v40  ;;  %3179 = vmatprep.mubr.bf16.mxu1 %v2891_v35  ;;  %v5479_v20 = vpack.c.bf16 %v2317_v55, %v2316_v7  ;;  %v2155_v31 = vld [vmem:[#allocation3 + $0x79] sm:$0xff] }
 0x26c   : > { %2620 = vrot.lane.b32.xlu0 %v5461_v33, %s4253_s29  ;;  %2526 = vrot.lane.b32.xlu1 %v5461_v33, %s4255_s14  ;;  %v3828_v41 = vpop.f32.mrb[60].mxu0  ;;  %v1963_v55 = vld [vmem:[#allocation3 + $0x60] sm:$0xff] }
 0x26d   : > { %1952 = vst.msk [vmem:[#allocation3 + $0x171] sm:$0xff] %vm244_vm0, %v1880_v42  ;;  %3180 = vmatmul.mubr.bf16.gmra.mrb[40].mxu1 %v2763_v54  ;;  %v2555_v30 = vpop.permute.xlu0 %2554  ;;  %v5481_v57 = vpop.permute.xlu1 %2460 }
 0x26e   : > { %v3829_v58 = vpop.f32.mrb[61].mxu0  ;;  %v2815_v51 = vsel %vm244_vm0, %v2182_v2, %v2555_v30 }
 0x26f   : > { %v3830_v5 = vadd.f32 %v3829_v58, %v3828_v41  ;;  %v3831_v52 = vpop.f32.mrb[62].mxu0 }
 0x270   : > { %2668 = vrot.lane.b32.xlu0 %v5479_v20, %s4255_s14  ;;  %2432 = vrot.lane.b32.xlu1 %v5479_v20, %s4254_s12  ;;  %v3832_v24 = vpop.f32.mrb[63].mxu0 }
 0x271   : > { %v1684_v56 = vadd.f32 %v4150_v27, %v3830_v5  ;;  %v3833_v13 = vadd.f32 %v3832_v24, %v3831_v52  ;;  %v2603_v18 = vpop.permute.xlu0 %2602  ;;  %v2509_v3 = vpop.permute.xlu1 %2508 }
 0x272   : > { %v2270_v60 = vld [vmem:[#allocation3 + $0x168] sm:$0xff]  ;;  %v2859_v26 = vsel %vm1120_vm3, %v2815_v51, %v2603_v18  ;;  %v1966_v51 = vld [vmem:[#allocation3 + $0x80] sm:$0xff] }
 0x273   : > { %v1845_v25 = vadd.f32 %v5225_v49, %v1684_v56  ;;  %v1687_v47 = vadd.f32 %v4150_v27, %v3833_v13  ;;  %v2687_v49 = vsel %vm244_vm0, %v1990_v46, %v5429_v17  ;;  %v2318_v17 = vld [vmem:[#allocation3 + $0x169] sm:$0xff] }
 0x274   : > { %2574 = vrot.lane.b32.xlu0 %v2384_v40, %s4254_s12  ;;  %2480 = vrot.lane.b32.xlu1 %v2384_v40, %s4253_s29  ;;  %v2366_v32 = vld [vmem:[#allocation3 + $0x16a] sm:$0xff]  ;;  %v2367_v8 = vld [vmem:[#allocation3 + $0x172] sm:$0xff]  ;;  %v2731_v11 = vsel %vm1120_vm3, %v2687_v49, %v5445_v23 }
 0x275   : > { %v2271_v15 = vld [vmem:[#allocation3 + $0x170] sm:$0xff]  ;;  %v1881_v22 = vmax.f32 %v1845_v25, 0.0  ;;  %v1848_v28 = vadd.f32 %v5231_v29, %v1687_v47  ;;  %v2651_v62 = vpop.permute.xlu0 %2650  ;;  %v2385_v9 = vpack.c.bf16 %v2367_v8, %v2366_v32  ;;  %v5500_v59 = vpop.permute.xlu1 %2414  ;;  %v2766_v29 = vsel %vm1153_vm4, %v2731_v11, %v5452_v14  ;;  %v1964_v40 = vld [vmem:[#allocation3 + $0x68] sm:$0xff]  ;;  %v2322_v25 = vld [vmem:[#allocation3 + $0x199] sm:$0xff] }
 0x276   : > { %v5496_v10 = vpack.c.bf16 %v2271_v15, %v2270_v60  ;;  %v2894_v37 = vsel %vm1153_vm4, %v2859_v26, %v2651_v62  ;;  %v2319_v21 = vld [vmem:[#allocation3 + $0x171] sm:$0xff]  ;;  %v2183_v14 = vpack.c.bf16 %v2156_v34, %v2155_v31  ;;  %v1991_v42 = vpack.c.bf16 %v1964_v40, %v1963_v55  ;;  %v2323_v47 = vld [vmem:[#allocation3 + $0x1a1] sm:$0xff]  ;;  %v2159_v40 = vld [vmem:[#allocation3 + $0xa9] sm:$0xff] }
 0x277   : > { %1953 = vst.msk [vmem:[#allocation3 + $0x181] sm:$0xff] %vm244_vm0, %v1881_v22  ;;  %v1882_v4 = vmax.f32 %v1848_v28, 0.0  ;;  %4047 = vmatmul.mubr.msk.bf16.gmra.mrb[88].mxu0 %vm244_vm0, %v2385_v9  ;;  %3187 = vmatprep.mubr.bf16.mxu1 %v2894_v37  ;;  %v5514_v12 = vpack.c.bf16 %v2319_v21, %v2318_v17  ;;  %v2157_v60 = vld [vmem:[#allocation3 + $0x91] sm:$0xff]  ;;  %v2339_v22 = vpack.c.bf16 %v2323_v47, %v2322_v25 }
 0x278   : > { %2622 = vrot.lane.b32.xlu0 %v5496_v10, %s4253_s29  ;;  %2528 = vrot.lane.b32.xlu1 %v5496_v10, %s4255_s14  ;;  %v2690_v30 = vsel %vm244_vm0, %v1991_v42, %v5465_v38  ;;  %v1965_v26 = vld [vmem:[#allocation3 + $0x78] sm:$0xff]  ;;  %v1967_v31 = vld [vmem:[#allocation3 + $0x90] sm:$0xff] }
 0x279   : > { %1954 = vst.msk [vmem:[#allocation3 + $0x189] sm:$0xff] %vm244_vm0, %v1882_v4  ;;  %3188 = vmatmul.mubr.bf16.gmra.mrb[44].mxu1 %v2766_v29  ;;  %v2557_v23 = vpop.permute.xlu0 %2556  ;;  %v2463_v45 = vpop.permute.xlu1 %2462  ;;  %v2733_v52 = vsel %vm1120_vm3, %v2690_v30, %v5481_v57  ;;  %v2158_v57 = vld [vmem:[#allocation3 + $0x99] sm:$0xff]  ;;  %v1992_v15 = vpack.c.bf16 %v1966_v51, %v1965_v26 }
 0x27a   : > { %v2818_v54 = vsel %vm244_vm0, %v2183_v14, %v2557_v23  ;;  %v2769_v2 = vsel %vm1153_vm4, %v2733_v52, %v2509_v3  ;;  %v2184_v32 = vpack.c.bf16 %v2158_v57, %v2157_v60  ;;  %v2160_v23 = vld [vmem:[#allocation3 + $0xb1] sm:$0xff]  ;;  %v2162_v52 = vld [vmem:[#allocation3 + $0xc9] sm:$0xff] }
 0x27b   : > { %v2693_v62 = vsel %vm244_vm0, %v1992_v15, %v5500_v59  ;;  %v1968_v34 = vld [vmem:[#allocation3 + $0x98] sm:$0xff]  ;;  %v1972_v15 = vld [vmem:[#allocation3 + $0xc8] sm:$0xff] }
 0x27c   : > { %2670 = vrot.lane.b32.xlu0 %v5514_v12, %s4255_s14  ;;  %2434 = vrot.lane.b32.xlu1 %v5514_v12, %s4254_s12  ;;  %v2735_v37 = vsel %vm1120_vm3, %v2693_v62, %v2463_v45  ;;  %v1993_v14 = vpack.c.bf16 %v1968_v34, %v1967_v31  ;;  %v1971_v62 = vld [vmem:[#allocation3 + $0xc0] sm:$0xff] }
 0x27d   : > { %v2605_v35 = vpop.permute.xlu0 %2604  ;;  %v2511_v0 = vpop.permute.xlu1 %2510 }
 0x27e   : > { %v2272_v7 = vld [vmem:[#allocation3 + $0x180] sm:$0xff]  ;;  %v2861_v48 = vsel %vm1120_vm3, %v2818_v54, %v2605_v35  ;;  %v2772_v4 = vsel %vm1153_vm4, %v2735_v37, %v2511_v0  ;;  %v2185_v35 = vpack.c.bf16 %v2160_v23, %v2159_v40  ;;  %v1995_v37 = vpack.c.bf16 %v1972_v15, %v1971_v62 }
 0x27f   : > { %v2320_v38 = vld [vmem:[#allocation3 + $0x181] sm:$0xff] }
 0x280   : > { %2576 = vrot.lane.b32.xlu0 %v2385_v9, %s4254_s12  ;;  %2482 = vrot.lane.b32.xlu1 %v2385_v9, %s4253_s29  ;;  %v2273_v41 = vld [vmem:[#allocation3 + $0x188] sm:$0xff] }
 0x281   : > { %v2653_v58 = vpop.permute.xlu0 %2652  ;;  %v2290_v5 = vpack.c.bf16 %v2273_v41, %v2272_v7  ;;  %v2417_v63 = vpop.permute.xlu1 %2416  ;;  %v2321_v39 = vld [vmem:[#allocation3 + $0x189] sm:$0xff] }
 0x282   : > { %v2897_v24 = vsel %vm1153_vm4, %v2861_v48, %v2653_v58  ;;  %v5532_v56 = vpack.c.bf16 %v2321_v39, %v2320_v38  ;;  %v2225_v18 = vld [vmem:[#allocation3 + $0x182] sm:$0xff]  ;;  %v2226_v6 = vld [vmem:[#allocation3 + $0x18a] sm:$0xff]  ;;  %v2696_v42 = vsel %vm244_vm0, %v1993_v14, %v2417_v63  ;;  %v1973_v14 = vld [vmem:[#allocation3 + $0xd8] sm:$0xff] }
 0x283   : > { %3195 = vmatprep.mubr.bf16.mxu1 %v2897_v24  ;;  %v5536_v3 = vpack.c.bf16 %v2226_v6, %v2225_v18  ;;  %v1970_v24 = vld [vmem:[#allocation3 + $0xb0] sm:$0xff]  ;;  %v2161_v39 = vld [vmem:[#allocation3 + $0xc1] sm:$0xff] }
 0x284   : > { %2624 = vrot.lane.b32.xlu0 %v2290_v5, %s4253_s29  ;;  %2530 = vrot.lane.b32.xlu1 %v2290_v5, %s4255_s14  ;;  %v1969_v38 = vld [vmem:[#allocation3 + $0xa8] sm:$0xff]  ;;  %v2186_v63 = vpack.c.bf16 %v2162_v52, %v2161_v39 }
 0x285   : > { %3196 = vmatmul.mubr.bf16.gmra.mrb[48].mxu1 %v2769_v2  ;;  %v2559_v27 = vpop.permute.xlu0 %2558  ;;  %v2465_v13 = vpop.permute.xlu1 %2464  ;;  %v1994_v18 = vpack.c.bf16 %v1970_v24, %v1969_v38 }
 0x286   : > { %v2821_v28 = vsel %vm244_vm0, %v2184_v32, %v2559_v27  ;;  %v2737_v0 = vsel %vm1120_vm3, %v2696_v42, %v2465_v13 }
 0x288   : > { %2672 = vrot.lane.b32.xlu0 %v5532_v56, %s4255_s14 }
 0x289   : > { %v2607_v46 = vpop.permute.xlu0 %2606  ;;  %v2513_v8 = vpop.permute.xlu1 %2512 }
 0x28a   : > { %v2863_v9 = vsel %vm1120_vm3, %v2821_v28, %v2607_v46  ;;  %v2775_v48 = vsel %vm1153_vm4, %v2737_v0, %v2513_v8  ;;  %v2164_v8 = vld [vmem:[#allocation3 + $0xe1] sm:$0xff] }
 0x28c   : > { %2578 = vrot.lane.b32.xlu0 %v5536_v3, %s4254_s12 }
 0x28d   : > { %v2655_v49 = vpop.permute.xlu0 %2654  ;;  %v2419_v21 = vpop.permute.xlu1 %2418 }
 0x28e   : > { %v2900_v11 = vsel %vm1153_vm4, %v2863_v9, %v2655_v49  ;;  %v2699_v13 = vsel %vm244_vm0, %v1994_v18, %v2419_v21 }
 0x28f   : > { %3203 = vmatprep.mubr.bf16.mxu1 %v2900_v11 }
 0x290   : > { %2674 = vrot.lane.b32.xlu0 %v2339_v22, %s4255_s14  ;;  %3204 = vmatmul.mubr.bf16.gmra.mrb[52].mxu1 %v2772_v4  ;;  %v2163_v22 = vld [vmem:[#allocation3 + $0xd9] sm:$0xff]  ;;  %s5678_s14 = scalar_lea.vmem [#allocation7], %s3643_s25  ;;  %s3721_s25 = sshll.u32 %s4310_s22, 12 }
 0x291   : > { %v2561_v29 = vpop.permute.xlu0 %2560  ;;  %v2467_v17 = vpop.permute.xlu1 %2466  ;;  %v2187_v9 = vpack.c.bf16 %v2164_v8, %v2163_v22  ;;  %s3563_s15 = sshll.u32 %s5678_s14, 4  ;;  %s5845_s7 = scalar_lea.hbm %s5902_s5, %s3721_s25  ;;  %s5847_s15 = int_to_ptr.vmem [resolvable:$true] %s3563_s15 }
 0x292   : > { %v2824_v45 = vsel %vm244_vm0, %v2185_v35, %v2561_v29  ;;  %v2739_v25 = vsel %vm1120_vm3, %v2699_v13, %v2467_v17  ;;  %v1974_v35 = vld [vmem:[#allocation3 + $0xe0] sm:$0xff]  ;;  %s3550_s22 = scalar_lea.sflag [#allocation6], %s4393_s23  ;;  %p4188_p8 = scmp.lt.s32.totalorder %s5847_s15, %s4186_s10 }
 0x295   : > { %v2609_v59 = vpop.permute.xlu0 %2608  ;;  %v2515_v55 = vpop.permute.xlu1 %2514 }
 0x296   : > { %v2865_v54 = vsel %vm1120_vm3, %v2824_v45, %v2609_v59  ;;  %v2778_v46 = vsel %vm1153_vm4, %v2739_v25, %v2515_v55 }
 0x299   : > { %v2657_v7 = vpop.permute.xlu0 %2656  ;;  %v2421_v41 = vpop.permute.xlu1 %2420 }
 0x29a   : > { %v2903_v30 = vsel %vm1153_vm4, %v2865_v54, %v2657_v7  ;;  %v2702_v11 = vsel %vm244_vm0, %v1995_v37, %v2421_v41  ;;  %v1996_v54 = vpack.c.bf16 %v1974_v35, %v1973_v14 }
 0x29b   : > { %3211 = vmatprep.mubr.bf16.mxu1 %v2903_v30 }
 0x29c   : > { %3212 = vmatmul.mubr.bf16.gmra.mrb[56].mxu1 %v2775_v48 }
 0x29d   : > { %v2563_v58 = vpop.permute.xlu0 %2562  ;;  %v2469_v5 = vpop.permute.xlu1 %2468 }
 0x29e   : > { %v2827_v6 = vsel %vm244_vm0, %v2186_v63, %v2563_v58  ;;  %v2741_v17 = vsel %vm1120_vm3, %v2702_v11, %v2469_v5 }
 0x2a1   : > { %v2611_v2 = vpop.permute.xlu0 %2610  ;;  %v2517_v27 = vpop.permute.xlu1 %2516 }
 0x2a2   : > { %v2867_v57 = vsel %vm1120_vm3, %v2827_v6, %v2611_v2  ;;  %v2781_v40 = vsel %vm1153_vm4, %v2741_v17, %v2517_v27 }
 0x2a5   : > { %v2659_v51 = vpop.permute.xlu0 %2658  ;;  %v2423_v47 = vpop.permute.xlu1 %2422 }
 0x2a6   : > { %v2906_v60 = vsel %vm1153_vm4, %v2867_v57, %v2659_v51  ;;  %v2705_v30 = vsel %vm244_vm0, %v1996_v54, %v2423_v47 }
 0x2a7   : > { %3219 = vmatprep.mubr.bf16.mxu1 %v2906_v60 }
 0x2a8   : > { %3220 = vmatmul.mubr.bf16.gmra.mrb[60].mxu1 %v2778_v46 }
 0x2a9   : > { %v2565_v26 = vpop.permute.xlu0 %2564  ;;  %v2471_v32 = vpop.permute.xlu1 %2470 }
 0x2aa   : > { %v2830_v21 = vsel %vm244_vm0, %v2187_v9, %v2565_v26  ;;  %v2743_v52 = vsel %vm1120_vm3, %v2705_v30, %v2471_v32 }
 0x2ad   : > { %v2613_v28 = vpop.permute.xlu0 %2612  ;;  %v2519_v49 = vpop.permute.xlu1 %2518 }
 0x2ae   : > { %v2869_v4 = vsel %vm1120_vm3, %v2830_v21, %v2613_v28  ;;  %v2784_v2 = vsel %vm1153_vm4, %v2743_v52, %v2519_v49 }
 0x2b1   : > { %v2661_v29 = vpop.permute.xlu0 %2660  ;;  %v2425_v23 = vpop.permute.xlu1 %2424 }
 0x2b2   : > { %v2909_v34 = vsel %vm1153_vm4, %v2869_v4, %v2661_v29  ;;  %v2708_v6 = vsel %vm244_vm0, %v5328_v19, %v2425_v23 }
 0x2b3   : > { %3227 = vmatprep.mubr.bf16.mxu1 %v2909_v34 }
 0x2b4   : > { %3228 = vmatmul.mubr.bf16.gmra.mrb[64].mxu1 %v2781_v40 }
 0x2b5   : > { %v2567_v59 = vpop.permute.xlu0 %2566  ;;  %v2473_v31 = vpop.permute.xlu1 %2472 }
 0x2b6   : > { %v2833_v0 = vsel %vm244_vm0, %v5337_v36, %v2567_v59  ;;  %v2745_v51 = vsel %vm1120_vm3, %v2708_v6, %v2473_v31 }
 0x2b9   : > { %v2615_v55 = vpop.permute.xlu0 %2614  ;;  %v2521_v45 = vpop.permute.xlu1 %2520 }
 0x2ba   : > { %v5566_v42 = vpop.f32.mrb[64].mxu0  ;;  %v2871_v48 = vsel %vm1120_vm3, %v2833_v0, %v2615_v55  ;;  %v2787_v60 = vsel %vm1153_vm4, %v2745_v51, %v2521_v45 }
 0x2bb   : > { %v5568_v7 = vpop.f32.mrb[65].mxu0 }
 0x2bc   : > { %v5572_v41 = vpop.f32.mrb[66].mxu0 }
 0x2bd   : > { %v5576_v58 = vpop.f32.mrb[67].mxu0  ;;  %v2663_v5 = vpop.permute.xlu0 %2662 }
 0x2be   : > { %v2427_v24 = vpop.permute.xlu1 %2426  ;;  %v2912_v39 = vsel %vm1153_vm4, %v2871_v48, %v2663_v5 }
 0x2bf   : > { %3235 = vmatprep.mubr.bf16.mxu1 %v2912_v39  ;;  %v2711_v28 = vsel %vm244_vm0, %v5355_v50, %v2427_v24 }
 0x2c0   : > { %3236 = vmatmul.mubr.bf16.gmra.mrb[68].mxu1 %v2784_v2 }
 0x2c1   : > { %v2569_v38 = vpop.permute.xlu0 %2568 }
 0x2c2   : > { %v2475_v36 = vpop.permute.xlu1 %2474  ;;  %v2836_v18 = vsel %vm244_vm0, %v5366_v44, %v2569_v38 }
 0x2c3   : > { %v2747_v37 = vsel %vm1120_vm3, %v2711_v28, %v2475_v36 }
 0x2c5   : > { %v2617_v63 = vpop.permute.xlu0 %2616 }
 0x2c6   : > { %v2523_v27 = vpop.permute.xlu1 %2522  ;;  %v2873_v13 = vsel %vm1120_vm3, %v2836_v18, %v2617_v63 }
 0x2c7   : > { %v2790_v4 = vsel %vm1153_vm4, %v2747_v37, %v2523_v27 }
 0x2c9   : > { %v2665_v57 = vpop.permute.xlu0 %2664 }
 0x2ca   : > { %v2429_v25 = vpop.permute.xlu1 %2428  ;;  %v2915_v47 = vsel %vm1153_vm4, %v2873_v13, %v2665_v57 }
 0x2cb   : > { %3243 = vmatprep.mubr.bf16.mxu1 %v2915_v47  ;;  %v2714_v34 = vsel %vm244_vm0, %v5386_v16, %v2429_v25 }
 0x2cc   : > { %3244 = vmatmul.mubr.bf16.gmra.mrb[72].mxu1 %v2787_v60 }
 0x2cd   : > { %v2571_v46 = vpop.permute.xlu0 %2570 }
 0x2ce   : > { %v2477_v26 = vpop.permute.xlu1 %2476  ;;  %v2839_v19 = vsel %vm244_vm0, %v5400_v53, %v2571_v46 }
 0x2cf   : > { %v2749_v31 = vsel %vm1120_vm3, %v2714_v34, %v2477_v26 }
 0x2d1   : > { %v2619_v32 = vpop.permute.xlu0 %2618  ;;  %v5589_v44 = vpop.f32.mrb[68].mxu0 }
 0x2d2   : > { %v2525_v8 = vpop.permute.xlu1 %2524  ;;  %v5591_v15 = vpop.f32.mrb[69].mxu0  ;;  %v2875_v62 = vsel %vm1120_vm3, %v2839_v19, %v2619_v32 }
 0x2d3   : > { %v5595_v22 = vpop.f32.mrb[70].mxu0  ;;  %v2793_v14 = vsel %vm1153_vm4, %v2749_v31, %v2525_v8 }
 0x2d4   : > { %v5600_v9 = vpop.f32.mrb[71].mxu0 }
 0x2d5   : > { %v2667_v49 = vpop.permute.xlu0 %2666 }
 0x2d6   : > { %v2431_v21 = vpop.permute.xlu1 %2430  ;;  %v2918_v11 = vsel %vm1153_vm4, %v2875_v62, %v2667_v49 }
 0x2d7   : > { %3251 = vmatprep.mubr.bf16.mxu1 %v2918_v11  ;;  %v2717_v5 = vsel %vm244_vm0, %v5424_v61, %v2431_v21 }
 0x2d8   : > { %3252 = vmatmul.mubr.bf16.gmra.mrb[76].mxu1 %v2790_v4 }
 0x2d9   : > { %v2573_v53 = vpop.permute.xlu0 %2572 }
 0x2da   : > { %v2479_v29 = vpop.permute.xlu1 %2478  ;;  %v2842_v50 = vsel %vm244_vm0, %v5443_v1, %v2573_v53 }
 0x2db   : > { %v2751_v2 = vsel %vm1120_vm3, %v2717_v5, %v2479_v29 }
 0x2de   : > { %v2621_v17 = vpop.permute.xlu0 %2620  ;;  %v2527_v23 = vpop.permute.xlu1 %2526 }
 0x2df   : > { %v2877_v40 = vsel %vm1120_vm3, %v2842_v50, %v2621_v17  ;;  %v2796_v63 = vsel %vm1153_vm4, %v2751_v2, %v2527_v23 }
 0x2e2   : > { %v2669_v59 = vpop.permute.xlu0 %2668  ;;  %v2433_v35 = vpop.permute.xlu1 %2432 }
 0x2e3   : > { %v2921_v55 = vsel %vm1153_vm4, %v2877_v40, %v2669_v59  ;;  %v2720_v6 = vsel %vm244_vm0, %v5461_v33, %v2433_v35 }
 0x2e4   : > { %3259 = vmatprep.mubr.bf16.mxu1 %v2921_v55  ;;  %v3453_v55 = vld [vmem:[%s4399_s28] sm:$0xff] }
 0x2e5   : > { %3260 = vmatmul.mubr.bf16.gmra.mrb[80].mxu1 %v2793_v14 }
 0x2e6   : > { %v2575_v45 = vpop.permute.xlu0 %2574  ;;  %v2481_v54 = vpop.permute.xlu1 %2480 }
 0x2e7   : > { %v2845_v16 = vsel %vm244_vm0, %v5479_v20, %v2575_v45  ;;  %v2753_v51 = vsel %vm1120_vm3, %v2720_v6, %v2481_v54  ;;  %v3454_v54 = vld [vmem:[%s4399_s28 + $0x8] sm:$0xff] }
 0x2e9   : > { %v5613_v30 = vpop.f32.mrb[72].mxu0 }
 0x2ea   : > { %v2623_v0 = vpop.permute.xlu0 %2622  ;;  %v5615_v1 = vpop.f32.mrb[73].mxu0 }
 0x2eb   : > { %v5619_v48 = vpop.f32.mrb[74].mxu0  ;;  %v2879_v52 = vsel %vm1120_vm3, %v2845_v16, %v2623_v0  ;;  %v2529_v38 = vpop.permute.xlu1 %2528 }
 0x2ec   : > { %v5624_v24 = vpop.f32.mrb[75].mxu0  ;;  %v2799_v60 = vsel %vm1153_vm4, %v2753_v51, %v2529_v38 }
 0x2ee   : > { %v2671_v39 = vpop.permute.xlu0 %2670 }
 0x2ef   : > { %v2924_v36 = vsel %vm1153_vm4, %v2879_v52, %v2671_v39  ;;  %v2435_v27 = vpop.permute.xlu1 %2434 }
 0x2f0   : > { %3267 = vmatprep.mubr.bf16.mxu1 %v2924_v36  ;;  %v2723_v33 = vsel %vm244_vm0, %v5496_v10, %v2435_v27  ;;  %v2371_v10 = vld [vmem:[#allocation3 + $0x1a2] sm:$0xff] }
 0x2f1   : > { %3268 = vmatmul.mubr.bf16.gmra.mrb[84].mxu1 %v2796_v63 }
 0x2f2   : > { %v2577_v20 = vpop.permute.xlu0 %2576 }
 0x2f3   : > { %v2848_v61 = vsel %vm244_vm0, %v5514_v12, %v2577_v20  ;;  %v2483_v25 = vpop.permute.xlu1 %2482 }
 0x2f4   : > { %v2755_v19 = vsel %vm1120_vm3, %v2723_v33, %v2483_v25 }
 0x2f6   : > { %v2625_v18 = vpop.permute.xlu0 %2624 }
 0x2f7   : > { %v2881_v13 = vsel %vm1120_vm3, %v2848_v61, %v2625_v18  ;;  %v2531_v12 = vpop.permute.xlu1 %2530  ;;  %v3455_v61 = vld [vmem:[%s4399_s28 + $0x10] sm:$0xff] }
 0x2f8   : > { %v2802_v37 = vsel %vm1153_vm4, %v2755_v19, %v2531_v12 }
 0x2fa   : > { %v2673_v57 = vpop.permute.xlu0 %2672 }
 0x2fb   : > { %v2927_v47 = vsel %vm1153_vm4, %v2881_v13, %v2673_v57  ;;  %v3456_v57 = vld [vmem:[%s4399_s28 + $0x18] sm:$0xff] }
 0x2fc   : > { %3275 = vmatprep.mubr.bf16.mxu1 %v2927_v47 }
 0x2fd   : > { %3276 = vmatmul.mubr.bf16.gmra.mrb[88].mxu1 %v2799_v60 }
 0x2fe   : > { %v2579_v46 = vpop.permute.xlu0 %2578 }
 0x2ff   : > { %v2851_v26 = vsel %vm244_vm0, %v5532_v56, %v2579_v46 }
 0x300   : > { %v2883_v8 = vsel %vm1120_vm3, %v2851_v26, %v5346_v43  ;;  %v2370_v43 = vld [vmem:[#allocation3 + $0x19a] sm:$0xff] }
 0x301   : > { %v5644_v28 = vpop.f32.mrb[76].mxu0  ;;  %v2387_v11 = vpack.c.bf16 %v2371_v10, %v2370_v43 }
 0x302   : > { %v2675_v32 = vpop.permute.xlu0 %2674  ;;  %v5647_v49 = vpop.f32.mrb[77].mxu0 }
 0x303   : > { %v2930_v62 = vsel %vm1153_vm4, %v2883_v8, %v2675_v32  ;;  %v5650_v56 = vpop.f32.mrb[78].mxu0  ;;  %v3457_v8 = vld [vmem:[%s4399_s28 + $0x20] sm:$0xff] }
 0x304   : > { %3283 = vmatprep.mubr.bf16.mxu1 %v2930_v62  ;;  %v5652_v21 = vpop.f32.mrb[79].mxu0  ;;  %v3458_v62 = vld [vmem:[%s4399_s28 + $0x28] sm:$0xff] }
 0x305   : > { %3284 = vmatmul.mubr.bf16.gmra.mrb[92].mxu1 %v2802_v37 }
 0x306   : > { %4050 = vmatprep.mubr.msk.bf16.mxu1 %vm244_vm0, %v5536_v3  ;;  %v5668_v3 = vld [vmem:[%s5901_s4] ss:$0 sm:$0xff] }
 0x30d   : > { %4051 = vmatmul.mubr.msk.bf16.vlgmr.msra.gmra.mrb[96].mxu1 %vm244_vm0, %v2387_v11 }
 0x319   : > { %v5657_v4 = vpop.f32.mrb[80].mxu0 }
 0x31a   : > { %v5659_v53 = vpop.f32.mrb[81].mxu0 }
 0x31b   : > { %v5661_v29 = vpop.f32.mrb[82].mxu0 }
 0x31c   : > { %v5663_v17 = vpop.f32.mrb[83].mxu0 }
 0x327   : > { %v3868_v23 = vpop.f32.mrb[32].mxu1 }
 0x328   : > { %v3869_v50 = vpop.f32.mrb[33].mxu1 }
 0x329   : > { %v3870_v34 = vadd.f32 %v3869_v50, %v3868_v23  ;;  %v3871_v40 = vpop.f32.mrb[34].mxu1 }
 0x32a   : > { %v3872_v59 = vpop.f32.mrb[35].mxu1 }
 0x32b   : > { %v3166_v31 = vadd.f32 %v3870_v34, %v5668_v3  ;;  %v3873_v35 = vadd.f32 %v3872_v59, %v3871_v40 }
 0x32d   : > { %v3327_v14 = vadd.f32 %v5568_v7, %v3166_v31  ;;  %v3169_v45 = vadd.f32 %v3873_v35, %v5668_v3 }
 0x32f   : > { %v3485_v0 = vadd.f32 %v3453_v55, %v3327_v14  ;;  %v3330_v16 = vadd.f32 %v5576_v58, %v3169_v45  ;;  %v3459_v14 = vld [vmem:[%s4399_s28 + $0x30] sm:$0xff] }
 0x331   : > { %3517 = vst.msk [vmem:[%s5678_s14] sm:$0xff] %vm244_vm0, %v3485_v0  ;;  %v3486_v5 = vadd.f32 %v3454_v54, %v3330_v16  ;;  %v5682_v52 = vpop.f32.mrb[84].mxu0  ;;  %v3460_v0 = vld [vmem:[%s4399_s28 + $0x38] sm:$0xff] }
 0x332   : > { %v5684_v39 = vpop.f32.mrb[85].mxu0 }
 0x333   : > { %3518 = vst.msk [vmem:[%s5678_s14 + $0x8] sm:$0xff] %vm244_vm0, %v3486_v5  ;;  %v3874_v7 = vpop.f32.mrb[36].mxu1  ;;  %v5688_v2 = vpop.f32.mrb[86].mxu0 }
 0x334   : > { %v3875_v58 = vpop.f32.mrb[37].mxu1  ;;  %v5690_v38 = vpop.f32.mrb[87].mxu0 }
 0x335   : > { %v3876_v36 = vadd.f32 %v3875_v58, %v3874_v7  ;;  %v3877_v63 = vpop.f32.mrb[38].mxu1 }
 0x336   : > { %v3878_v20 = vpop.f32.mrb[39].mxu1 }
 0x337   : > { %v3174_v27 = vadd.f32 %v3876_v36, %v5668_v3  ;;  %v3879_v18 = vadd.f32 %v3878_v20, %v3877_v63 }
 0x339   : > { %v3335_v6 = vadd.f32 %v5566_v42, %v3174_v27  ;;  %v3177_v13 = vadd.f32 %v3879_v18, %v5668_v3 }
 0x33b   : > { %v3487_v51 = vadd.f32 %v3455_v61, %v3335_v6  ;;  %v3338_v25 = vadd.f32 %v5572_v41, %v3177_v13  ;;  %v3461_v61 = vld [vmem:[%s4399_s28 + $0x40] sm:$0xff]  ;;  %v3462_v13 = vld [vmem:[%s4399_s28 + $0x48] sm:$0xff] }
 0x33d   : > { %3519 = vst.msk [vmem:[%s5678_s14 + $0x10] sm:$0xff] %vm244_vm0, %v3487_v51  ;;  %v3488_v47 = vadd.f32 %v3456_v57, %v3338_v25 }
 0x33f   : > { %3520 = vst.msk [vmem:[%s5678_s14 + $0x18] sm:$0xff] %vm244_vm0, %v3488_v47 }
 0x340   : > { %v3880_v60 = vpop.f32.mrb[40].mxu1 }
 0x341   : > { %v3881_v46 = vpop.f32.mrb[41].mxu1 }
 0x342   : > { %v3882_v26 = vadd.f32 %v3881_v46, %v3880_v60  ;;  %v3883_v12 = vpop.f32.mrb[42].mxu1 }
 0x343   : > { %v3884_v33 = vpop.f32.mrb[43].mxu1 }
 0x344   : > { %v3182_v42 = vadd.f32 %v3882_v26, %v5668_v3  ;;  %v3885_v32 = vadd.f32 %v3884_v33, %v3883_v12 }
 0x346   : > { %v3343_v19 = vadd.f32 %v5591_v15, %v3182_v42  ;;  %v3185_v41 = vadd.f32 %v3885_v32, %v5668_v3  ;;  %v3463_v42 = vld [vmem:[%s4399_s28 + $0x50] sm:$0xff] }
 0x348   : > { %v3489_v37 = vadd.f32 %v3457_v8, %v3343_v19  ;;  %v3346_v43 = vadd.f32 %v5600_v9, %v3185_v41  ;;  %v3464_v8 = vld [vmem:[%s4399_s28 + $0x58] sm:$0xff] }
 0x34a   : > { %3521 = vst.msk [vmem:[%s5678_s14 + $0x20] sm:$0xff] %vm244_vm0, %v3489_v37  ;;  %v3490_v10 = vadd.f32 %v3458_v62, %v3346_v43  ;;  %v5710_v11 = vpop.f32.mrb[88].mxu0 }
 0x34b   : > { %v5712_v23 = vpop.f32.mrb[89].mxu0 }
 0x34c   : > { %3522 = vst.msk [vmem:[%s5678_s14 + $0x28] sm:$0xff] %vm244_vm0, %v3490_v10  ;;  %v3886_v50 = vpop.f32.mrb[44].mxu1  ;;  %v5716_v15 = vpop.f32.mrb[90].mxu0 }
 0x34d   : > { %v3887_v34 = vpop.f32.mrb[45].mxu1  ;;  %v5718_v40 = vpop.f32.mrb[91].mxu0 }
 0x34e   : > { %v3888_v59 = vadd.f32 %v3887_v34, %v3886_v50  ;;  %v3889_v9 = vpop.f32.mrb[46].mxu1 }
 0x34f   : > { %v3890_v31 = vpop.f32.mrb[47].mxu1 }
 0x350   : > { %v3190_v35 = vadd.f32 %v3888_v59, %v5668_v3  ;;  %v3891_v55 = vadd.f32 %v3890_v31, %v3889_v9  ;;  %v3465_v9 = vld [vmem:[%s4399_s28 + $0x60] sm:$0xff] }
 0x352   : > { %v3351_v45 = vadd.f32 %v5589_v44, %v3190_v35  ;;  %v3193_v54 = vadd.f32 %v3891_v55, %v5668_v3  ;;  %v3466_v35 = vld [vmem:[%s4399_s28 + $0x68] sm:$0xff] }
 0x354   : > { %v3491_v16 = vadd.f32 %v3459_v14, %v3351_v45  ;;  %v3354_v5 = vadd.f32 %v5595_v22, %v3193_v54 }
 0x356   : > { %3523 = vst.msk [vmem:[%s5678_s14 + $0x30] sm:$0xff] %vm244_vm0, %v3491_v16  ;;  %v3492_v7 = vadd.f32 %v3460_v0, %v3354_v5 }
 0x358   : > { %v3892_v58 = vpop.f32.mrb[48].mxu1  ;;  %3524 = vst.msk [vmem:[%s5678_s14 + $0x38] sm:$0xff] %vm244_vm0, %v3492_v7 }
 0x359   : > { %v3893_v36 = vpop.f32.mrb[49].mxu1 }
 0x35a   : > { %v3894_v63 = vadd.f32 %v3893_v36, %v3892_v58  ;;  %v3895_v20 = vpop.f32.mrb[50].mxu1  ;;  %v3467_v36 = vld [vmem:[%s4399_s28 + $0x70] sm:$0xff] }
 0x35b   : > { %v3896_v27 = vpop.f32.mrb[51].mxu1 }
 0x35c   : > { %v3198_v44 = vadd.f32 %v3894_v63, %v5668_v3  ;;  %v3897_v18 = vadd.f32 %v3896_v27, %v3895_v20  ;;  %v3468_v20 = vld [vmem:[%s4399_s28 + $0x78] sm:$0xff] }
 0x35e   : > { %v3359_v6 = vadd.f32 %v5615_v1, %v3198_v44  ;;  %v3201_v22 = vadd.f32 %v3897_v18, %v5668_v3 }
 0x360   : > { %v3493_v57 = vadd.f32 %v3461_v61, %v3359_v6  ;;  %v3362_v51 = vadd.f32 %v5624_v24, %v3201_v22 }
 0x362   : > { %3525 = vst.msk [vmem:[%s5678_s14 + $0x40] sm:$0xff] %vm244_vm0, %v3493_v57  ;;  %v3494_v25 = vadd.f32 %v3462_v13, %v3362_v51 }
 0x363   : > { %v3898_v47 = vpop.f32.mrb[52].mxu1 }
 0x364   : > { %3526 = vst.msk [vmem:[%s5678_s14 + $0x48] sm:$0xff] %vm244_vm0, %v3494_v25  ;;  %v3899_v60 = vpop.f32.mrb[53].mxu1  ;;  %v3469_v25 = vld [vmem:[%s4399_s28 + $0x80] sm:$0xff] }
 0x365   : > { %v3900_v46 = vadd.f32 %v3899_v60, %v3898_v47  ;;  %v3901_v26 = vpop.f32.mrb[54].mxu1  ;;  %v3470_v60 = vld [vmem:[%s4399_s28 + $0x88] sm:$0xff] }
 0x366   : > { %v3902_v12 = vpop.f32.mrb[55].mxu1 }
 0x367   : > { %v3206_v1 = vadd.f32 %v3900_v46, %v5668_v3  ;;  %v3903_v33 = vadd.f32 %v3902_v12, %v3901_v26 }
 0x369   : > { %v3367_v32 = vadd.f32 %v5613_v30, %v3206_v1  ;;  %v3209_v24 = vadd.f32 %v3903_v33, %v5668_v3 }
 0x36b   : > { %v3495_v19 = vadd.f32 %v3463_v42, %v3367_v32  ;;  %v3370_v41 = vadd.f32 %v5619_v48, %v3209_v24 }
 0x36d   : > { %3527 = vst.msk [vmem:[%s5678_s14 + $0x50] sm:$0xff] %vm244_vm0, %v3495_v19  ;;  %v3496_v62 = vadd.f32 %v3464_v8, %v3370_v41  ;;  %v3471_v19 = vld [vmem:[%s4399_s28 + $0x90] sm:$0xff] }
 0x36f   : > { %3528 = vst.msk [vmem:[%s5678_s14 + $0x58] sm:$0xff] %vm244_vm0, %v3496_v62  ;;  %v3904_v37 = vpop.f32.mrb[56].mxu1  ;;  %v3472_v62 = vld [vmem:[%s4399_s28 + $0x98] sm:$0xff] }
 0x370   : > { %v3905_v43 = vpop.f32.mrb[57].mxu1 }
 0x371   : > { %v3906_v10 = vadd.f32 %v3905_v43, %v3904_v37  ;;  %v3907_v50 = vpop.f32.mrb[58].mxu1 }
 0x372   : > { %v3908_v34 = vpop.f32.mrb[59].mxu1 }
 0x373   : > { %v3214_v30 = vadd.f32 %v3906_v10, %v5668_v3  ;;  %v3909_v59 = vadd.f32 %v3908_v34, %v3907_v50 }
 0x375   : > { %v3375_v31 = vadd.f32 %v5647_v49, %v3214_v30  ;;  %v3217_v48 = vadd.f32 %v3909_v59, %v5668_v3 }
 0x377   : > { %v3497_v55 = vadd.f32 %v3465_v9, %v3375_v31  ;;  %v3378_v14 = vadd.f32 %v5652_v21, %v3217_v48  ;;  %v3473_v48 = vld [vmem:[%s4399_s28 + $0xa0] sm:$0xff] }
 0x379   : > { %3529 = vst.msk [vmem:[%s5678_s14 + $0x60] sm:$0xff] %vm244_vm0, %v3497_v55  ;;  %v3498_v45 = vadd.f32 %v3466_v35, %v3378_v14  ;;  %v3474_v55 = vld [vmem:[%s4399_s28 + $0xa8] sm:$0xff] }
 0x37b   : > { %3530 = vst.msk [vmem:[%s5678_s14 + $0x68] sm:$0xff] %vm244_vm0, %v3498_v45  ;;  %v3910_v54 = vpop.f32.mrb[60].mxu1 }
 0x37c   : > { %v3911_v0 = vpop.f32.mrb[61].mxu1 }
 0x37d   : > { %v3912_v16 = vadd.f32 %v3911_v0, %v3910_v54  ;;  %v3913_v5 = vpop.f32.mrb[62].mxu1 }
 0x37e   : > { %v3914_v7 = vpop.f32.mrb[63].mxu1 }
 0x37f   : > { %v3222_v49 = vadd.f32 %v3912_v16, %v5668_v3  ;;  %v3915_v58 = vadd.f32 %v3914_v7, %v3913_v5 }
 0x381   : > { %v3383_v63 = vadd.f32 %v5644_v28, %v3222_v49  ;;  %v3225_v21 = vadd.f32 %v3915_v58, %v5668_v3 }
 0x383   : > { %v3499_v27 = vadd.f32 %v3467_v36, %v3383_v63  ;;  %v3386_v44 = vadd.f32 %v5650_v56, %v3225_v21  ;;  %v3475_v36 = vld [vmem:[%s4399_s28 + $0xb0] sm:$0xff]  ;;  %v3476_v21 = vld [vmem:[%s4399_s28 + $0xb8] sm:$0xff] }
 0x385   : > { %3531 = vst.msk [vmem:[%s5678_s14 + $0x70] sm:$0xff] %vm244_vm0, %v3499_v27  ;;  %v3500_v18 = vadd.f32 %v3468_v20, %v3386_v44 }
 0x387   : > { %3532 = vst.msk [vmem:[%s5678_s14 + $0x78] sm:$0xff] %vm244_vm0, %v3500_v18  ;;  %v3916_v61 = vpop.f32.mrb[64].mxu1 }
 0x388   : > { %v3917_v6 = vpop.f32.mrb[65].mxu1 }
 0x389   : > { %v3918_v22 = vadd.f32 %v3917_v6, %v3916_v61  ;;  %v3919_v13 = vpop.f32.mrb[66].mxu1 }
 0x38a   : > { %v3920_v57 = vpop.f32.mrb[67].mxu1 }
 0x38b   : > { %v3230_v28 = vadd.f32 %v3918_v22, %v5668_v3  ;;  %v3921_v51 = vadd.f32 %v3920_v57, %v3919_v13 }
 0x38d   : > { %v3391_v47 = vadd.f32 %v5659_v53, %v3230_v28  ;;  %v3233_v56 = vadd.f32 %v3921_v51, %v5668_v3  ;;  %v3477_v28 = vld [vmem:[%s4399_s28 + $0xc0] sm:$0xff] }
 0x38f   : > { %v3501_v46 = vadd.f32 %v3469_v25, %v3391_v47  ;;  %v3394_v26 = vadd.f32 %v5663_v17, %v3233_v56  ;;  %v3478_v25 = vld [vmem:[%s4399_s28 + $0xc8] sm:$0xff] }
 0x391   : > { %3533 = vst.msk [vmem:[%s5678_s14 + $0x80] sm:$0xff] %vm244_vm0, %v3501_v46  ;;  %v3502_v12 = vadd.f32 %v3470_v60, %v3394_v26 }
 0x393   : > { %3534 = vst.msk [vmem:[%s5678_s14 + $0x88] sm:$0xff] %vm244_vm0, %v3502_v12  ;;  %v3922_v1 = vpop.f32.mrb[68].mxu1 }
 0x394   : > { %v3923_v33 = vpop.f32.mrb[69].mxu1 }
 0x395   : > { %v3924_v42 = vadd.f32 %v3923_v33, %v3922_v1  ;;  %v3925_v32 = vpop.f32.mrb[70].mxu1 }
 0x396   : > { %v3926_v24 = vpop.f32.mrb[71].mxu1 }
 0x397   : > { %v3238_v53 = vadd.f32 %v3924_v42, %v5668_v3  ;;  %v3927_v8 = vadd.f32 %v3926_v24, %v3925_v32  ;;  %v3479_v32 = vld [vmem:[%s4399_s28 + $0xd0] sm:$0xff] }
 0x399   : > { %v3399_v41 = vadd.f32 %v5657_v4, %v3238_v53  ;;  %v3241_v17 = vadd.f32 %v3927_v8, %v5668_v3  ;;  %v3480_v53 = vld [vmem:[%s4399_s28 + $0xd8] sm:$0xff] }
 0x39b   : > { %v3503_v37 = vadd.f32 %v3471_v19, %v3399_v41  ;;  %v3402_v43 = vadd.f32 %v5661_v29, %v3241_v17 }
 0x39d   : > { %3535 = vst.msk [vmem:[%s5678_s14 + $0x90] sm:$0xff] %vm244_vm0, %v3503_v37  ;;  %v3504_v10 = vadd.f32 %v3472_v62, %v3402_v43 }
 0x39f   : > { %3536 = vst.msk [vmem:[%s5678_s14 + $0x98] sm:$0xff] %vm244_vm0, %v3504_v10  ;;  %v3928_v50 = vpop.f32.mrb[72].mxu1 }
 0x3a0   : > { %v3929_v34 = vpop.f32.mrb[73].mxu1 }
 0x3a1   : > { %v3930_v30 = vadd.f32 %v3929_v34, %v3928_v50  ;;  %v3931_v59 = vpop.f32.mrb[74].mxu1 }
 0x3a2   : > { %v3932_v9 = vpop.f32.mrb[75].mxu1 }
 0x3a3   : > { %v3246_v4 = vadd.f32 %v3930_v30, %v5668_v3  ;;  %v3933_v31 = vadd.f32 %v3932_v9, %v3931_v59 }
 0x3a5   : > { %v3407_v35 = vadd.f32 %v5684_v39, %v3246_v4  ;;  %v3249_v29 = vadd.f32 %v3933_v31, %v5668_v3 }
 0x3a7   : > { %v3505_v14 = vadd.f32 %v3473_v48, %v3407_v35  ;;  %v3410_v45 = vadd.f32 %v5690_v38, %v3249_v29  ;;  %v3483_v48 = vld [vmem:[%s4399_s28 + $0xf0] sm:$0xff] }
 0x3a9   : > { %3537 = vst.msk [vmem:[%s5678_s14 + $0xa0] sm:$0xff] %vm244_vm0, %v3505_v14  ;;  %v3506_v54 = vadd.f32 %v3474_v55, %v3410_v45  ;;  %v3481_v14 = vld [vmem:[%s4399_s28 + $0xe0] sm:$0xff] }
 0x3ab   : > { %3538 = vst.msk [vmem:[%s5678_s14 + $0xa8] sm:$0xff] %vm244_vm0, %v3506_v54  ;;  %v3934_v0 = vpop.f32.mrb[76].mxu1 }
 0x3ac   : > { %v3935_v16 = vpop.f32.mrb[77].mxu1 }
 0x3ad   : > { %v3936_v5 = vadd.f32 %v3935_v16, %v3934_v0  ;;  %v3937_v7 = vpop.f32.mrb[78].mxu1  ;;  %v3484_v16 = vld [vmem:[%s4399_s28 + $0xf8] sm:$0xff] }
 0x3ae   : > { %v3938_v49 = vpop.f32.mrb[79].mxu1 }
 0x3af   : > { %v3254_v39 = vadd.f32 %v3936_v5, %v5668_v3  ;;  %v3939_v58 = vadd.f32 %v3938_v49, %v3937_v7 }
 0x3b1   : > { %v3415_v63 = vadd.f32 %v5682_v52, %v3254_v39  ;;  %v3257_v38 = vadd.f32 %v3939_v58, %v5668_v3  ;;  %v3482_v58 = vld [vmem:[%s4399_s28 + $0xe8] sm:$0xff]  ;;  %s4181_s28 = scalar_lea.vmem %s5847_s15, 4096 }
 0x3b2   : > { %p4182_p6 = scmp.ne.s32.totalorder %s5847_s15, %s4181_s28  ;;  %p4189_p10 = scmp.lt.s32.totalorder %s4187_s11, %s4181_s28 }
 0x3b3   : > { %v3507_v20 = vadd.f32 %v3475_v36, %v3415_v63  ;;  %v3418_v27 = vadd.f32 %v5688_v2, %v3257_v38 }
 0x3b4   : > { %p4183_p12 = pnand %p4182_p6, %p5909_p11  ;;  %p4190_p0 = por %p4189_p10, %p4188_p8 }
 0x3b5   : > { %3539 = vst.msk [vmem:[%s5678_s14 + $0xb0] sm:$0xff] %vm244_vm0, %v3507_v20  ;;  %v3508_v44 = vadd.f32 %v3476_v21, %v3418_v27 }
 0x3b6   : > { %p4184_p13 = pneg %p4183_p12 }
 0x3b7   : > { %3540 = vst.msk [vmem:[%s5678_s14 + $0xb8] sm:$0xff] %vm244_vm0, %v3508_v44 }
 0x3b8   : > { %v3940_v18 = vpop.f32.mrb[80].mxu1  ;;  %p4191_p2 = pnand %p4190_p0, %p4184_p13 }
 0x3b9   : > { %v3941_v61 = vpop.f32.mrb[81].mxu1 }
 0x3ba   : > { %v3942_v6 = vadd.f32 %v3941_v61, %v3940_v18  ;;  %v3943_v22 = vpop.f32.mrb[82].mxu1 }
 0x3bb   : > { %v3944_v13 = vpop.f32.mrb[83].mxu1 }
 0x3bc   : > { %v3262_v52 = vadd.f32 %v3942_v6, %v5668_v3  ;;  %v3945_v57 = vadd.f32 %v3944_v13, %v3943_v22 }
 0x3be   : > { %v3423_v51 = vadd.f32 %v5712_v23, %v3262_v52  ;;  %v3265_v2 = vadd.f32 %v3945_v57, %v5668_v3 }
 0x3c0   : > { %v3509_v47 = vadd.f32 %v3477_v28, %v3423_v51  ;;  %v3426_v56 = vadd.f32 %v5718_v40, %v3265_v2 }
 0x3c2   : > { %3541 = vst.msk [vmem:[%s5678_s14 + $0xc0] sm:$0xff] %vm244_vm0, %v3509_v47  ;;  %v3510_v60 = vadd.f32 %v3478_v25, %v3426_v56 }
 0x3c4   : > { %3542 = vst.msk [vmem:[%s5678_s14 + $0xc8] sm:$0xff] %vm244_vm0, %v3510_v60  ;;  %v3946_v46 = vpop.f32.mrb[84].mxu1 }
 0x3c5   : > { %v3947_v26 = vpop.f32.mrb[85].mxu1 }
 0x3c6   : > { %v3948_v12 = vadd.f32 %v3947_v26, %v3946_v46  ;;  %v3949_v1 = vpop.f32.mrb[86].mxu1 }
 0x3c7   : > { %v3950_v33 = vpop.f32.mrb[87].mxu1 }
 0x3c8   : > { %v3270_v23 = vadd.f32 %v3948_v12, %v5668_v3  ;;  %v3951_v42 = vadd.f32 %v3950_v33, %v3949_v1 }
 0x3ca   : > { %v3431_v24 = vadd.f32 %v5710_v11, %v3270_v23  ;;  %v3273_v40 = vadd.f32 %v3951_v42, %v5668_v3 }
 0x3cc   : > { %v3511_v8 = vadd.f32 %v3479_v32, %v3431_v24  ;;  %v3434_v19 = vadd.f32 %v5716_v15, %v3273_v40 }
 0x3ce   : > { %3543 = vst.msk [vmem:[%s5678_s14 + $0xd0] sm:$0xff] %vm244_vm0, %v3511_v8  ;;  %v3512_v41 = vadd.f32 %v3480_v53, %v3434_v19 }
 0x3d0   : > { %3544 = vst.msk [vmem:[%s5678_s14 + $0xd8] sm:$0xff] %vm244_vm0, %v3512_v41  ;;  %v3952_v17 = vpop.f32.mrb[88].mxu1 }
 0x3d1   : > { %v3953_v62 = vpop.f32.mrb[89].mxu1 }
 0x3d2   : > { %v3954_v37 = vadd.f32 %v3953_v62, %v3952_v17  ;;  %v3955_v43 = vpop.f32.mrb[90].mxu1 }
 0x3d3   : > { %v3956_v10 = vpop.f32.mrb[91].mxu1 }
 0x3d4   : > { %v3957_v50 = vadd.f32 %v3956_v10, %v3955_v43  ;;  %v3278_v35 = vadd.f32 %v3954_v37, %v5668_v3 }
 0x3d6   : > { %v3281_v5 = vadd.f32 %v3957_v50, %v5668_v3 }
 0x3d8   : > { %v3958_v11 = vpop.f32.mrb[92].mxu1 }
 0x3d9   : > { %v3959_v34 = vpop.f32.mrb[93].mxu1 }
 0x3da   : > { %v3960_v30 = vadd.f32 %v3959_v34, %v3958_v11  ;;  %v3961_v59 = vpop.f32.mrb[94].mxu1 }
 0x3db   : > { %v3962_v15 = vpop.f32.mrb[95].mxu1 }
 0x3dc   : > { %v3963_v9 = vadd.f32 %v3962_v15, %v3961_v59  ;;  %v3286_v4 = vadd.f32 %v3960_v30, %v5668_v3 }
 0x3de   : > { %v3289_v45 = vadd.f32 %v3963_v9, %v5668_v3 }
 0x3e0   : > { %v4052_v31 = vpop.f32.mrb[96].mxu1 }
 0x3e1   : > { %v3447_v29 = vadd.f32 %v4052_v31, %v3286_v4  ;;  %v3438_v55 = vpop.f32.mrb[97].mxu1 }
 0x3e2   : > { %v3439_v54 = vadd.f32 %v3438_v55, %v3278_v35  ;;  %v4053_v0 = vpop.f32.mrb[98].mxu1 }
 0x3e3   : > { %v3515_v7 = vadd.f32 %v3483_v48, %v3447_v29  ;;  %v3450_v49 = vadd.f32 %v4053_v0, %v3289_v45  ;;  %v3441_v39 = vpop.f32.mrb[99].mxu1 }
 0x3e4   : > { %v3513_v36 = vadd.f32 %v3481_v14, %v3439_v54  ;;  %v3442_v63 = vadd.f32 %v3441_v39, %v3281_v5 }
 0x3e5   : > { %3547 = vst.msk [vmem:[%s5678_s14 + $0xf0] sm:$0xff] %vm244_vm0, %v3515_v7  ;;  %v3516_v38 = vadd.f32 %v3484_v16, %v3450_v49 }
 0x3e6   : > { %3545 = vst.msk [vmem:[%s5678_s14 + $0xe0] sm:$0xff] %vm244_vm0, %v3513_v36  ;;  %v3514_v3 = vadd.f32 %v3482_v58, %v3442_v63 }
 0x3e7   : > { %3548 = vst.msk [vmem:[%s5678_s14 + $0xf8] sm:$0xff] %vm244_vm0, %v3516_v38 }
 0x3e8   : > { %3546 = vst.msk [vmem:[%s5678_s14 + $0xe8] sm:$0xff] %vm244_vm0, %v3514_v3 }
 0x3e9   : > { %4194 = shalt.err (!%p4191_p2)
}
 0x3ea   : > { %s4195_s13 = scalar_lea.hbm %s5845_s7, 4096  ;;  %s4199_s29 = scalar_lea.hbm %s5902_s5, 8192 }
 0x3eb   : > { %p4196_p4 = scmp.ne.s32.totalorder %s5845_s7, %s4195_s13  ;;  %p4200_p9 = scmp.lt.u32.totalorder %s5845_s7, %s5902_s5 }
 0x3ec   : > { %p4201_p1 = scmp.lt.u32.totalorder %s4199_s29, %s4195_s13  ;;  %p4203_p6 = scmp.lt.u32.totalorder %s4195_s13, %s5845_s7 }
 0x3ed   : > { %p4197_p5 = pnand %p4196_p4, %p5909_p11 }
 0x3ee   : > { %p4202_p3 = por %p4201_p1, %p4200_p9 }
 0x3ef   : > { %p4198_p7 = pneg %p4197_p5 }
 0x3f0   : > { %p4204_p12 = por %p4203_p6, %p4202_p3 }
 0x3f2   : > { %p4205_p13 = pnand %p4204_p12, %p4198_p7 }
 0x3f4   : > { %4208 = shalt.err (!%p4205_p13)
}
 0x3f5   : > { %s4257_s25 = smov 128   ;;  %s4258_s16 = smov 8  }
 0x3f6   : > { %4060 = dma.vmem_to_hbm [thread:$0]  (%p5909_p11), %s5847_s15, 4096, %s5845_s7, %s3550_s22, %s4257_s25, %s4257_s25, %s4258_s16  }
 0x3f7 PF: > { %s3578_s8 = sand.u32 1, %s4235_s18   ;;  %p5910_p8 = scmp.ne.s32.totalorder %s5907_s6, 0 }
 0x3f8   : > { %p5911_p10 = scmp.ge.s32.totalorder %s4247_s21, 2  ;;  %s3579_s28 = scalar_lea.sflag [#allocation6], %s3578_s8 }
 0x3fa   : > { %p4067_p0 = pnand %p5911_p10, %p5910_p8 }
 0x3fc   : > { %4230 = dma.done.wait (!%p4067_p0), %s3579_s28, 4096  }
 0x3fd   : > { %4232 = vsyncadd (!%p4067_p0), %s3579_s28, 4294963200  ;;  %p18_p2 = scmp.ge.s32.totalorder %s4314_s24, 4   ;;  %s5912_s18 = smov %s4239_s19 }
 0x3fe   : > { %s5913_s19 = smov %s4243_s20  ;;  %s5914_s20 = smov %s4326_s27 }
 0x3ff   : > { %s5915_s21 = smov %s4314_s24  ;;  %20 = sbr.rel (!%p18_p2) target bundleno = 5 (0x5), region = 91 }
 0x406   :  { %3584 = vsyncpa [#allocation5], 1 }
 0x407   :  { %3586 = vsyncpa [#allocation5 + $0x1], 1 }
 0x408   :  { %3587 = vsyncpa [#allocation6], 1 }
 0x409   :  { %3589 = vsyncpa [#allocation6 + $0x1], 1 }

</bundles_post_ra>
